<compile_context>
chip_gen: v5e
topology: v5e:2x2
jax: 0.10.0
libtpu: 0.0.40
codegen_flags: <defaults>
</compile_context>

<pallas_src>
import functools

import jax
import jax.numpy as jnp
from jax import lax
from jax.experimental import pallas as pl
from jax.experimental.pallas import tpu as pltpu

_LANE = 128
_SLAB = 9 * _LANE               # 1152 flat elements == 128 rotation rows per slab row
_DEFAULT_ROWS_PER_TILE = 65536  # rotation matrices per grid step


def _cdiv(a, b):
    return -(-a // b)


def _round_up(x, m):
    return _cdiv(x, m) * m


def _acos_f32(x):
    """Branch-free float32 arccos for x in [-1, 1] (Cephes asinf polynomial).

    Uses only mul/add/sqrt/abs/select so it lowers on any Mosaic version.
    Max abs error ~1e-6 rad; exact at x = +/-1.
    """
    a = jnp.abs(x)
    small = a <= 0.5
    z_big = 0.5 * (1.0 - a)                    # exact for a in [0.5, 1]
    t = jnp.where(small, a, jnp.sqrt(z_big))   # asin argument, in [0, 0.5]
    z = jnp.where(small, a * a, z_big)         # == t*t
    p = ((((4.2163199048e-2 * z + 2.4181311049e-2) * z + 4.5470025998e-2) * z
          + 7.4953002686e-2) * z + 1.6666752422e-1)
    asin_t = t + t * z * p                     # asin(t), t in [0, 0.5]
    acos_a = jnp.where(small, 1.5707963267948966 - asin_t, 2.0 * asin_t)
    return jnp.where(x < 0.0, 3.141592653589793 - acos_a, acos_a)


def _theta_block(yp_ref, yt_ref, w_ref):
    # yp/yt: (r_blk, 1152) lane-dense slabs of the natural flat layout.
    p = yp_ref[...].astype(jnp.float32) * yt_ref[...].astype(jnp.float32)
    # 9-term segmented sum on the MXU: trace[a, s] = sum_j m1[r,:]*m2[r,:] with
    # r = a*128 + s.  W is 0/1, so HIGHEST precision keeps this an f32-exact sum.
    trace = jnp.dot(p, w_ref[...], preferred_element_type=jnp.float32,
                    precision=lax.Precision.HIGHEST)            # (r_blk, 128)
    cos = (trace - 1.0) * 0.5
    cos = jnp.minimum(cos, 1.0)     # torch.min(cos,  ones)
    cos = jnp.maximum(cos, -1.0)    # torch.max(cos, -ones)
    return _acos_f32(cos)           # (r_blk, 128): sublane- and lane-dense


def _theta_kernel(yp_ref, yt_ref, w_ref, theta_ref):
    # reduction='none' path: dense theta block, no masking (wrapper slices [:n]).
    theta_ref[...] = _theta_block(yp_ref, yt_ref, w_ref)


def _theta_psum_kernel(yp_ref, yt_ref, w_ref, psum_ref, *, n_rows, r_blk):
    # reduction='mean'/'batchmean' path: per-tile partial sums.
    theta = _theta_block(yp_ref, yt_ref, w_ref)                 # (r_blk, 128)
    i = pl.program_id(0)
    last = pl.num_programs(0) - 1

    @pl.when(i != last)
    def _():  # full interior tiles: no mask cost
        psum_ref[...] = jnp.sum(theta, axis=0, keepdims=True).reshape(1, 1, _LANE)

    @pl.when(i == last)
    def _():  # only the last tile can contain padded / out-of-range rotation rows
        a = lax.broadcasted_iota(jnp.int32, theta.shape, 0)
        s = lax.broadcasted_iota(jnp.int32, theta.shape, 1)
        row = (i * r_blk + a) * _LANE + s
        th = jnp.where(row < n_rows, theta, 0.0)
        psum_ref[...] = jnp.sum(th, axis=0, keepdims=True).reshape(1, 1, _LANE)


def _to_slab(x2d, n_pad):
    n = x2d.shape[0]
    if n_pad != n:
        x2d = jnp.pad(x2d, ((0, n_pad - n), (0, 0)))
    # Row-major regroup only (no transpose): (n_pad, 9) -> (n_pad/128, 1152).
    return x2d.reshape(n_pad // _LANE, _SLAB)


def _pick_block_rows(r_total, rows_per_tile):
    # Slab rows per grid step; must be a multiple of 8 (or the full extent).
    r_max = max(8, _round_up(max(rows_per_tile, 1024), 1024) // _LANE)
    if r_total <= 8:
        return r_total
    if r_total <= 2 * r_max:
        # Keep >= 2 grid steps for mid-size N: v7x has two TensorCores, and a
        # single-step grid also loses DMA/compute pipelining.
        return min(r_max, _round_up(_cdiv(r_total, 2), 8))
    return r_max


def geodesic_loss(ypred, ytrue, reduction="batchmean",
                  rows_per_tile=_DEFAULT_ROWS_PER_TILE):
    """Pallas-TPU forward of the PyTorch GeodesicLoss module (eps is unused there)."""
    yp2 = ypred.reshape(-1, 9)     # natural contiguous layout; native dtype kept
    yt2 = ytrue.reshape(-1, 9)
    n = yp2.shape[0]
    want_mean = reduction in ("mean", "batchmean")
    # NOTE: for 1-D theta, torch.mean(torch.sum(theta, dim=())) == mean(theta)
    # under PyTorch >= 2.0 semantics, so 'batchmean' == 'mean' here.
    if n == 0:  # guard empty batch (torch.mean of empty -> nan)
        return (jnp.array(jnp.nan, jnp.float32) if want_mean
                else jnp.zeros((0,), jnp.float32))

    # Pad rows to a multiple of 128 (min 1024) so the flat data regroups into
    # 1152-lane slabs.  Padding only ever touches the tail; never a transpose.
    n_pad = max(1024, _round_up(n, _LANE))
    r_total = n_pad // _LANE
    yp_s = _to_slab(yp2, n_pad)
    yt_s = _to_slab(yt2, n_pad)

    r_blk = _pick_block_rows(r_total, rows_per_tile)
    num_tiles = _cdiv(r_total, r_blk)

    # Segmented-sum matrix for the MXU: w[l, s] = 1 iff lane l belongs to segment s.
    w = (jnp.arange(_SLAB, dtype=jnp.int32)[:, None] // 9
         == jnp.arange(_LANE, dtype=jnp.int32)[None, :]).astype(jnp.float32)

    in_specs = [
        pl.BlockSpec((r_blk, _SLAB), lambda i: (i, 0)),
        pl.BlockSpec((r_blk, _SLAB), lambda i: (i, 0)),
        pl.BlockSpec((_SLAB, _LANE), lambda i: (0, 0)),  # constant block: DMA'd once
    ]
    cparams = pltpu.CompilerParams(dimension_semantics=("parallel",))

    if want_mean:
        kernel = functools.partial(_theta_psum_kernel, n_rows=n, r_blk=r_blk)
        psums = pl.pallas_call(
            kernel,
            out_shape=jax.ShapeDtypeStruct((num_tiles, 1, _LANE), jnp.float32),
            grid=(num_tiles,),
            in_specs=in_specs,
            out_specs=pl.BlockSpec((1, 1, _LANE), lambda i: (i, 0, 0)),
            compiler_params=cparams,
        )(yp_s, yt_s, w)
        return jnp.sum(psums) / n

    theta_pad = pl.pallas_call(
        _theta_kernel,
        out_shape=jax.ShapeDtypeStruct((r_total, _LANE), jnp.float32),
        grid=(num_tiles,),
        in_specs=in_specs,
        out_specs=pl.BlockSpec((r_blk, _LANE), lambda i: (i, 0)),
        compiler_params=cparams,
    )(yp_s, yt_s, w)
    # theta_pad[a, s] is theta of rotation row a*128 + s -> row-major flatten + slice.
    return theta_pad.reshape(-1)[:n]


def _geodesic_loss_ref(ypred, ytrue, reduction="batchmean"):
    # Pure-JAX reference (elementwise trace, f32).
    m1 = ypred.reshape(-1, 3, 3).astype(jnp.float32)
    m2 = ytrue.reshape(-1, 3, 3).astype(jnp.float32)
    trace = jnp.sum(m1 * m2, axis=(-2, -1))          # trace(m1 @ m2^T)
    cos = jnp.clip((trace - 1.0) * 0.5, -1.0, 1.0)
    theta = jnp.arccos(cos)
    if reduction in ("mean", "batchmean"):
        return jnp.mean(theta)
    return theta


if __name__ == "__main__":
    key = jax.random.PRNGKey(0)
    k1, k2, k3, k4, k5, k6 = jax.random.split(key, 6)

    # Small module-consistent shapes: (B=2, J=4, 3, 3) -> 8 rotation rows.
    ypred = jax.random.normal(k1, (2, 4, 3, 3), dtype=jnp.float32)
    ytrue = jax.random.normal(k2, (2, 4, 3, 3), dtype=jnp.float32)

    out = jax.block_until_ready(geodesic_loss(ypred, ytrue, "batchmean"))
    ref = _geodesic_loss_ref(ypred, ytrue, "batchmean")
    assert jnp.allclose(out, ref, rtol=1e-5, atol=3e-5), (out, ref)

    th = jax.block_until_ready(geodesic_loss(ypred, ytrue, "none"))
    th_ref = _geodesic_loss_ref(ypred, ytrue, "none")
    assert th.shape == th_ref.shape
    assert jnp.allclose(th, th_ref, rtol=1e-4, atol=1e-4)

    # Ragged row count (425 rows -> padded, single tile).
    yp2 = jax.random.normal(k3, (25, 17, 3, 3), dtype=jnp.float32)
    yt2 = jax.random.normal(k4, (25, 17, 3, 3), dtype=jnp.float32)
    out2 = jax.block_until_ready(geodesic_loss(yp2, yt2, "batchmean"))
    ref2 = _geodesic_loss_ref(yp2, yt2, "batchmean")
    assert jnp.allclose(out2, ref2, rtol=1e-5, atol=3e-5), (out2, ref2)
    th2 = jax.block_until_ready(geodesic_loss(yp2, yt2, "none"))
    assert jnp.allclose(th2, _geodesic_loss_ref(yp2, yt2, "none"),
                        rtol=1e-4, atol=1e-4)

    # Multi-tile path with last-tile masking: 3100 rows, small per-tile budget so
    # the grid has 4 steps; last step has both a partial block and padded rows.
    yp3 = jax.random.normal(k5, (31, 100, 3, 3), dtype=jnp.float32)
    yt3 = jax.random.normal(k6, (31, 100, 3, 3), dtype=jnp.float32)
    out3 = jax.block_until_ready(
        geodesic_loss(yp3, yt3, "mean", rows_per_tile=1024))
    ref3 = _geodesic_loss_ref(yp3, yt3, "mean")
    assert jnp.allclose(out3, ref3, rtol=1e-5, atol=5e-5), (out3, ref3)
    th3 = jax.block_until_ready(
        geodesic_loss(yp3, yt3, "none", rows_per_tile=1024))
    assert jnp.allclose(th3, _geodesic_loss_ref(yp3, yt3, "none"),
                        rtol=1e-4, atol=1e-4)

    print("KERNEL_OK")
</pallas_src>

<mosaic_0001>
module attributes {stable_mosaic.version = 11 : i64} {
  func.func @_theta_psum_kernel(%arg0: i32, %arg1: memref<8x1152xf32, #tpu.memory_space<vmem>>, %arg2: memref<8x1152xf32, #tpu.memory_space<vmem>>, %arg3: memref<1152x128xf32, #tpu.memory_space<vmem>>, %arg4: memref<1x1x128xf32, #tpu.memory_space<vmem>>) attributes {dimension_semantics = [#tpu.dimension_semantics<parallel>], iteration_bounds = array<i64: 1>, scalar_prefetch = 0 : i64, scratch_operands = 0 : i64, tpu.core_type = #tpu.core_type<tc>, window_params = [{transform_indices = @transform_0, window_bounds = array<i64: 8, 1152>}, {transform_indices = @transform_1, window_bounds = array<i64: 8, 1152>}, {pipeline_mode = #tpu.pipeline_mode<synchronous>, transform_indices = @transform_2, window_bounds = array<i64: 1152, 128>}, {transform_indices = @transform_3, window_bounds = array<i64: 1, 1, 128>}]} {
    %c0 = arith.constant 0 : index
    %c0_0 = arith.constant 0 : index
    %0 = vector.load %arg1[%c0, %c0_0] : memref<8x1152xf32, #tpu.memory_space<vmem>>, vector<8x1152xf32>
    %c0_1 = arith.constant 0 : index
    %c0_2 = arith.constant 0 : index
    %1 = vector.load %arg2[%c0_1, %c0_2] : memref<8x1152xf32, #tpu.memory_space<vmem>>, vector<8x1152xf32>
    %2 = arith.mulf %0, %1 : vector<8x1152xf32>
    %c0_3 = arith.constant 0 : index
    %c0_4 = arith.constant 0 : index
    %3 = vector.load %arg3[%c0_3, %c0_4] : memref<1152x128xf32, #tpu.memory_space<vmem>>, vector<1152x128xf32>
    %cst = arith.constant dense<0.000000e+00> : vector<8x128xf32>
    %4 = tpu.matmul %2, %3, %cst {dimension_numbers = #tpu.dot_dimension_numbers<[1], [0], [0], [1], [0, 0, 1, 1], [], []>, precision = #tpu.contract_precision<fp32>} : vector<8x1152xf32>, vector<1152x128xf32>, vector<8x128xf32> -> vector<8x128xf32>
    %cst_5 = arith.constant 1.000000e+00 : f32
    %5 = vector.broadcast %cst_5 : f32 to vector<8x128xf32>
    %6 = arith.subf %4, %5 : vector<8x128xf32>
    %cst_6 = arith.constant 5.000000e-01 : f32
    %7 = vector.broadcast %cst_6 : f32 to vector<8x128xf32>
    %8 = arith.mulf %6, %7 : vector<8x128xf32>
    %cst_7 = arith.constant 1.000000e+00 : f32
    %9 = vector.broadcast %cst_7 : f32 to vector<8x128xf32>
    %10 = arith.minimumf %8, %9 : vector<8x128xf32>
    %cst_8 = arith.constant -1.000000e+00 : f32
    %11 = vector.broadcast %cst_8 : f32 to vector<8x128xf32>
    %12 = arith.maximumf %10, %11 : vector<8x128xf32>
    %13 = math.absf %12 : vector<8x128xf32>
    %cst_9 = arith.constant 5.000000e-01 : f32
    %14 = vector.broadcast %cst_9 : f32 to vector<8x128xf32>
    %15 = arith.cmpf ole, %13, %14 : vector<8x128xf32>
    %cst_10 = arith.constant 1.000000e+00 : f32
    %16 = vector.broadcast %cst_10 : f32 to vector<8x128xf32>
    %17 = arith.subf %16, %13 : vector<8x128xf32>
    %cst_11 = arith.constant 5.000000e-01 : f32
    %18 = vector.broadcast %cst_11 : f32 to vector<8x128xf32>
    %19 = arith.mulf %18, %17 : vector<8x128xf32>
    %20 = math.sqrt %19 : vector<8x128xf32>
    %21 = arith.select %15, %13, %20 : vector<8x128xi1>, vector<8x128xf32>
    %22 = arith.mulf %13, %13 : vector<8x128xf32>
    %23 = arith.select %15, %22, %19 : vector<8x128xi1>, vector<8x128xf32>
    %cst_12 = arith.constant 4.216320e-02 : f32
    %24 = vector.broadcast %cst_12 : f32 to vector<8x128xf32>
    %25 = arith.mulf %24, %23 : vector<8x128xf32>
    %cst_13 = arith.constant 0.024181312 : f32
    %26 = vector.broadcast %cst_13 : f32 to vector<8x128xf32>
    %27 = arith.addf %25, %26 : vector<8x128xf32>
    %28 = arith.mulf %27, %23 : vector<8x128xf32>
    %cst_14 = arith.constant 0.0454700254 : f32
    %29 = vector.broadcast %cst_14 : f32 to vector<8x128xf32>
    %30 = arith.addf %28, %29 : vector<8x128xf32>
    %31 = arith.mulf %30, %23 : vector<8x128xf32>
    %cst_15 = arith.constant 0.0749530047 : f32
    %32 = vector.broadcast %cst_15 : f32 to vector<8x128xf32>
    %33 = arith.addf %31, %32 : vector<8x128xf32>
    %34 = arith.mulf %33, %23 : vector<8x128xf32>
    %cst_16 = arith.constant 0.166667521 : f32
    %35 = vector.broadcast %cst_16 : f32 to vector<8x128xf32>
    %36 = arith.addf %34, %35 : vector<8x128xf32>
    %37 = arith.mulf %21, %23 : vector<8x128xf32>
    %38 = arith.mulf %37, %36 : vector<8x128xf32>
    %39 = arith.addf %21, %38 : vector<8x128xf32>
    %cst_17 = arith.constant 1.57079637 : f32
    %40 = vector.broadcast %cst_17 : f32 to vector<8x128xf32>
    %41 = arith.subf %40, %39 : vector<8x128xf32>
    %cst_18 = arith.constant 2.000000e+00 : f32
    %42 = vector.broadcast %cst_18 : f32 to vector<8x128xf32>
    %43 = arith.mulf %42, %39 : vector<8x128xf32>
    %44 = arith.select %15, %41, %43 : vector<8x128xi1>, vector<8x128xf32>
    %cst_19 = arith.constant 0.000000e+00 : f32
    %45 = vector.broadcast %cst_19 : f32 to vector<8x128xf32>
    %46 = arith.cmpf olt, %12, %45 : vector<8x128xf32>
    %cst_20 = arith.constant 3.14159274 : f32
    %47 = vector.broadcast %cst_20 : f32 to vector<8x128xf32>
    %48 = arith.subf %47, %44 : vector<8x128xf32>
    %49 = arith.select %46, %48, %44 : vector<8x128xi1>, vector<8x128xf32>
    %c0_i32 = arith.constant 0 : i32
    %50 = arith.cmpi ne, %arg0, %c0_i32 : i32
    %51 = arith.extui %50 : i1 to i32
    %c0_i32_21 = arith.constant 0 : i32
    %52 = arith.cmpi ne, %51, %c0_i32_21 : i32
    scf.if %52 {
      %cst_24 = arith.constant dense<0.000000e+00> : vector<128xf32>
      %56 = vector.multi_reduction <add>, %49, %cst_24 [0] : vector<8x128xf32> to vector<128xf32>
      %57 = vector.shape_cast %56 : vector<128xf32> to vector<1x128xf32>
      %58 = vector.shape_cast %57 : vector<1x128xf32> to vector<1x1x128xf32>
      %c0_25 = arith.constant 0 : index
      %c0_26 = arith.constant 0 : index
      %c0_27 = arith.constant 0 : index
      %59 = vector.load %arg4[%c0_25, %c0_26, %c0_27] : memref<1x1x128xf32, #tpu.memory_space<vmem>>, vector<1x1x128xf32>
      tpu.vector_store %arg4[%c0_25, %c0_26, %c0_27], %58 {strides = array<i32>} : memref<1x1x128xf32, #tpu.memory_space<vmem>>, vector<1x1x128xf32>,
    } else {
    }
    %c0_i32_22 = arith.constant 0 : i32
    %53 = arith.cmpi eq, %arg0, %c0_i32_22 : i32
    %54 = arith.extui %53 : i1 to i32
    %c0_i32_23 = arith.constant 0 : i32
    %55 = arith.cmpi ne, %54, %c0_i32_23 : i32
    scf.if %55 {
      %56 = tpu.iota {dimensions = array<i32: 0>} : vector<8x128xi32>
      %57 = tpu.iota {dimensions = array<i32: 1>} : vector<8x128xi32>
      %c8_i32 = arith.constant 8 : i32
      %58 = arith.muli %arg0, %c8_i32 : i32
      %59 = vector.broadcast %58 : i32 to vector<8x128xi32>
      %60 = arith.addi %59, %56 : vector<8x128xi32>
      %c128_i32 = arith.constant 128 : i32
      %61 = vector.broadcast %c128_i32 : i32 to vector<8x128xi32>
      %62 = arith.muli %60, %61 : vector<8x128xi32>
      %63 = arith.addi %62, %57 : vector<8x128xi32>
      %c8_i32_24 = arith.constant 8 : i32
      %64 = vector.broadcast %c8_i32_24 : i32 to vector<8x128xi32>
      %65 = arith.cmpi slt, %63, %64 : vector<8x128xi32>
      %cst_25 = arith.constant 0.000000e+00 : f32
      %66 = vector.broadcast %cst_25 : f32 to vector<8x128xf32>
      %67 = arith.select %65, %49, %66 : vector<8x128xi1>, vector<8x128xf32>
      %cst_26 = arith.constant dense<0.000000e+00> : vector<128xf32>
      %68 = vector.multi_reduction <add>, %67, %cst_26 [0] : vector<8x128xf32> to vector<128xf32>
      %69 = vector.shape_cast %68 : vector<128xf32> to vector<1x128xf32>
      %70 = vector.shape_cast %69 : vector<1x128xf32> to vector<1x1x128xf32>
      %c0_27 = arith.constant 0 : index
      %c0_28 = arith.constant 0 : index
      %c0_29 = arith.constant 0 : index
      %71 = vector.load %arg4[%c0_27, %c0_28, %c0_29] : memref<1x1x128xf32, #tpu.memory_space<vmem>>, vector<1x1x128xf32>
      tpu.vector_store %arg4[%c0_27, %c0_28, %c0_29], %70 {strides = array<i32>} : memref<1x1x128xf32, #tpu.memory_space<vmem>>, vector<1x1x128xf32>,
    } else {
    }
    return
  }
  func.func @transform_0(%arg0: i32) -> (i32, i32) {
    %c0_i32 = arith.constant 0 : i32
    %c0_i32_0 = arith.constant 0 : i32
    return %arg0, %c0_i32 : i32, i32
  }
  func.func @transform_1(%arg0: i32) -> (i32, i32) {
    %c0_i32 = arith.constant 0 : i32
    %c0_i32_0 = arith.constant 0 : i32
    return %arg0, %c0_i32 : i32, i32
  }
  func.func @transform_2(%arg0: i32) -> (i32, i32) {
    %c0_i32 = arith.constant 0 : i32
    %c0_i32_0 = arith.constant 0 : i32
    %c0_i32_1 = arith.constant 0 : i32
    return %c0_i32, %c0_i32_0 : i32, i32
  }
  func.func @transform_3(%arg0: i32) -> (i32, i32, i32) {
    %c0_i32 = arith.constant 0 : i32
    %c0_i32_0 = arith.constant 0 : i32
    %c0_i32_1 = arith.constant 0 : i32
    return %arg0, %c0_i32, %c0_i32_0 : i32, i32, i32
  }
}

</mosaic_0001>

<bundles_post_ra>
// kernel: tpu_custom_call.1
= control target key start
LH: loop header
LB: loop body
LE: loop exit
PB: predicated region body
PF: predicated region fallthrough
CT: control target
= control target key end

     0   :  { %8 = vsyncpa [#allocation3], 0  ;;  %s5829_s0 = inlined_call_operand.hbm [shape: f32[8,1152], index: 0, kind: input, shape index: {}]   ;;  %s5830_s1 = inlined_call_operand.hbm [shape: f32[8,1152], index: 1, kind: input, shape index: {}]   ;;  %s5831_s2 = inlined_call_operand.hbm [shape: f32[1152,128], index: 2, kind: input, shape index: {}]   ;;  %s5832_s3 = inlined_call_operand.hbm [shape: f32[1,1,128], index: 3, kind: output, shape index: {}]  }
   0x1   :  { %9 = vsyncpa [#allocation6], 0  ;;  %s27_s14 = sshll.u32 %s5830_s1, 4  ;;  %s28_s14 = int_to_ptr.hbm [resolvable:$true] %s27_s14 }
   0x2   :  { %10 = vsyncpa [#allocation4], 0  ;;  %s3501_s15 = smov [#allocation5]   ;;  %s16_s19 = sshll.u32 %s5829_s0, 4  ;;  %s17_s19 = int_to_ptr.hbm [resolvable:$true] %s16_s19 }
   0x3   :  { %s29_s16 = sshll.u32 %s3501_s15, 4  ;;  %s3502_s20 = smov [#allocation2]   ;;  %s30_s16 = int_to_ptr.vmem [resolvable:$true] %s29_s16 }
   0x4   :  { %32 = dma.hbm_to_vmem [thread:$0]  %s28_s14, 1152, %s30_s16, [#allocation6]  }
   0x5   :  { %s18_s21 = sshll.u32 %s3502_s20, 4  ;;  %s37_s24 = sshll.u32 %s5831_s2, 4  ;;  %s19_s21 = int_to_ptr.vmem [resolvable:$true] %s18_s21  ;;  %s38_s24 = int_to_ptr.hbm [resolvable:$true] %s37_s24 }
   0x6   :  { %21 = dma.hbm_to_vmem [thread:$0]  %s17_s19, 1152, %s19_s21, [#allocation3]  }
   0x7   :  { %s3503_s1 = smov [#allocation7]   ;;  %s3504_s26 = smov 128  }
   0x8   :  { %s39_s25 = sshll.u32 %s3503_s1, 4  ;;  %s3505_s27 = smov 8   ;;  %s40_s25 = int_to_ptr.vmem [resolvable:$true] %s39_s25 }
   0x9   :  { %45 = dma.hbm_to_vmem [thread:$0]  %s38_s24, 18432, %s40_s25, [#allocation6], %s3504_s26, %s3504_s26, %s3505_s27  }
   0xa   :  { %3495 = dma.done.wait [#allocation3], 1152  }
   0xb   :  { %3496 = vsyncadd [#allocation3], 4294966144 }
   0xc   :  { %3497 = dma.done.wait [#allocation6], 19584  }
   0xd   :  { %3498 = vsyncadd [#allocation6], 4294947712  ;;  %v100_v0 = vld [vmem:[#allocation7 + $0x78] sm:$0xff]  ;;  %v99_v1 = vld [vmem:[#allocation7 + $0x70] sm:$0xff]  ;;  %s3506_s0 = smov [#allocation8]   ;;  %s3378_s30 = sshll.u32 %s5832_s3, 4  ;;  %s3379_s30 = int_to_ptr.hbm [resolvable:$true] %s3378_s30 }
   0xe   :  { %v98_v2 = vld [vmem:[#allocation7 + $0x68] sm:$0xff]  ;;  %v3536_v3 = vand.u32 4294901760, %v100_v0  ;;  %v3538_v4 = vand.u32 4294901760, %v99_v1  ;;  %v97_v6 = vld [vmem:[#allocation7 + $0x60] sm:$0xff]  ;;  %v96_v7 = vld [vmem:[#allocation7 + $0x58] sm:$0xff]  ;;  %s3376_s2 = sshll.u32 %s3506_s0, 4  ;;  %s3377_s2 = int_to_ptr.vmem [resolvable:$true] %s3376_s2 }
   0xf   :  { %v3540_v5 = vand.u32 4294901760, %v98_v2  ;;  %v95_v8 = vld [vmem:[#allocation7 + $0x50] sm:$0xff]  ;;  %v3542_v9 = vand.u32 4294901760, %v97_v6  ;;  %v3544_v10 = vand.u32 4294901760, %v96_v7  ;;  %v94_v12 = vld [vmem:[#allocation7 + $0x48] sm:$0xff]  ;;  %v93_v13 = vld [vmem:[#allocation7 + $0x40] sm:$0xff] }
  0x10   :  { %v3546_v11 = vand.u32 4294901760, %v95_v8  ;;  %230 = vmatpush.msra.mxu0 %v3536_v3  ;;  %v3550_v14 = vsub.f32 %v100_v0, %v3536_v3  ;;  %v3553_v15 = vsub.f32 %v99_v1, %v3538_v4  ;;  %426 = vmatpush.msra.mxu3 %v3536_v3  ;;  %v3559_v17 = vand.u32 4294901760, %v94_v12  ;;  %v92_v18 = vld [vmem:[#allocation7 + $0x38] sm:$0xff]  ;;  %v91_v26 = vld [vmem:[#allocation7 + $0x30] sm:$0xff]  ;;  %v90_v34 = vld [vmem:[#allocation7 + $0x28] sm:$0xff] }
  0x11   :  { %v3557_v16 = vsub.f32 %v98_v2, %v3540_v5  ;;  %v3562_v19 = vsub.f32 %v97_v6, %v3542_v9  ;;  %v3565_v20 = vsub.f32 %v96_v7, %v3544_v10  ;;  %v3567_v21 = vand.u32 4294901760, %v93_v13  ;;  %v89_v42 = vld [vmem:[#allocation7 + $0x20] sm:$0xff]  ;;  %v88_v48 = vld [vmem:[#allocation7 + $0x18] sm:$0xff]  ;;  %v87_v54 = vld [vmem:[#allocation7 + $0x10] sm:$0xff] }
  0x12   :  { %232 = vmatpush.msra.mxu0 %v3538_v4  ;;  %373 = vmatpush.msra.mxu2 %v3550_v14  ;;  %v272_v22 = vand.u32 4294901760, %v3550_v14  ;;  %v5847_v23 = vand.u32 4294901760, %v3553_v15  ;;  %v3575_v25 = vsub.f32 %v95_v8, %v3546_v11  ;;  %v3579_v28 = vand.u32 4294901760, %v92_v18  ;;  %v116_v59 = vld [vmem:[#allocation7 + $0xf8] sm:$0xff]  ;;  %v86_v61 = vld [vmem:[#allocation7 + $0x8] sm:$0xff]  ;;  %v115_v2 = vld [vmem:[#allocation7 + $0xf0] sm:$0xff] }
  0x13   :  { %v5846_v24 = vand.u32 4294901760, %v3557_v16  ;;  %428 = vmatpush.msra.mxu3 %v3538_v4  ;;  %v5845_v27 = vand.u32 4294901760, %v3562_v19  ;;  %v3582_v29 = vsub.f32 %v94_v12, %v3559_v17  ;;  %v5842_v33 = vand.u32 4294901760, %v3565_v20  ;;  %v85_v7 = vld [vmem:[#allocation7] sm:$0xff] }
  0x14   :  { %234 = vmatpush.msra.mxu0 %v3540_v5  ;;  %376 = vmatpush.msra.mxu2 %v3553_v15  ;;  %v273_v30 = vsub.f32 %v3550_v14, %v272_v22  ;;  %v279_v31 = vsub.f32 %v3553_v15, %v5847_v23  ;;  %v3597_v35 = vand.u32 4294901760, %v91_v26  ;;  %v3600_v36 = vsub.f32 %v93_v13, %v3567_v21  ;;  %v107_v23 = vld [vmem:[#allocation7 + $0xb0] sm:$0xff] }
  0x15   :  { %v285_v32 = vsub.f32 %v3557_v16, %v5846_v24  ;;  %430 = vmatpush.msra.mxu3 %v3540_v5  ;;  %v291_v39 = vsub.f32 %v3562_v19, %v5845_v27  ;;  %v5841_v40 = vand.u32 4294901760, %v3575_v25  ;;  %v3609_v41 = vand.u32 4294901760, %v90_v34 }
  0x16   :  { %236 = vmatpush.msra.mxu0 %v3542_v9  ;;  %v274_v37 = vand.u32 4294901760, %v273_v30  ;;  %379 = vmatpush.msra.mxu2 %v3557_v16  ;;  %v280_v38 = vand.u32 4294901760, %v279_v31  ;;  %v297_v44 = vsub.f32 %v3565_v20, %v5842_v33  ;;  %v5839_v45 = vand.u32 4294901760, %v3582_v29 }
  0x17   :  { %432 = vmatpush.msra.mxu3 %v3542_v9  ;;  %v286_v43 = vand.u32 4294901760, %v285_v32  ;;  %v3617_v46 = vsub.f32 %v92_v18, %v3579_v28  ;;  %v5838_v47 = vand.u32 4294901760, %v3600_v36  ;;  %v292_v49 = vand.u32 4294901760, %v291_v39  ;;  %v114_v32 = vld [vmem:[#allocation7 + $0xe8] sm:$0xff] }
  0x18   :  { %238 = vmatpush.msra.mxu0 %v3544_v10  ;;  %275 = vmatpush.msra.mxu1 %v274_v37  ;;  %v303_v50 = vsub.f32 %v3575_v25, %v5841_v40  ;;  %v3626_v51 = vand.u32 4294901760, %v89_v42  ;;  %v3629_v52 = vsub.f32 %v91_v26, %v3597_v35  ;;  %v3634_v53 = vsub.f32 %v90_v34, %v3609_v41 }
  0x19   :  { %382 = vmatpush.msra.mxu2 %v3562_v19  ;;  %434 = vmatpush.msra.mxu3 %v3544_v10  ;;  %v298_v55 = vand.u32 4294901760, %v297_v44  ;;  %v309_v56 = vsub.f32 %v3582_v29, %v5839_v45  ;;  %v3640_v57 = vand.u32 4294901760, %v88_v48  ;;  %v5837_v58 = vand.u32 4294901760, %v3617_v46 }
  0x1a   :  { %240 = vmatpush.msra.mxu0 %v3546_v11  ;;  %281 = vmatpush.msra.mxu1 %v280_v38  ;;  %v315_v60 = vsub.f32 %v3600_v36, %v5838_v47  ;;  %v304_v62 = vand.u32 4294901760, %v303_v50  ;;  %v3649_v63 = vand.u32 4294901760, %v87_v54  ;;  %v5835_v0 = vand.u32 4294901760, %v3629_v52 }
  0x1b   :  { %385 = vmatpush.msra.mxu2 %v3565_v20  ;;  %436 = vmatpush.msra.mxu3 %v3546_v11  ;;  %v3653_v1 = vsub.f32 %v89_v42, %v3626_v51  ;;  %v5833_v6 = vand.u32 4294901760, %v3634_v53  ;;  %v3658_v8 = vand.u32 4294901760, %v116_v59  ;;  %v310_v12 = vand.u32 4294901760, %v309_v56  ;;  %v113_v42 = vld [vmem:[#allocation7 + $0xe0] sm:$0xff] }
  0x1c   :  { %242 = vmatpush.msra.mxu0 %v3559_v17  ;;  %287 = vmatpush.msra.mxu1 %v286_v43  ;;  %v321_v13 = vsub.f32 %v3617_v46, %v5837_v58  ;;  %v3664_v18 = vand.u32 4294901760, %v86_v61  ;;  %v3667_v26 = vsub.f32 %v88_v48, %v3640_v57  ;;  %v316_v30 = vand.u32 4294901760, %v315_v60 }
  0x1d   :  { %388 = vmatpush.msra.mxu2 %v3575_v25  ;;  %438 = vmatpush.msra.mxu3 %v3559_v17  ;;  %5929 = vst [vmem:[#allocation12_spill] sm:$0xff] %v3658_v8  ;;  %v3671_v31 = vand.u32 4294901760, %v115_v2  ;;  %v327_v34 = vsub.f32 %v3629_v52, %v5835_v0  ;;  %v3677_v37 = vand.u32 4294901760, %v85_v7  ;;  %v5834_v38 = vand.u32 4294901760, %v3653_v1 }
  0x1e   :  { %244 = vmatpush.msra.mxu0 %v3567_v21  ;;  %293 = vmatpush.msra.mxu1 %v292_v49  ;;  %v3681_v39 = vsub.f32 %v87_v54, %v3649_v63  ;;  %v333_v43 = vsub.f32 %v3634_v53, %v5833_v6  ;;  %v3689_v44 = vsub.f32 %v116_v59, %v3658_v8  ;;  %v322_v48 = vand.u32 4294901760, %v321_v13  ;;  %v112_v59 = vld [vmem:[#allocation7 + $0xd8] sm:$0xff]  ;;  %v111_v6 = vld [vmem:[#allocation7 + $0xd0] sm:$0xff] }
  0x1f   :  { %391 = vmatpush.msra.mxu2 %v3582_v29  ;;  %440 = vmatpush.msra.mxu3 %v3567_v21  ;;  %5930 = vst [vmem:[#allocation13_spill] sm:$0xff] %v3671_v31  ;;  %v5836_v49 = vand.u32 4294901760, %v3667_v26  ;;  %v3694_v50 = vsub.f32 %v86_v61, %v3664_v18  ;;  %v3696_v54 = vand.u32 4294901760, %v114_v32  ;;  %v3703_v56 = vand.u32 4294901760, %v113_v42 }
  0x20   :  { %246 = vmatpush.msra.mxu0 %v3579_v28  ;;  %299 = vmatpush.msra.mxu1 %v298_v55  ;;  %5931 = vst [vmem:[#allocation14_spill] sm:$0xff] %v3677_v37  ;;  %v3701_v55 = vsub.f32 %v115_v2, %v3671_v31  ;;  %v328_v60 = vand.u32 4294901760, %v327_v34  ;;  %v339_v61 = vsub.f32 %v3653_v1, %v5834_v38  ;;  %v334_v2 = vand.u32 4294901760, %v333_v43  ;;  %v110_v43 = vld [vmem:[#allocation7 + $0xc8] sm:$0xff] }
  0x21   :  { %394 = vmatpush.msra.mxu2 %v3600_v36  ;;  %442 = vmatpush.msra.mxu3 %v3579_v28  ;;  %v5843_v13 = vand.u32 4294901760, %v3689_v44  ;;  %v5844_v34 = vand.u32 4294901760, %v3694_v50  ;;  %v3724_v38 = vand.u32 4294901760, %v112_v59  ;;  %v3737_v47 = vand.u32 4294901760, %v111_v6 }
  0x22   :  { %248 = vmatpush.msra.mxu0 %v3597_v35  ;;  %305 = vmatpush.msra.mxu1 %v304_v62  ;;  %v5840_v62 = vand.u32 4294901760, %v3681_v39  ;;  %v5848_v0 = vand.u32 4294901760, %v3701_v55  ;;  %v3744_v45 = vand.u32 4294901760, %v110_v43  ;;  %v5933_v14 = vand.u32 4294901760, %v3553_v15 }
  0x23   :  { %397 = vmatpush.msra.mxu2 %v3617_v46  ;;  %444 = vmatpush.msra.mxu3 %v3597_v35  ;;  %v3752_v33 = vsub.f32 %v112_v59, %v3724_v38  ;;  %v3765_v27 = vsub.f32 %v111_v6, %v3737_v47  ;;  %v5935_v15 = vand.u32 4294901760, %v3557_v16  ;;  %v5937_v16 = vand.u32 4294901760, %v3562_v19 }
  0x24   :  { %250 = vmatpush.msra.mxu0 %v3609_v41  ;;  %311 = vmatpush.msra.mxu1 %v310_v12  ;;  %v3711_v12 = vsub.f32 %v85_v7, %v3677_v37  ;;  %v3722_v7 = vsub.f32 %v114_v32, %v3696_v54  ;;  %v351_v32 = vsub.f32 %v3681_v39, %v5840_v62  ;;  %v5939_v19 = vand.u32 4294901760, %v3565_v20 }
  0x25   :  { %400 = vmatpush.msra.mxu2 %v3629_v52  ;;  %446 = vmatpush.msra.mxu3 %v3609_v41  ;;  %v357_v62 = vsub.f32 %v3694_v50, %v5844_v34  ;;  %v5941_v20 = vand.u32 4294901760, %v3575_v25  ;;  %v5942_v25 = vand.u32 4294901760, %v3582_v29  ;;  %v5943_v29 = vand.u32 4294901760, %v3600_v36 }
  0x26   :  { %252 = vmatpush.msra.mxu0 %v3626_v51  ;;  %317 = vmatpush.msra.mxu1 %v316_v30  ;;  %v345_v30 = vsub.f32 %v3667_v26, %v5836_v49  ;;  %v340_v49 = vand.u32 4294901760, %v339_v61  ;;  %v5849_v58 = vand.u32 4294901760, %v3711_v12  ;;  %v5850_v40 = vand.u32 4294901760, %v3722_v7 }
  0x27   :  { %403 = vmatpush.msra.mxu2 %v3634_v53  ;;  %448 = vmatpush.msra.mxu3 %v3626_v51  ;;  %v352_v34 = vand.u32 4294901760, %v351_v32  ;;  %v5944_v36 = vand.u32 4294901760, %v3617_v46  ;;  %v5945_v46 = vand.u32 4294901760, %v3629_v52  ;;  %v5946_v52 = vand.u32 4294901760, %v3634_v53 }
  0x28   :  { %254 = vmatpush.msra.mxu0 %v3640_v57  ;;  %323 = vmatpush.msra.mxu1 %v322_v48  ;;  %v3730_v48 = vsub.f32 %v113_v42, %v3703_v56  ;;  %v614_v42 = vsub.f32 %v3689_v44, %v5843_v13  ;;  %v346_v61 = vand.u32 4294901760, %v345_v30  ;;  %v620_v13 = vsub.f32 %v3701_v55, %v5848_v0  ;;  %v108_v30 = vld [vmem:[#allocation7 + $0xb8] sm:$0xff] }
  0x29   :  { %406 = vmatpush.msra.mxu2 %v3653_v1  ;;  %450 = vmatpush.msra.mxu3 %v3640_v57  ;;  %v363_v59 = vsub.f32 %v3711_v12, %v5849_v58  ;;  %v626_v6 = vsub.f32 %v3722_v7, %v5850_v40  ;;  %v3780_v58 = vand.u32 4294901760, %v108_v30 }
  0x2a   :  { %5932 = vst [vmem:[#allocation15_spill] sm:$0xff] %v3730_v48  ;;  %256 = vmatpush.msra.mxu0 %v3649_v63  ;;  %329 = vmatpush.msra.mxu1 %v328_v60  ;;  %v109_v60 = vld [vmem:[#allocation7 + $0xc0] sm:$0xff]  ;;  %v615_v0 = vand.u32 4294901760, %v614_v42  ;;  %v3788_v42 = vand.u32 4294901760, %v107_v23 }
  0x2b   :  { %409 = vmatpush.msra.mxu2 %v3667_v26  ;;  %452 = vmatpush.msra.mxu3 %v3649_v63  ;;  %v3767_v24 = vand.u32 4294901760, %v109_v60  ;;  %v364_v40 = vand.u32 4294901760, %v363_v59  ;;  %v5936_v59 = vand.u32 4294901760, %v3752_v33 }
  0x2c   :  { %258 = vmatpush.msra.mxu0 %v3664_v18  ;;  %335 = vmatpush.msra.mxu1 %v334_v2  ;;  %v3773_v2 = vsub.f32 %v110_v43, %v3744_v45  ;;  %v5934_v43 = vand.u32 4294901760, %v3730_v48 }
  0x2d   :  { %412 = vmatpush.msra.mxu2 %v3681_v39  ;;  %454 = vmatpush.msra.mxu3 %v3664_v18  ;;  %v638_v32 = vsub.f32 %v3752_v33, %v5936_v59 }
  0x2e   :  { %260 = vmatpush.msra.mxu0 %v3677_v37  ;;  %341 = vmatpush.msra.mxu1 %v340_v49  ;;  %v358_v49 = vand.u32 4294901760, %v357_v62  ;;  %v632_v62 = vsub.f32 %v3730_v48, %v5934_v43  ;;  %v58_v43 = vld [vmem:[#allocation2] sm:$0xff]  ;;  %v67_v48 = vld [vmem:[#allocation5] sm:$0xff] }
  0x2f   :  { %415 = vmatpush.msra.mxu2 %v3694_v50  ;;  %456 = vmatpush.msra.mxu3 %v3677_v37  ;;  %v3793_v37 = vsub.f32 %v109_v60, %v3767_v24  ;;  %v3803_v60 = vsub.f32 %v108_v30, %v3780_v58 }
  0x30   :  { %467 = vmatpush.msrb.mxu0 %v272_v22  ;;  %347 = vmatpush.msra.mxu1 %v346_v61  ;;  %v621_v22 = vand.u32 4294901760, %v620_v13  ;;  %v106_v61 = vld [vmem:[#allocation7 + $0xa8] sm:$0xff] }
  0x31   :  { %418 = vmatpush.msra.mxu2 %v3711_v12  ;;  %616 = vmatpush.msrb.mxu3 %v615_v0  ;;  %v633_v0 = vand.u32 4294901760, %v632_v62  ;;  %v655_v30 = vand.u32 4294901760, %v3793_v37  ;;  %v661_v62 = vand.u32 4294901760, %v3803_v60 }
  0x32   :  { %471 = vmatpush.msrb.mxu0 %v5933_v14  ;;  %353 = vmatpush.msra.mxu1 %v352_v34  ;;  %v105_v14 = vld [vmem:[#allocation7 + $0xa0] sm:$0xff]  ;;  %v627_v34 = vand.u32 4294901760, %v626_v6  ;;  %v5938_v6 = vand.u32 4294901760, %v3765_v27 }
  0x33   :  { %571 = vmatpush.msrb.mxu2 %v3658_v8  ;;  %v3805_v8 = vand.u32 4294901760, %v106_v61  ;;  %622 = vmatpush.msrb.mxu3 %v621_v22  ;;  %v3817_v13 = vand.u32 4294901760, %v105_v14  ;;  %v639_v22 = vand.u32 4294901760, %v638_v32  ;;  %v656_v32 = vsub.f32 %v3793_v37, %v655_v30 }
  0x34   :  { %475 = vmatpush.msrb.mxu0 %v5935_v15  ;;  %359 = vmatpush.msra.mxu1 %v358_v49  ;;  %v3810_v15 = vsub.f32 %v107_v23, %v3788_v42  ;;  %v104_v49 = vld [vmem:[#allocation7 + $0x98] sm:$0xff]  ;;  %v644_v59 = vsub.f32 %v3765_v27, %v5938_v6  ;;  %v5940_v23 = vand.u32 4294901760, %v3773_v2 }
  0x35   :  { %573 = vmatpush.msrb.mxu2 %v3671_v31  ;;  %v76_v31 = vmul.f32 %v67_v48, %v58_v43  ;;  %628 = vmatpush.msrb.mxu3 %v627_v34  ;;  %v3830_v6 = vand.u32 4294901760, %v104_v49  ;;  %v103_v48 = vld [vmem:[#allocation7 + $0x90] sm:$0xff] }
  0x36   :  { %479 = vmatpush.msrb.mxu0 %v5937_v16  ;;  %365 = vmatpush.msra.mxu1 %v364_v40  ;;  %v650_v40 = vsub.f32 %v3773_v2, %v5940_v23  ;;  %v3828_v16 = vsub.f32 %v106_v61, %v3805_v8  ;;  %v645_v43 = vand.u32 4294901760, %v644_v59  ;;  %v3841_v61 = vsub.f32 %v105_v14, %v3817_v13 }
  0x37   :  { %575 = vmatpush.msrb.mxu2 %v3696_v54  ;;  %634 = vmatpush.msrb.mxu3 %v633_v0  ;;  %v3843_v34 = vand.u32 4294901760, %v76_v31  ;;  %v662_v0 = vsub.f32 %v3803_v60, %v661_v62  ;;  %v3853_v14 = vand.u32 4294901760, %v103_v48  ;;  %v3856_v23 = vsub.f32 %v104_v49, %v3830_v6 }
  0x38   :  { %483 = vmatpush.msrb.mxu0 %v5939_v19  ;;  %534 = vmatpush.msrb.mxu1 %v3536_v3  ;;  %v5858_v3 = vand.u32 4294901760, %v3810_v15  ;;  %v102_v19 = vld [vmem:[#allocation7 + $0x88] sm:$0xff]  ;;  %v5859_v59 = vand.u32 4294901760, %v3828_v16 }
  0x39   :  { %577 = vmatpush.msrb.mxu2 %v3703_v56  ;;  %640 = vmatpush.msrb.mxu3 %v639_v22  ;;  %v679_v22 = vand.u32 4294901760, %v3841_v61  ;;  %v3869_v49 = vand.u32 4294901760, %v102_v19 }
  0x3a   :  { %487 = vmatpush.msrb.mxu0 %v5941_v20  ;;  %536 = vmatpush.msrb.mxu1 %v3538_v4  ;;  %v651_v4 = vand.u32 4294901760, %v650_v40  ;;  %v657_v40 = vand.u32 4294901760, %v656_v32  ;;  %v3867_v20 = vsub.f32 %v76_v31, %v3843_v34  ;;  %v674_v32 = vsub.f32 %v3828_v16, %v5859_v59 }
  0x3b   :  { %579 = vmatpush.msrb.mxu2 %v3724_v38  ;;  %646 = vmatpush.msrb.mxu3 %v645_v43  ;;  %v663_v43 = vand.u32 4294901760, %v662_v0  ;;  %v685_v31 = vand.u32 4294901760, %v3856_v23 }
  0x3c   :  { %491 = vmatpush.msrb.mxu0 %v5942_v25  ;;  %538 = vmatpush.msrb.mxu1 %v3540_v5  ;;  %v668_v5 = vsub.f32 %v3810_v15, %v5858_v3  ;;  %v101_v25 = vld [vmem:[#allocation7 + $0x80] sm:$0xff]  ;;  %v3880_v3 = vsub.f32 %v103_v48, %v3853_v14  ;;  %v263_v0 = vand.u32 4294901760, %v3867_v20  ;;  %v3893_v48 = vsub.f32 %v102_v19, %v3869_v49 }
  0x3d   :  { %581 = vmatpush.msrb.mxu2 %v3737_v47  ;;  %652 = vmatpush.msrb.mxu3 %v651_v4  ;;  %v680_v4 = vsub.f32 %v3841_v61, %v679_v22 }
  0x3e   :  { %495 = vmatpush.msrb.mxu0 %v5943_v29  ;;  %540 = vmatpush.msrb.mxu1 %v3542_v9  ;;  %v59_v9 = vld [vmem:[#allocation2 + $0x8] sm:$0xff]  ;;  %v68_v29 = vld [vmem:[#allocation5 + $0x8] sm:$0xff]  ;;  %v264_v19 = vsub.f32 %v3867_v20, %v263_v0 }
  0x3f   :  { %583 = vmatpush.msrb.mxu2 %v3744_v45  ;;  %658 = vmatpush.msrb.mxu3 %v657_v40  ;;  %v77_v59 = vmul.f32 %v68_v29, %v59_v9  ;;  %v691_v40 = vand.u32 4294901760, %v3880_v3  ;;  %v697_v9 = vand.u32 4294901760, %v3893_v48 }
  0x40   :  { %499 = vmatpush.msrb.mxu0 %v5944_v36  ;;  %542 = vmatpush.msrb.mxu1 %v3544_v10  ;;  %v669_v10 = vand.u32 4294901760, %v668_v5  ;;  %v3885_v36 = vand.u32 4294901760, %v101_v25  ;;  %v686_v5 = vsub.f32 %v3856_v23, %v685_v31 }
  0x41   :  { %585 = vmatpush.msrb.mxu2 %v3767_v24  ;;  %664 = vmatpush.msrb.mxu3 %v663_v43  ;;  %v3912_v29 = vand.u32 4294901760, %v77_v59  ;;  %v5948_v43 = vand.u32 4294901760, %v3667_v26  ;;  %v265_v26 = vand.u32 4294901760, %v264_v19 }
  0x42   :  { %503 = vmatpush.msrb.mxu0 %v5945_v46  ;;  %544 = vmatpush.msrb.mxu1 %v3546_v11  ;;  %v675_v11 = vand.u32 4294901760, %v674_v32  ;;  %v5947_v46 = vand.u32 4294901760, %v3653_v1  ;;  %v3907_v53 = vsub.f32 %v101_v25, %v3885_v36  ;;  %v692_v1 = vsub.f32 %v3880_v3, %v691_v40 }
  0x43   :  { %587 = vmatpush.msrb.mxu2 %v3780_v58  ;;  %670 = vmatpush.msrb.mxu3 %v669_v10  ;;  %v5949_v25 = vand.u32 4294901760, %v3681_v39  ;;  %v3930_v10 = vsub.f32 %v77_v59, %v3912_v29  ;;  %v5951_v39 = vand.u32 4294901760, %v3711_v12  ;;  %v5954_v12 = vand.u32 4294901760, %v3701_v55 }
  0x44   :  { %507 = vmatpush.msrb.mxu0 %v5946_v52  ;;  %546 = vmatpush.msrb.mxu1 %v3559_v17  ;;  %v681_v17 = vand.u32 4294901760, %v680_v4  ;;  %v703_v32 = vand.u32 4294901760, %v3907_v53  ;;  %v5950_v4 = vand.u32 4294901760, %v3694_v50 }
  0x45   :  { %589 = vmatpush.msrb.mxu2 %v3788_v42  ;;  %676 = vmatpush.msrb.mxu3 %v675_v11  ;;  %v604_v59 = vand.u32 4294901760, %v3930_v10  ;;  %v5955_v11 = vld [vmem:[#allocation12_spill] sm:$0xff] }
  0x46   :  { %511 = vmatpush.msrb.mxu0 %v5947_v46  ;;  %548 = vmatpush.msrb.mxu1 %v3567_v21  ;;  %v687_v21 = vand.u32 4294901760, %v686_v5  ;;  %v704_v52 = vsub.f32 %v3907_v53, %v703_v32  ;;  %v5956_v5 = vld [vmem:[#allocation14_spill] sm:$0xff] }
  0x47   :  { %591 = vmatpush.msrb.mxu2 %v3805_v8  ;;  %682 = vmatpush.msrb.mxu3 %v681_v17 }
  0x48   :  { %515 = vmatpush.msrb.mxu0 %v5948_v43  ;;  %550 = vmatpush.msrb.mxu1 %v3579_v28  ;;  %v698_v28 = vsub.f32 %v3893_v48, %v697_v9 }
  0x49   :  { %593 = vmatpush.msrb.mxu2 %v3817_v13  ;;  %688 = vmatpush.msrb.mxu3 %v687_v21 }
  0x4a   :  { %519 = vmatpush.msrb.mxu0 %v5949_v25  ;;  %552 = vmatpush.msrb.mxu1 %v3597_v35  ;;  %v693_v35 = vand.u32 4294901760, %v692_v1  ;;  %v699_v50 = vand.u32 4294901760, %v698_v28 }
  0x4b   :  { %595 = vmatpush.msrb.mxu2 %v3830_v6  ;;  %266 = vmatmul.f32.vlgmr.msra.gmra.mxu0 %v265_v26  ;;  %v122_v26 = vld [vmem:[#allocation7 + $0x128] sm:$0xff] }
  0x4c   :  { %523 = vmatpush.msrb.mxu0 %v5950_v4  ;;  %554 = vmatpush.msrb.mxu1 %v3609_v41  ;;  %v705_v41 = vand.u32 4294901760, %v704_v52  ;;  %v121_v52 = vld [vmem:[#allocation7 + $0x120] sm:$0xff] }
  0x4d   :  { %597 = vmatpush.msrb.mxu2 %v3853_v14  ;;  %694 = vmatpush.msrb.mxu3 %v693_v35 }
  0x4e   :  { %527 = vmatpush.msrb.mxu0 %v5951_v39  ;;  %556 = vmatpush.msrb.mxu1 %v3626_v51  ;;  %v605_v51 = vsub.f32 %v3930_v10, %v604_v59 }
  0x4f   :  { %599 = vmatpush.msrb.mxu2 %v3869_v49  ;;  %700 = vmatpush.msrb.mxu3 %v699_v50 }
  0x50   :  { %714 = vmatpush.msra.mxu0 %v3689_v44  ;;  %558 = vmatpush.msrb.mxu1 %v3640_v57  ;;  %v5952_v57 = vand.u32 4294901760, %v3689_v44  ;;  %v5957_v44 = vand.u32 4294901760, %v3722_v7 }
  0x51   :  { %421 = vmatmul.f32.vlgmr.msra.gmra.mxu2 %v3867_v20  ;;  %460 = vmatmul.f32.vlgmr.msra.gmra.mxu3 %v263_v0  ;;  %v606_v20 = vand.u32 4294901760, %v605_v51  ;;  %v5961_v0 = vand.u32 4294901760, %v3765_v27  ;;  %v4117_v51 = vand.u32 4294901760, %v122_v26 }
  0x52   :  { %717 = vmatpush.msra.mxu0 %v3701_v55  ;;  %560 = vmatpush.msrb.mxu1 %v3649_v63  ;;  %v5953_v63 = vld [vmem:[#allocation15_spill] sm:$0xff] }
  0x53   :  { %601 = vmatpush.msrb.mxu2 %v3885_v36  ;;  %706 = vmatpush.msrb.mxu3 %v705_v41  ;;  %v5959_v55 = vand.u32 4294901760, %v5953_v63 }
  0x54   :  { %720 = vmatpush.msra.mxu0 %v3722_v7  ;;  %562 = vmatpush.msrb.mxu1 %v3664_v18  ;;  %v5958_v18 = vld [vmem:[#allocation13_spill] sm:$0xff]  ;;  %v5960_v7 = vand.u32 4294901760, %v3752_v33 }
  0x55   :  { %808 = vmatpush.msra.mxu2 %v5952_v57  ;;  %367 = vmatmul.f32.vlgmr.msra.gmra.mxu1 %v3843_v34 }
  0x56   :  { %723 = vmatpush.msra.mxu0 %v5953_v63  ;;  %875 = vmatpush.msra.mxu3 %v5955_v11 }
  0x57   :  { %812 = vmatpush.msra.mxu2 %v5954_v12  ;;  %564 = vmatpush.msrb.mxu1 %v5956_v5 }
  0x58   :  { %726 = vmatpush.msra.mxu0 %v3752_v33  ;;  %877 = vmatpush.msra.mxu3 %v5958_v18  ;;  %v5962_v33 = vand.u32 4294901760, %v3773_v2 }
  0x59   :  { %767 = vmatpush.msra.mxu1 %v5955_v11  ;;  %816 = vmatpush.msra.mxu2 %v5957_v44 }
  0x5a   :  { %607 = vmatmul.f32.vlgmr.msrb.gmra.mxu2 %v606_v20  ;;  %729 = vmatpush.msra.mxu0 %v3765_v27  ;;  %v132_v27 = vld [vmem:[#allocation7 + $0x178] sm:$0xff]  ;;  %v4129_v20 = vand.u32 4294901760, %v121_v52 }
  0x5b   :  { %769 = vmatpush.msra.mxu1 %v5958_v18  ;;  %820 = vmatpush.msra.mxu2 %v5959_v55  ;;  %v119_v18 = vld [vmem:[#allocation7 + $0x110] sm:$0xff] }
  0x5c   :  { %879 = vmatpush.msra.mxu3 %v3696_v54  ;;  %529 = vmatmul.f32.vlgmr.msrb.gmra.mxu0 %v3843_v34 }
  0x5d   :  { %708 = vmatmul.f32.vlgmr.msrb.gmra.mxu3 %v3912_v29  ;;  %732 = vmatpush.msra.mxu0 %v3773_v2 }
  0x5e   :  { %771 = vmatpush.msra.mxu1 %v3696_v54  ;;  %824 = vmatpush.msra.mxu2 %v5960_v7  ;;  %v5964_v54 = vand.u32 4294901760, %v3828_v16 }
  0x5f   :  { %881 = vmatpush.msra.mxu3 %v3703_v56  ;;  %566 = vmatmul.f32.vlgmr.msrb.gmra.mxu1 %v3843_v34  ;;  %v126_v34 = vld [vmem:[#allocation7 + $0x148] sm:$0xff] }
  0x60   :  { %735 = vmatpush.msra.mxu0 %v3793_v37  ;;  %773 = vmatpush.msra.mxu1 %v3703_v56  ;;  %v5963_v37 = vand.u32 4294901760, %v3810_v15 }
  0x61   :  { %828 = vmatpush.msra.mxu2 %v5961_v0  ;;  %883 = vmatpush.msra.mxu3 %v3724_v38 }
  0x62   :  { %738 = vmatpush.msra.mxu0 %v3803_v60  ;;  %775 = vmatpush.msra.mxu1 %v3724_v38  ;;  %v4006_v38 = vand.u32 4294901760, %v132_v27  ;;  %v128_v60 = vld [vmem:[#allocation7 + $0x158] sm:$0xff] }
  0x63   :  { %832 = vmatpush.msra.mxu2 %v5962_v33  ;;  %885 = vmatpush.msra.mxu3 %v3737_v47 }
  0x64   :  { %741 = vmatpush.msra.mxu0 %v3810_v15  ;;  %777 = vmatpush.msra.mxu1 %v3737_v47  ;;  %v131_v47 = vld [vmem:[#allocation7 + $0x170] sm:$0xff] }
  0x65   :  { %836 = vmatpush.msra.mxu2 %v655_v30  ;;  %887 = vmatpush.msra.mxu3 %v3744_v45  ;;  %v4013_v56 = vand.u32 4294901760, %v131_v47  ;;  %v127_v30 = vld [vmem:[#allocation7 + $0x150] sm:$0xff] }
  0x66   :  { %744 = vmatpush.msra.mxu0 %v3828_v16  ;;  %779 = vmatpush.msra.mxu1 %v3744_v45  ;;  %v130_v45 = vld [vmem:[#allocation7 + $0x168] sm:$0xff] }
  0x67   :  { %840 = vmatpush.msra.mxu2 %v661_v62  ;;  %889 = vmatpush.msra.mxu3 %v3767_v24  ;;  %v4020_v2 = vand.u32 4294901760, %v130_v45  ;;  %v4033_v15 = vsub.f32 %v131_v47, %v4013_v56  ;;  %v4037_v62 = vand.u32 4294901760, %v128_v60 }
  0x68   :  { %747 = vmatpush.msra.mxu0 %v3841_v61  ;;  %781 = vmatpush.msra.mxu1 %v3767_v24  ;;  %v129_v24 = vld [vmem:[#allocation7 + $0x160] sm:$0xff]  ;;  %v4048_v61 = vand.u32 4294901760, %v127_v30 }
  0x69   :  { %844 = vmatpush.msra.mxu2 %v5963_v37  ;;  %891 = vmatpush.msra.mxu3 %v3780_v58  ;;  %v4044_v16 = vsub.f32 %v130_v45, %v4020_v2  ;;  %v4155_v45 = vand.u32 4294901760, %v119_v18 }
  0x6a   :  { %750 = vmatpush.msra.mxu0 %v3856_v23  ;;  %783 = vmatpush.msra.mxu1 %v3780_v58  ;;  %v4023_v58 = vsub.f32 %v132_v27, %v4006_v38  ;;  %v4060_v23 = vsub.f32 %v128_v60, %v4037_v62  ;;  %v4147_v27 = vsub.f32 %v122_v26, %v4117_v51  ;;  %v118_v60 = vld [vmem:[#allocation7 + $0x108] sm:$0xff] }
  0x6b   :  { %848 = vmatpush.msra.mxu2 %v5964_v54  ;;  %893 = vmatpush.msra.mxu3 %v3788_v42  ;;  %v4184_v26 = vsub.f32 %v119_v18, %v4155_v45 }
  0x6c   :  { %753 = vmatpush.msra.mxu0 %v3880_v3  ;;  %785 = vmatpush.msra.mxu1 %v3788_v42  ;;  %v4030_v42 = vand.u32 4294901760, %v129_v24  ;;  %v5869_v19 = vand.u32 4294901760, %v4060_v23 }
  0x6d   :  { %852 = vmatpush.msra.mxu2 %v679_v22  ;;  %895 = vmatpush.msra.mxu3 %v3805_v8 }
  0x6e   :  { %756 = vmatpush.msra.mxu0 %v3893_v48  ;;  %787 = vmatpush.msra.mxu1 %v3805_v8  ;;  %v954_v8 = vand.u32 4294901760, %v4023_v58  ;;  %v4055_v3 = vsub.f32 %v129_v24, %v4030_v42  ;;  %v966_v48 = vand.u32 4294901760, %v4044_v16  ;;  %v4159_v24 = vsub.f32 %v121_v52, %v4129_v20 }
  0x6f   :  { %856 = vmatpush.msra.mxu2 %v685_v31  ;;  %897 = vmatpush.msra.mxu3 %v3817_v13  ;;  %v4068_v31 = vand.u32 4294901760, %v126_v34 }
  0x70   :  { %759 = vmatpush.msra.mxu0 %v3907_v53  ;;  %789 = vmatpush.msra.mxu1 %v3817_v13  ;;  %v960_v13 = vand.u32 4294901760, %v4033_v15  ;;  %v955_v22 = vsub.f32 %v4023_v58, %v954_v8  ;;  %v5872_v17 = vand.u32 4294901760, %v4055_v3  ;;  %v967_v21 = vsub.f32 %v4044_v16, %v966_v48 }
  0x71   :  { %860 = vmatpush.msra.mxu2 %v691_v40  ;;  %899 = vmatpush.msra.mxu3 %v3830_v6  ;;  %v124_v40 = vld [vmem:[#allocation7 + $0x138] sm:$0xff]  ;;  %v4095_v25 = vsub.f32 %v126_v34, %v4068_v31 }
  0x72   :  { %762 = vmatmul.f32.vlgmr.msra.gmra.mxu0 %v3930_v10  ;;  %791 = vmatpush.msra.mxu1 %v3830_v6  ;;  %v125_v6 = vld [vmem:[#allocation7 + $0x140] sm:$0xff]  ;;  %v961_v46 = vsub.f32 %v4033_v15, %v960_v13  ;;  %v956_v43 = vand.u32 4294901760, %v955_v22  ;;  %v4092_v1 = vand.u32 4294901760, %v124_v40  ;;  %v973_v4 = vsub.f32 %v4055_v3, %v5872_v17  ;;  %v140_v17 = vld [vmem:[#allocation7 + $0x1b8] sm:$0xff] }
  0x73   :  { %912 = vmatpush.msrb.mxu0 %v4006_v38  ;;  %864 = vmatpush.msra.mxu2 %v697_v9  ;;  %v4081_v53 = vand.u32 4294901760, %v125_v6  ;;  %v123_v9 = vld [vmem:[#allocation7 + $0x130] sm:$0xff]  ;;  %v968_v41 = vand.u32 4294901760, %v967_v21  ;;  %v5866_v57 = vand.u32 4294901760, %v4095_v25  ;;  %v5861_v22 = vand.u32 4294901760, %v4147_v27 }
  0x74   :  { %901 = vmatpush.msra.mxu3 %v3853_v14  ;;  %793 = vmatpush.msra.mxu1 %v3853_v14  ;;  %v4074_v14 = vsub.f32 %v127_v30, %v4048_v61  ;;  %v962_v28 = vand.u32 4294901760, %v961_v46  ;;  %v4105_v35 = vand.u32 4294901760, %v123_v9  ;;  %v4121_v63 = vsub.f32 %v124_v40, %v4092_v1  ;;  %v148_v46 = vld [vmem:[#allocation7 + $0x1f8] sm:$0xff] }
  0x75   :  { %914 = vmatpush.msrb.mxu0 %v4013_v56  ;;  %868 = vmatpush.msra.mxu2 %v703_v32  ;;  %v69_v32 = vld [vmem:[#allocation5 + $0x10] sm:$0xff]  ;;  %v4108_v39 = vsub.f32 %v125_v6, %v4081_v53  ;;  %v974_v12 = vand.u32 4294901760, %v973_v4  ;;  %v991_v7 = vsub.f32 %v4095_v25, %v5866_v57  ;;  %v4189_v4 = vand.u32 4294901760, %v148_v46 }
  0x76   :  { %903 = vmatpush.msra.mxu3 %v3869_v49  ;;  %870 = vmatmul.f32.vlgmr.msra.gmra.mxu2 %v3912_v29  ;;  %v4133_v5 = vsub.f32 %v123_v9, %v4105_v35  ;;  %v5864_v33 = vand.u32 4294901760, %v4121_v63  ;;  %v4176_v9 = vand.u32 4294901760, %v118_v60 }
  0x77   :  { %916 = vmatpush.msrb.mxu0 %v4020_v2  ;;  %1055 = vmatpush.msrb.mxu2 %v4023_v58  ;;  %v5865_v11 = vand.u32 4294901760, %v4108_v39  ;;  %v992_v34 = vand.u32 4294901760, %v991_v7  ;;  %v5867_v7 = vand.u32 4294901760, %v4184_v26 }
  0x78   :  { %795 = vmatpush.msra.mxu1 %v3869_v49  ;;  %905 = vmatpush.msra.mxu3 %v3885_v36  ;;  %v60_v49 = vld [vmem:[#allocation2 + $0x10] sm:$0xff]  ;;  %v5863_v54 = vand.u32 4294901760, %v4133_v5  ;;  %v1003_v6 = vsub.f32 %v4121_v63, %v5864_v33 }
  0x79   :  { %907 = vmatmul.f32.vlgmr.msra.gmra.mxu3 %v3912_v29  ;;  %918 = vmatpush.msrb.mxu0 %v4030_v42  ;;  %v5868_v29 = vand.u32 4294901760, %v4074_v14  ;;  %v78_v50 = vmul.f32 %v69_v32, %v60_v49  ;;  %v997_v37 = vsub.f32 %v4108_v39, %v5865_v11  ;;  %v5860_v32 = vand.u32 4294901760, %v4159_v24 }
  0x7a   :  { %1058 = vmatpush.msrb.mxu2 %v4033_v15  ;;  %1108 = vmatpush.msrb.mxu3 %v4006_v38  ;;  %v1009_v49 = vsub.f32 %v4133_v5, %v5863_v54  ;;  %v1004_v52 = vand.u32 4294901760, %v1003_v6 }
  0x7b   :  { %797 = vmatpush.msra.mxu1 %v3885_v36  ;;  %920 = vmatpush.msrb.mxu0 %v4037_v62  ;;  %v979_v36 = vsub.f32 %v4060_v23, %v5869_v19  ;;  %v985_v10 = vsub.f32 %v4074_v14, %v5868_v29  ;;  %v4137_v55 = vand.u32 4294901760, %v78_v50  ;;  %v998_v21 = vand.u32 4294901760, %v997_v37  ;;  %v145_v37 = vld [vmem:[#allocation7 + $0x1e0] sm:$0xff] }
  0x7c   :  { %801 = vmatmul.f32.vlgmr.msra.gmra.mxu1 %v604_v59  ;;  %1061 = vmatpush.msrb.mxu2 %v4044_v16  ;;  %v120_v59 = vld [vmem:[#allocation7 + $0x118] sm:$0xff]  ;;  %v1021_v18 = vsub.f32 %v4159_v24, %v5860_v32 }
  0x7d   :  { %957 = vmatpush.msrb.mxu1 %v956_v43  ;;  %1110 = vmatpush.msrb.mxu3 %v4013_v56  ;;  %v980_v44 = vand.u32 4294901760, %v979_v36  ;;  %v4143_v0 = vand.u32 4294901760, %v120_v59  ;;  %v986_v47 = vand.u32 4294901760, %v985_v10  ;;  %v4164_v30 = vsub.f32 %v78_v50, %v4137_v55  ;;  %v117_v43 = vld [vmem:[#allocation7 + $0x100] sm:$0xff]  ;;  %v147_v36 = vld [vmem:[#allocation7 + $0x1f0] sm:$0xff] }
  0x7e   :  { %922 = vmatpush.msrb.mxu0 %v4048_v61  ;;  %1064 = vmatpush.msrb.mxu2 %v4055_v3  ;;  %v1015_v50 = vsub.f32 %v4147_v27, %v5861_v22  ;;  %v144_v22 = vld [vmem:[#allocation7 + $0x1d8] sm:$0xff] }
  0x7f   :  { %963 = vmatpush.msrb.mxu1 %v962_v28  ;;  %1112 = vmatpush.msrb.mxu3 %v4020_v2  ;;  %v4172_v40 = vsub.f32 %v120_v59, %v4143_v0  ;;  %v5874_v28 = vand.u32 4294901760, %v4164_v30  ;;  %v4201_v59 = vsub.f32 %v118_v60, %v4176_v9  ;;  %v4242_v11 = vand.u32 4294901760, %v144_v22 }
  0x80   :  { %924 = vmatpush.msrb.mxu0 %v4068_v31  ;;  %1067 = vmatpush.msrb.mxu2 %v4060_v23  ;;  %v1016_v6 = vand.u32 4294901760, %v1015_v50  ;;  %v1022_v50 = vand.u32 4294901760, %v1021_v18 }
  0x81   :  { %969 = vmatpush.msrb.mxu1 %v968_v41  ;;  %1114 = vmatpush.msrb.mxu3 %v4030_v42  ;;  %v4195_v41 = vand.u32 4294901760, %v117_v43  ;;  %v5862_v10 = vand.u32 4294901760, %v4172_v40  ;;  %v946_v60 = vsub.f32 %v4164_v30, %v5874_v28  ;;  %v139_v28 = vld [vmem:[#allocation7 + $0x1b0] sm:$0xff] }
  0x82   :  { %926 = vmatpush.msrb.mxu0 %v4081_v53  ;;  %1070 = vmatpush.msrb.mxu2 %v4074_v14 }
  0x83   :  { %975 = vmatpush.msrb.mxu1 %v974_v12  ;;  %1116 = vmatpush.msrb.mxu3 %v4037_v62  ;;  %v146_v12 = vld [vmem:[#allocation7 + $0x1e8] sm:$0xff]  ;;  %v947_v54 = vand.u32 4294901760, %v946_v60 }
  0x84   :  { %928 = vmatpush.msrb.mxu0 %v4092_v1  ;;  %1073 = vmatpush.msrb.mxu2 %v4095_v25  ;;  %v4225_v32 = vand.u32 4294901760, %v146_v12 }
  0x85   :  { %981 = vmatpush.msrb.mxu1 %v980_v44  ;;  %1118 = vmatpush.msrb.mxu3 %v4048_v61  ;;  %v1010_v44 = vand.u32 4294901760, %v1009_v49  ;;  %v4223_v49 = vsub.f32 %v117_v43, %v4195_v41  ;;  %v1033_v43 = vsub.f32 %v4184_v26, %v5867_v7 }
  0x86   :  { %930 = vmatpush.msrb.mxu0 %v4105_v35  ;;  %1076 = vmatpush.msrb.mxu2 %v4108_v39  ;;  %5965 = vst [vmem:[#allocation15_spill] sm:$0xff] %v4225_v32  ;;  %v4247_v7 = vsub.f32 %v146_v12, %v4225_v32 }
  0x87   :  { %987 = vmatpush.msrb.mxu1 %v986_v47  ;;  %1120 = vmatpush.msrb.mxu3 %v4068_v31  ;;  %v4208_v47 = vand.u32 4294901760, %v147_v36  ;;  %v5873_v57 = vand.u32 4294901760, %v4223_v49 }
  0x88   :  { %932 = vmatpush.msrb.mxu0 %v4117_v51  ;;  %1079 = vmatpush.msrb.mxu2 %v4121_v63 }
  0x89   :  { %993 = vmatpush.msrb.mxu1 %v992_v34  ;;  %1122 = vmatpush.msrb.mxu3 %v4081_v53  ;;  %v4216_v34 = vsub.f32 %v148_v46, %v4189_v4  ;;  %v5870_v46 = vand.u32 4294901760, %v4201_v59 }
  0x8a   :  { %934 = vmatpush.msrb.mxu0 %v4129_v20  ;;  %1082 = vmatpush.msrb.mxu2 %v4133_v5 }
  0x8b   :  { %999 = vmatpush.msrb.mxu1 %v998_v21  ;;  %1124 = vmatpush.msrb.mxu3 %v4092_v1  ;;  %v1027_v21 = vsub.f32 %v4172_v40, %v5862_v10  ;;  %v4237_v10 = vsub.f32 %v147_v36, %v4208_v47  ;;  %v5871_v33 = vand.u32 4294901760, %v4216_v34  ;;  %v1039_v36 = vsub.f32 %v4201_v59, %v5870_v46 }
  0x8c   :  { %936 = vmatpush.msrb.mxu0 %v4143_v0  ;;  %1085 = vmatpush.msrb.mxu2 %v4147_v27  ;;  %v4266_v46 = vsub.f32 %v144_v22, %v4242_v11 }
  0x8d   :  { %1005 = vmatpush.msrb.mxu1 %v1004_v52  ;;  %1126 = vmatpush.msrb.mxu3 %v4105_v35  ;;  %v4230_v52 = vand.u32 4294901760, %v145_v37  ;;  %v1028_v18 = vand.u32 4294901760, %v1027_v21  ;;  %v1034_v21 = vand.u32 4294901760, %v1033_v43  ;;  %v5876_v29 = vand.u32 4294901760, %v4237_v10 }
  0x8e   :  { %938 = vmatpush.msrb.mxu0 %v4155_v45  ;;  %1088 = vmatpush.msrb.mxu2 %v4159_v24  ;;  %v1296_v19 = vsub.f32 %v4216_v34, %v5871_v33  ;;  %v1040_v33 = vand.u32 4294901760, %v1039_v36 }
  0x8f   :  { %1011 = vmatpush.msrb.mxu1 %v1010_v44  ;;  %1128 = vmatpush.msrb.mxu3 %v4117_v51  ;;  %v143_v44 = vld [vmem:[#allocation7 + $0x1d0] sm:$0xff]  ;;  %v4255_v60 = vsub.f32 %v145_v37, %v4230_v52  ;;  %v141_v37 = vld [vmem:[#allocation7 + $0x1c0] sm:$0xff]  ;;  %v1302_v58 = vsub.f32 %v4237_v10, %v5876_v29 }
  0x90   :  { %940 = vmatpush.msrb.mxu0 %v4176_v9  ;;  %1091 = vmatpush.msrb.mxu2 %v4172_v40  ;;  %v4259_v12 = vand.u32 4294901760, %v143_v44  ;;  %v1297_v36 = vand.u32 4294901760, %v1296_v19  ;;  %v5967_v19 = vand.u32 4294901760, %v4164_v30 }
  0x91   :  { %1017 = vmatpush.msrb.mxu1 %v1016_v6  ;;  %1130 = vmatpush.msrb.mxu3 %v4129_v20  ;;  %v142_v6 = vld [vmem:[#allocation7 + $0x1c8] sm:$0xff]  ;;  %v5877_v22 = vand.u32 4294901760, %v4255_v60 }
  0x92   :  { %942 = vmatpush.msrb.mxu0 %v4195_v41  ;;  %1094 = vmatpush.msrb.mxu2 %v4184_v26  ;;  %v4274_v43 = vand.u32 4294901760, %v142_v6 }
  0x93   :  { %1023 = vmatpush.msrb.mxu1 %v1022_v50  ;;  %1132 = vmatpush.msrb.mxu3 %v4143_v0  ;;  %v1045_v50 = vsub.f32 %v4223_v49, %v5873_v57  ;;  %v5878_v57 = vand.u32 4294901760, %v4266_v46  ;;  %v1314_v16 = vsub.f32 %v4255_v60, %v5877_v22 }
  0x94   :  { %948 = vmatmul.f32.vlgmr.msrb.gmra.mxu0 %v947_v54  ;;  %1097 = vmatpush.msrb.mxu2 %v4201_v59  ;;  %v5875_v54 = vand.u32 4294901760, %v4247_v7 }
  0x95   :  { %1149 = vmatpush.msra.mxu0 %v954_v8  ;;  %1029 = vmatpush.msrb.mxu1 %v1028_v18  ;;  %v4285_v8 = vsub.f32 %v143_v44, %v4259_v12  ;;  %v4287_v18 = vand.u32 4294901760, %v141_v37  ;;  %v1046_v15 = vand.u32 4294901760, %v1045_v50  ;;  %v4299_v44 = vsub.f32 %v142_v6, %v4274_v43  ;;  %v136_v6 = vld [vmem:[#allocation7 + $0x198] sm:$0xff] }
  0x96   :  { %1134 = vmatpush.msrb.mxu3 %v4155_v45  ;;  %1100 = vmatpush.msrb.mxu2 %v4223_v49  ;;  %v5968_v50 = vand.u32 4294901760, %v4055_v3  ;;  %v1320_v22 = vsub.f32 %v4266_v46, %v5878_v57  ;;  %v5969_v3 = vand.u32 4294901760, %v4060_v23  ;;  %v61_v57 = vld [vmem:[#allocation2 + $0x18] sm:$0xff] }
  0x97   :  { %1153 = vmatpush.msra.mxu0 %v960_v13  ;;  %1035 = vmatpush.msrb.mxu1 %v1034_v21  ;;  %5966 = vst [vmem:[#allocation12_spill] sm:$0xff] %v4285_v8  ;;  %v1308_v13 = vsub.f32 %v4247_v7, %v5875_v54  ;;  %v4301_v21 = vand.u32 4294901760, %v140_v17  ;;  %v1303_v54 = vand.u32 4294901760, %v1302_v58  ;;  %v4313_v29 = vsub.f32 %v141_v37, %v4287_v18 }
  0x98   :  { %1136 = vmatpush.msrb.mxu3 %v4176_v9  ;;  %1103 = vmatmul.f32.vlgmr.msrb.gmra.mxu2 %v4164_v30  ;;  %v137_v30 = vld [vmem:[#allocation7 + $0x1a0] sm:$0xff]  ;;  %v5970_v23 = vand.u32 4294901760, %v4285_v8 }
  0x99   :  { %1157 = vmatpush.msra.mxu0 %v966_v48  ;;  %1253 = vmatpush.msra.mxu2 %v4189_v4  ;;  %v138_v48 = vld [vmem:[#allocation7 + $0x1a8] sm:$0xff]  ;;  %v1309_v58 = vand.u32 4294901760, %v1308_v13  ;;  %v4325_v37 = vsub.f32 %v140_v17, %v4301_v21  ;;  %v4352_v13 = vand.u32 4294901760, %v136_v6 }
  0x9a   :  { %1041 = vmatpush.msrb.mxu1 %v1040_v33  ;;  %1138 = vmatpush.msrb.mxu3 %v4195_v41  ;;  %v4315_v33 = vand.u32 4294901760, %v139_v28 }
  0x9b   :  { %1142 = vmatmul.f32.vlgmr.msrb.gmra.mxu3 %v5967_v19  ;;  %1161 = vmatpush.msra.mxu0 %v5968_v50  ;;  %v4327_v50 = vand.u32 4294901760, %v138_v48  ;;  %v70_v19 = vld [vmem:[#allocation5 + $0x18] sm:$0xff] }
  0x9c   :  { %1255 = vmatpush.msra.mxu2 %v4208_v47  ;;  %1298 = vmatpush.msra.mxu3 %v1297_v36  ;;  %v1315_v36 = vand.u32 4294901760, %v1314_v16  ;;  %v4337_v17 = vsub.f32 %v139_v28, %v4315_v33  ;;  %v134_v28 = vld [vmem:[#allocation7 + $0x188] sm:$0xff] }
  0x9d   :  { %1047 = vmatpush.msrb.mxu1 %v1046_v15  ;;  %1165 = vmatpush.msra.mxu0 %v5969_v3  ;;  %v1326_v15 = vsub.f32 %v4285_v8, %v5970_v23  ;;  %v4339_v3 = vand.u32 4294901760, %v137_v30  ;;  %v4350_v23 = vsub.f32 %v138_v48, %v4327_v50  ;;  %v135_v8 = vld [vmem:[#allocation7 + $0x190] sm:$0xff] }
  0x9e   :  { %1049 = vmatmul.f32.vlgmr.msrb.gmra.mxu1 %v4137_v55  ;;  %1257 = vmatpush.msra.mxu2 %v4225_v32  ;;  %v5971_v32 = vand.u32 4294901760, %v4074_v14  ;;  %v5973_v14 = vand.u32 4294901760, %v4095_v25  ;;  %v1349_v48 = vand.u32 4294901760, %v4337_v17  ;;  %v5975_v25 = vand.u32 4294901760, %v4108_v39 }
  0x9f   :  { %1216 = vmatpush.msra.mxu1 %v4006_v38  ;;  %1304 = vmatpush.msra.mxu3 %v1303_v54  ;;  %v1321_v38 = vand.u32 4294901760, %v1320_v22  ;;  %v5972_v54 = vand.u32 4294901760, %v4299_v44  ;;  %v5974_v22 = vand.u32 4294901760, %v4313_v29  ;;  %v5977_v39 = vand.u32 4294901760, %v4121_v63 }
  0xa0   :  { %1169 = vmatpush.msra.mxu0 %v5971_v32  ;;  %1259 = vmatpush.msra.mxu2 %v4230_v52  ;;  %v79_v32 = vmul.f32 %v70_v19, %v61_v57  ;;  %v4368_v57 = vand.u32 4294901760, %v135_v8  ;;  %v5976_v19 = vand.u32 4294901760, %v4325_v37 }
  0xa1   :  { %1218 = vmatpush.msra.mxu1 %v4013_v56  ;;  %1310 = vmatpush.msra.mxu3 %v1309_v58  ;;  %v1332_v16 = vsub.f32 %v4299_v44, %v5972_v54  ;;  %v1327_v56 = vand.u32 4294901760, %v1326_v15  ;;  %v1338_v58 = vsub.f32 %v4313_v29, %v5974_v22  ;;  %v4363_v54 = vsub.f32 %v137_v30, %v4339_v3 }
  0xa2   :  { %1173 = vmatpush.msra.mxu0 %v5973_v14  ;;  %1261 = vmatpush.msra.mxu2 %v4242_v11  ;;  %v1355_v15 = vand.u32 4294901760, %v4350_v23  ;;  %v4376_v30 = vsub.f32 %v136_v6, %v4352_v13  ;;  %v133_v14 = vld [vmem:[#allocation7 + $0x180] sm:$0xff]  ;;  %v4381_v22 = vand.u32 4294901760, %v134_v28  ;;  %v4394_v63 = vsub.f32 %v135_v8, %v4368_v57 }
  0xa3   :  { %1220 = vmatpush.msra.mxu1 %v4020_v2  ;;  %1316 = vmatpush.msra.mxu3 %v1315_v36  ;;  %v1333_v2 = vand.u32 4294901760, %v1332_v16  ;;  %v1344_v36 = vsub.f32 %v4325_v37, %v5976_v19  ;;  %v1350_v16 = vsub.f32 %v4337_v17, %v1349_v48  ;;  %v1361_v6 = vand.u32 4294901760, %v4363_v54 }
  0xa4   :  { %1177 = vmatpush.msra.mxu0 %v5975_v25  ;;  %1263 = vmatpush.msra.mxu2 %v4259_v12  ;;  %v5978_v25 = vand.u32 4294901760, %v4133_v5  ;;  %v4396_v19 = vand.u32 4294901760, %v133_v14  ;;  %v5979_v5 = vand.u32 4294901760, %v4147_v27  ;;  %v4407_v8 = vsub.f32 %v134_v28, %v4381_v22 }
  0xa5   :  { %1222 = vmatpush.msra.mxu1 %v4030_v42  ;;  %1322 = vmatpush.msra.mxu3 %v1321_v38  ;;  %v4383_v42 = vand.u32 4294901760, %v79_v32  ;;  %v1339_v38 = vand.u32 4294901760, %v1338_v58  ;;  %v1367_v58 = vand.u32 4294901760, %v4376_v30  ;;  %v1373_v27 = vand.u32 4294901760, %v4394_v63 }
  0xa6   :  { %1181 = vmatpush.msra.mxu0 %v5977_v39  ;;  %1265 = vmatpush.msra.mxu2 %v4274_v43  ;;  %v4421_v28 = vsub.f32 %v133_v14, %v4396_v19 }
  0xa7   :  { %1224 = vmatpush.msra.mxu1 %v4037_v62  ;;  %1328 = vmatpush.msra.mxu3 %v1327_v56  ;;  %v1345_v62 = vand.u32 4294901760, %v1344_v36  ;;  %v1356_v56 = vsub.f32 %v4350_v23, %v1355_v15  ;;  %v4410_v39 = vsub.f32 %v79_v32, %v4383_v42  ;;  %v5980_v36 = vand.u32 4294901760, %v4159_v24 }
  0xa8   :  { %1185 = vmatpush.msra.mxu0 %v5978_v25  ;;  %1267 = vmatpush.msra.mxu2 %v4287_v18  ;;  %v1368_v32 = vsub.f32 %v4376_v30, %v1367_v58  ;;  %v1379_v24 = vand.u32 4294901760, %v4407_v8  ;;  %v1385_v25 = vand.u32 4294901760, %v4421_v28 }
  0xa9   :  { %1226 = vmatpush.msra.mxu1 %v4048_v61  ;;  %1334 = vmatpush.msra.mxu3 %v1333_v2  ;;  %v1351_v61 = vand.u32 4294901760, %v1350_v16  ;;  %v1362_v2 = vsub.f32 %v4363_v54, %v1361_v6  ;;  %v1286_v16 = vand.u32 4294901760, %v4410_v39 }
  0xaa   :  { %1189 = vmatpush.msra.mxu0 %v5979_v5  ;;  %1269 = vmatpush.msra.mxu2 %v4301_v21  ;;  %v1386_v5 = vsub.f32 %v4421_v28, %v1385_v25 }
  0xab   :  { %1228 = vmatpush.msra.mxu1 %v4068_v31  ;;  %1340 = vmatpush.msra.mxu3 %v1339_v38  ;;  %v1357_v31 = vand.u32 4294901760, %v1356_v56  ;;  %v5981_v38 = vand.u32 4294901760, %v4172_v40  ;;  %v1363_v14 = vand.u32 4294901760, %v1362_v2  ;;  %v1374_v40 = vsub.f32 %v4394_v63, %v1373_v27  ;;  %v156_v2 = vld [vmem:[#allocation7 + $0x238] sm:$0xff] }
  0xac   :  { %1193 = vmatpush.msra.mxu0 %v5980_v36  ;;  %1271 = vmatpush.msra.mxu2 %v4315_v33  ;;  %v5983_v56 = vand.u32 4294901760, %v4201_v59 }
  0xad   :  { %1230 = vmatpush.msra.mxu1 %v4081_v53  ;;  %1346 = vmatpush.msra.mxu3 %v1345_v62  ;;  %v5982_v53 = vand.u32 4294901760, %v4184_v26  ;;  %v1369_v62 = vand.u32 4294901760, %v1368_v32  ;;  %v1287_v26 = vsub.f32 %v4410_v39, %v1286_v16  ;;  %v1375_v59 = vand.u32 4294901760, %v1374_v40  ;;  %v154_v40 = vld [vmem:[#allocation7 + $0x228] sm:$0xff] }
  0xae   :  { %1197 = vmatpush.msra.mxu0 %v5981_v38  ;;  %1273 = vmatpush.msra.mxu2 %v4327_v50 }
  0xaf   :  { %1232 = vmatpush.msra.mxu1 %v4092_v1  ;;  %1352 = vmatpush.msra.mxu3 %v1351_v61  ;;  %v1380_v1 = vsub.f32 %v4407_v8, %v1379_v24 }
  0xb0   :  { %1201 = vmatpush.msra.mxu0 %v5982_v53  ;;  %1275 = vmatpush.msra.mxu2 %v4339_v3  ;;  %v71_v53 = vld [vmem:[#allocation5 + $0x20] sm:$0xff] }
  0xb1   :  { %1234 = vmatpush.msra.mxu1 %v4105_v35  ;;  %1358 = vmatpush.msra.mxu3 %v1357_v31  ;;  %v5984_v35 = vand.u32 4294901760, %v4223_v49  ;;  %v1381_v61 = vand.u32 4294901760, %v1380_v1  ;;  %v1387_v49 = vand.u32 4294901760, %v1386_v5  ;;  %v155_v31 = vld [vmem:[#allocation7 + $0x230] sm:$0xff]  ;;  %v4627_v5 = vand.u32 4294901760, %v154_v40 }
  0xb2   :  { %1205 = vmatpush.msra.mxu0 %v5983_v56  ;;  %1277 = vmatpush.msra.mxu2 %v4352_v13  ;;  %v4615_v56 = vand.u32 4294901760, %v155_v31 }
  0xb3   :  { %1236 = vmatpush.msra.mxu1 %v4117_v51  ;;  %1364 = vmatpush.msra.mxu3 %v1363_v14  ;;  %v1288_v51 = vand.u32 4294901760, %v1287_v26  ;;  %v153_v26 = vld [vmem:[#allocation7 + $0x220] sm:$0xff] }
  0xb4   :  { %1209 = vmatpush.msra.mxu0 %v5984_v35  ;;  %1279 = vmatpush.msra.mxu2 %v4368_v57 }
  0xb5   :  { %1238 = vmatpush.msra.mxu1 %v4129_v20  ;;  %1370 = vmatpush.msra.mxu3 %v1369_v62  ;;  %v5985_v20 = vand.u32 4294901760, %v4216_v34 }
  0xb6   :  { %1211 = vmatmul.f32.vlgmr.msra.gmra.mxu0 %v4137_v55  ;;  %1281 = vmatpush.msra.mxu2 %v4381_v22 }
  0xb7   :  { %1396 = vmatpush.msrb.mxu0 %v4216_v34  ;;  %1240 = vmatpush.msra.mxu1 %v4143_v0  ;;  %v5986_v0 = vand.u32 4294901760, %v4237_v10  ;;  %v5990_v34 = vld [vmem:[#allocation15_spill] sm:$0xff] }
  0xb8   :  { %1376 = vmatpush.msra.mxu3 %v1375_v59  ;;  %1283 = vmatpush.msra.mxu2 %v4396_v19 }
  0xb9   :  { %1399 = vmatpush.msrb.mxu0 %v4237_v10  ;;  %1242 = vmatpush.msra.mxu1 %v4155_v45  ;;  %v5987_v45 = vand.u32 4294901760, %v4247_v7  ;;  %v5989_v10 = vand.u32 4294901760, %v4255_v60 }
  0xba   :  { %1382 = vmatpush.msra.mxu3 %v1381_v61  ;;  %1289 = vmatmul.f32.vlgmr.msra.gmra.mxu2 %v1288_v51 }
  0xbb   :  { %1402 = vmatpush.msrb.mxu0 %v4247_v7  ;;  %1490 = vmatpush.msrb.mxu2 %v5985_v20  ;;  %v5994_v7 = vand.u32 4294901760, %v4313_v29  ;;  %v4639_v20 = vand.u32 4294901760, %v153_v26 }
  0xbc   :  { %1244 = vmatpush.msra.mxu1 %v4176_v9  ;;  %1388 = vmatpush.msra.mxu3 %v1387_v49  ;;  %v5988_v9 = vld [vmem:[#allocation12_spill] sm:$0xff] }
  0xbd   :  { %1390 = vmatmul.f32.vlgmr.msra.gmra.mxu3 %v4383_v42  ;;  %1405 = vmatpush.msrb.mxu0 %v4255_v60 }
  0xbe   :  { %1494 = vmatpush.msrb.mxu2 %v5986_v0  ;;  %1557 = vmatpush.msrb.mxu3 %v4189_v4 }
  0xbf   :  { %1246 = vmatpush.msra.mxu1 %v4195_v41  ;;  %1408 = vmatpush.msrb.mxu0 %v4266_v46  ;;  %v5993_v41 = vand.u32 4294901760, %v4299_v44 }
  0xc0   :  { %1248 = vmatmul.f32.vlgmr.msra.gmra.mxu1 %v4137_v55  ;;  %1498 = vmatpush.msrb.mxu2 %v5987_v45  ;;  %v5991_v55 = vand.u32 4294901760, %v4266_v46  ;;  %v164_v46 = vld [vmem:[#allocation7 + $0x278] sm:$0xff]  ;;  %v4643_v45 = vsub.f32 %v155_v31, %v4615_v56 }
  0xc1   :  { %1449 = vmatpush.msrb.mxu1 %v4189_v4  ;;  %1559 = vmatpush.msrb.mxu3 %v4208_v47  ;;  %v5992_v4 = vand.u32 4294901760, %v5988_v9 }
  0xc2   :  { %1411 = vmatpush.msrb.mxu0 %v5988_v9  ;;  %1502 = vmatpush.msrb.mxu2 %v5989_v10  ;;  %v151_v10 = vld [vmem:[#allocation7 + $0x210] sm:$0xff] }
  0xc3   :  { %1451 = vmatpush.msrb.mxu1 %v4208_v47  ;;  %1561 = vmatpush.msrb.mxu3 %v5990_v34  ;;  %v5995_v47 = vand.u32 4294901760, %v4325_v37 }
  0xc4   :  { %1414 = vmatpush.msrb.mxu0 %v4299_v44  ;;  %1506 = vmatpush.msrb.mxu2 %v5991_v55  ;;  %v160_v44 = vld [vmem:[#allocation7 + $0x258] sm:$0xff] }
  0xc5   :  { %1453 = vmatpush.msrb.mxu1 %v5990_v34  ;;  %1563 = vmatpush.msrb.mxu3 %v4230_v52 }
  0xc6   :  { %1417 = vmatpush.msrb.mxu0 %v4313_v29  ;;  %1510 = vmatpush.msrb.mxu2 %v5992_v4  ;;  %v163_v29 = vld [vmem:[#allocation7 + $0x270] sm:$0xff] }
  0xc7   :  { %1455 = vmatpush.msrb.mxu1 %v4230_v52  ;;  %1565 = vmatpush.msrb.mxu3 %v4242_v11  ;;  %v162_v52 = vld [vmem:[#allocation7 + $0x268] sm:$0xff]  ;;  %v4523_v60 = vand.u32 4294901760, %v163_v29 }
  0xc8   :  { %1420 = vmatpush.msrb.mxu0 %v4325_v37  ;;  %1514 = vmatpush.msrb.mxu2 %v5993_v41  ;;  %v159_v37 = vld [vmem:[#allocation7 + $0x250] sm:$0xff] }
  0xc9   :  { %1457 = vmatpush.msrb.mxu1 %v4242_v11  ;;  %1567 = vmatpush.msrb.mxu3 %v4259_v12  ;;  %v4516_v11 = vand.u32 4294901760, %v164_v46 }
  0xca   :  { %1423 = vmatpush.msrb.mxu0 %v4337_v17  ;;  %1518 = vmatpush.msrb.mxu2 %v5994_v7  ;;  %v4548_v17 = vand.u32 4294901760, %v160_v44  ;;  %v4657_v7 = vsub.f32 %v154_v40, %v4627_v5 }
  0xcb   :  { %1459 = vmatpush.msrb.mxu1 %v4259_v12  ;;  %1569 = vmatpush.msrb.mxu3 %v4274_v43  ;;  %v161_v12 = vld [vmem:[#allocation7 + $0x260] sm:$0xff] }
  0xcc   :  { %1426 = vmatpush.msrb.mxu0 %v4350_v23  ;;  %1522 = vmatpush.msrb.mxu2 %v5995_v47 }
  0xcd   :  { %1461 = vmatpush.msrb.mxu1 %v4274_v43  ;;  %1571 = vmatpush.msrb.mxu3 %v4287_v18  ;;  %v4530_v43 = vand.u32 4294901760, %v162_v52 }
  0xce   :  { %1429 = vmatpush.msrb.mxu0 %v4363_v54  ;;  %1526 = vmatpush.msrb.mxu2 %v1349_v48  ;;  %v4559_v48 = vand.u32 4294901760, %v159_v37  ;;  %v158_v54 = vld [vmem:[#allocation7 + $0x248] sm:$0xff] }
  0xcf   :  { %1463 = vmatpush.msrb.mxu1 %v4287_v18  ;;  %1573 = vmatpush.msrb.mxu3 %v4301_v21  ;;  %v4533_v18 = vsub.f32 %v164_v46, %v4516_v11  ;;  %v4554_v23 = vsub.f32 %v162_v52, %v4530_v43  ;;  %v5886_v52 = vand.u32 4294901760, %v4643_v45 }
  0xd0   :  { %1432 = vmatpush.msrb.mxu0 %v4376_v30  ;;  %1530 = vmatpush.msrb.mxu2 %v1355_v15  ;;  %v4571_v30 = vsub.f32 %v160_v44, %v4548_v17  ;;  %v150_v44 = vld [vmem:[#allocation7 + $0x208] sm:$0xff] }
  0xd1   :  { %1465 = vmatpush.msrb.mxu1 %v4301_v21  ;;  %1575 = vmatpush.msrb.mxu3 %v4315_v33  ;;  %v4540_v21 = vand.u32 4294901760, %v161_v12  ;;  %v4686_v31 = vand.u32 4294901760, %v150_v44 }
  0xd2   :  { %1435 = vmatpush.msrb.mxu0 %v4394_v63  ;;  %1534 = vmatpush.msrb.mxu2 %v1361_v6  ;;  %v157_v6 = vld [vmem:[#allocation7 + $0x240] sm:$0xff]  ;;  %v4578_v63 = vand.u32 4294901760, %v158_v54 }
  0xd3   :  { %1467 = vmatpush.msrb.mxu1 %v4315_v33  ;;  %1577 = vmatpush.msrb.mxu3 %v4327_v50  ;;  %v4543_v33 = vsub.f32 %v163_v29, %v4523_v60  ;;  %v4565_v15 = vsub.f32 %v161_v12, %v4540_v21  ;;  %v4591_v36 = vand.u32 4294901760, %v157_v6  ;;  %v4665_v29 = vand.u32 4294901760, %v151_v10 }
  0xd4   :  { %1438 = vmatpush.msrb.mxu0 %v4407_v8  ;;  %1538 = vmatpush.msrb.mxu2 %v1367_v58  ;;  %v1648_v58 = vand.u32 4294901760, %v4554_v23  ;;  %v4584_v8 = vsub.f32 %v159_v37, %v4559_v48  ;;  %v4605_v14 = vsub.f32 %v158_v54, %v4578_v63  ;;  %v4669_v12 = vsub.f32 %v153_v26, %v4639_v20 }
  0xd5   :  { %1469 = vmatpush.msrb.mxu1 %v4327_v50  ;;  %1579 = vmatpush.msrb.mxu3 %v4339_v3  ;;  %v1636_v50 = vand.u32 4294901760, %v4533_v18  ;;  %v4618_v1 = vsub.f32 %v157_v6, %v4591_v36  ;;  %v4694_v40 = vsub.f32 %v151_v10, %v4665_v29 }
  0xd6   :  { %1441 = vmatpush.msrb.mxu0 %v4421_v28  ;;  %1542 = vmatpush.msrb.mxu2 %v1373_v27  ;;  %v5895_v27 = vand.u32 4294901760, %v4565_v15  ;;  %v5892_v28 = vand.u32 4294901760, %v4571_v30  ;;  %v1649_v38 = vsub.f32 %v4554_v23, %v1648_v58  ;;  %v5889_v61 = vand.u32 4294901760, %v4605_v14 }
  0xd7   :  { %1471 = vmatpush.msrb.mxu1 %v4339_v3  ;;  %1581 = vmatpush.msrb.mxu3 %v4352_v13  ;;  %v1642_v3 = vand.u32 4294901760, %v4543_v33  ;;  %v5888_v0 = vand.u32 4294901760, %v4618_v1 }
  0xd8   :  { %1444 = vmatmul.f32.vlgmr.msrb.gmra.mxu0 %v4410_v39  ;;  %1546 = vmatpush.msrb.mxu2 %v1379_v24  ;;  %v4602_v24 = vand.u32 4294901760, %v156_v2  ;;  %v1655_v62 = vsub.f32 %v4565_v15, %v5895_v27  ;;  %v1650_v59 = vand.u32 4294901760, %v1649_v38  ;;  %v1673_v55 = vsub.f32 %v4605_v14, %v5889_v61  ;;  %v172_v27 = vld [vmem:[#allocation7 + $0x2b8] sm:$0xff] }
  0xd9   :  { %1594 = vmatpush.msra.mxu0 %v4516_v11  ;;  %1473 = vmatpush.msrb.mxu1 %v4352_v13  ;;  %v1637_v13 = vsub.f32 %v4533_v18, %v1636_v50  ;;  %v1679_v46 = vsub.f32 %v4618_v1, %v5888_v0 }
  0xda   :  { %1583 = vmatpush.msrb.mxu3 %v4368_v57  ;;  %1550 = vmatpush.msrb.mxu2 %v1385_v25  ;;  %v4631_v51 = vsub.f32 %v156_v2, %v4602_v24  ;;  %v1656_v49 = vand.u32 4294901760, %v1655_v62  ;;  %v1674_v54 = vand.u32 4294901760, %v1673_v55  ;;  %v5890_v55 = vand.u32 4294901760, %v4694_v40 }
  0xdb   :  { %1596 = vmatpush.msra.mxu0 %v4523_v60  ;;  %1475 = vmatpush.msrb.mxu1 %v4368_v57  ;;  %v1643_v57 = vsub.f32 %v4543_v33, %v1642_v3  ;;  %v1638_v32 = vand.u32 4294901760, %v1637_v13  ;;  %v5884_v13 = vand.u32 4294901760, %v4657_v7  ;;  %v1680_v38 = vand.u32 4294901760, %v1679_v46  ;;  %v177_v46 = vld [vmem:[#allocation7 + $0x2e0] sm:$0xff] }
  0xdc   :  { %1585 = vmatpush.msrb.mxu3 %v4381_v22  ;;  %1552 = vmatmul.f32.vlgmr.msrb.gmra.mxu2 %v4383_v42  ;;  %v5887_v41 = vand.u32 4294901760, %v4631_v51 }
  0xdd   :  { %1598 = vmatpush.msra.mxu0 %v4530_v43  ;;  %1737 = vmatpush.msra.mxu2 %v4533_v18  ;;  %v1644_v25 = vand.u32 4294901760, %v1643_v57  ;;  %v180_v57 = vld [vmem:[#allocation7 + $0x2f8] sm:$0xff] }
  0xde   :  { %1477 = vmatpush.msrb.mxu1 %v4381_v22  ;;  %1587 = vmatpush.msrb.mxu3 %v4396_v19  ;;  %v62_v22 = vld [vmem:[#allocation2 + $0x20] sm:$0xff]  ;;  %v1685_v6 = vsub.f32 %v4631_v51, %v5887_v41  ;;  %v4699_v62 = vand.u32 4294901760, %v180_v57 }
  0xdf   :  { %1589 = vmatmul.f32.vlgmr.msrb.gmra.mxu3 %v4383_v42  ;;  %1600 = vmatpush.msra.mxu0 %v4540_v21  ;;  %v5891_v42 = vand.u32 4294901760, %v4584_v8  ;;  %v80_v35 = vmul.f32 %v71_v53, %v62_v22  ;;  %v1691_v22 = vsub.f32 %v4643_v45, %v5886_v52  ;;  %v5883_v53 = vand.u32 4294901760, %v4669_v12 }
  0xe0   :  { %1740 = vmatpush.msra.mxu2 %v4543_v33  ;;  %1790 = vmatpush.msra.mxu3 %v4516_v11  ;;  %v1686_v26 = vand.u32 4294901760, %v1685_v6 }
  0xe1   :  { %1479 = vmatpush.msrb.mxu1 %v4396_v19  ;;  %1602 = vmatpush.msra.mxu0 %v4548_v17  ;;  %v1661_v19 = vsub.f32 %v4571_v30, %v5892_v28  ;;  %v1667_v39 = vsub.f32 %v4584_v8, %v5891_v42  ;;  %v4647_v34 = vand.u32 4294901760, %v80_v35  ;;  %v1703_v10 = vsub.f32 %v4669_v12, %v5883_v53 }
  0xe2   :  { %1483 = vmatmul.f32.vlgmr.msrb.gmra.mxu1 %v1286_v16  ;;  %1743 = vmatpush.msra.mxu2 %v4554_v23  ;;  %v152_v16 = vld [vmem:[#allocation7 + $0x218] sm:$0xff] }
  0xe3   :  { %1639 = vmatpush.msra.mxu1 %v1638_v32  ;;  %1792 = vmatpush.msra.mxu3 %v4523_v60  ;;  %v1662_v9 = vand.u32 4294901760, %v1661_v19  ;;  %v4653_v4 = vand.u32 4294901760, %v152_v16  ;;  %v1668_v47 = vand.u32 4294901760, %v1667_v39  ;;  %v4674_v37 = vsub.f32 %v80_v35, %v4647_v34  ;;  %v149_v32 = vld [vmem:[#allocation7 + $0x200] sm:$0xff]  ;;  %v179_v19 = vld [vmem:[#allocation7 + $0x2f0] sm:$0xff] }
  0xe4   :  { %1604 = vmatpush.msra.mxu0 %v4559_v48  ;;  %1746 = vmatpush.msra.mxu2 %v4565_v15  ;;  %v1697_v35 = vsub.f32 %v4657_v7, %v5884_v13  ;;  %v176_v13 = vld [vmem:[#allocation7 + $0x2d8] sm:$0xff] }
  0xe5   :  { %1645 = vmatpush.msra.mxu1 %v1644_v25  ;;  %1794 = vmatpush.msra.mxu3 %v4530_v43  ;;  %v4682_v2 = vsub.f32 %v152_v16, %v4653_v4  ;;  %v5897_v25 = vand.u32 4294901760, %v4674_v37  ;;  %v4711_v16 = vsub.f32 %v150_v44, %v4686_v31  ;;  %v4752_v0 = vand.u32 4294901760, %v176_v13 }
  0xe6   :  { %1606 = vmatpush.msra.mxu0 %v4578_v63  ;;  %1749 = vmatpush.msra.mxu2 %v4571_v30  ;;  %v1698_v6 = vand.u32 4294901760, %v1697_v35  ;;  %v1704_v35 = vand.u32 4294901760, %v1703_v10 }
  0xe7   :  { %1651 = vmatpush.msra.mxu1 %v1650_v59  ;;  %1796 = vmatpush.msra.mxu3 %v4540_v21  ;;  %v4705_v59 = vand.u32 4294901760, %v149_v32  ;;  %v5885_v39 = vand.u32 4294901760, %v4682_v2  ;;  %v1628_v44 = vsub.f32 %v4674_v37, %v5897_v25  ;;  %v171_v25 = vld [vmem:[#allocation7 + $0x2b0] sm:$0xff] }
  0xe8   :  { %1608 = vmatpush.msra.mxu0 %v4591_v36  ;;  %1752 = vmatpush.msra.mxu2 %v4584_v8 }
  0xe9   :  { %1657 = vmatpush.msra.mxu1 %v1656_v49  ;;  %1798 = vmatpush.msra.mxu3 %v4548_v17  ;;  %v178_v49 = vld [vmem:[#allocation7 + $0x2e8] sm:$0xff]  ;;  %v1629_v52 = vand.u32 4294901760, %v1628_v44 }
  0xea   :  { %1610 = vmatpush.msra.mxu0 %v4602_v24  ;;  %1755 = vmatpush.msra.mxu2 %v4605_v14  ;;  %v4735_v53 = vand.u32 4294901760, %v178_v49 }
  0xeb   :  { %1663 = vmatpush.msra.mxu1 %v1662_v9  ;;  %1800 = vmatpush.msra.mxu3 %v4559_v48  ;;  %v1692_v9 = vand.u32 4294901760, %v1691_v22  ;;  %v4733_v22 = vsub.f32 %v149_v32, %v4705_v59  ;;  %v1715_v32 = vsub.f32 %v4694_v40, %v5890_v55 }
  0xec   :  { %1612 = vmatpush.msra.mxu0 %v4615_v56  ;;  %1758 = vmatpush.msra.mxu2 %v4618_v1  ;;  %5996 = vst [vmem:[#allocation14_spill] sm:$0xff] %v4735_v53  ;;  %v4757_v55 = vsub.f32 %v178_v49, %v4735_v53 }
  0xed   :  { %1669 = vmatpush.msra.mxu1 %v1668_v47  ;;  %1802 = vmatpush.msra.mxu3 %v4578_v63  ;;  %v4718_v47 = vand.u32 4294901760, %v179_v19  ;;  %v5896_v61 = vand.u32 4294901760, %v4733_v22 }
  0xee   :  { %1614 = vmatpush.msra.mxu0 %v4627_v5  ;;  %1761 = vmatpush.msra.mxu2 %v4631_v51 }
  0xef   :  { %1675 = vmatpush.msra.mxu1 %v1674_v54  ;;  %1804 = vmatpush.msra.mxu3 %v4591_v36  ;;  %v4726_v54 = vsub.f32 %v180_v57, %v4699_v62  ;;  %v5893_v57 = vand.u32 4294901760, %v4711_v16 }
  0xf0   :  { %1616 = vmatpush.msra.mxu0 %v4639_v20  ;;  %1764 = vmatpush.msra.mxu2 %v4643_v45 }
  0xf1   :  { %1681 = vmatpush.msra.mxu1 %v1680_v38  ;;  %1806 = vmatpush.msra.mxu3 %v4602_v24  ;;  %v1709_v38 = vsub.f32 %v4682_v2, %v5885_v39  ;;  %v4747_v39 = vsub.f32 %v179_v19, %v4718_v47  ;;  %v5894_v41 = vand.u32 4294901760, %v4726_v54  ;;  %v1721_v19 = vsub.f32 %v4711_v16, %v5893_v57 }
  0xf2   :  { %1618 = vmatpush.msra.mxu0 %v4653_v4  ;;  %1767 = vmatpush.msra.mxu2 %v4657_v7  ;;  %v4776_v57 = vsub.f32 %v176_v13, %v4752_v0 }
  0xf3   :  { %1687 = vmatpush.msra.mxu1 %v1686_v26  ;;  %1808 = vmatpush.msra.mxu3 %v4615_v56  ;;  %v4740_v26 = vand.u32 4294901760, %v177_v46  ;;  %v1710_v10 = vand.u32 4294901760, %v1709_v38  ;;  %v1716_v38 = vand.u32 4294901760, %v1715_v32  ;;  %v5899_v42 = vand.u32 4294901760, %v4747_v39 }
  0xf4   :  { %1620 = vmatpush.msra.mxu0 %v4665_v29  ;;  %1770 = vmatpush.msra.mxu2 %v4669_v12  ;;  %v1978_v28 = vsub.f32 %v4726_v54, %v5894_v41  ;;  %v1722_v41 = vand.u32 4294901760, %v1721_v19 }
  0xf5   :  { %1693 = vmatpush.msra.mxu1 %v1692_v9  ;;  %1810 = vmatpush.msra.mxu3 %v4627_v5  ;;  %v175_v9 = vld [vmem:[#allocation7 + $0x2d0] sm:$0xff]  ;;  %v4765_v44 = vsub.f32 %v177_v46, %v4740_v26  ;;  %v173_v46 = vld [vmem:[#allocation7 + $0x2c0] sm:$0xff]  ;;  %v1984_v18 = vsub.f32 %v4747_v39, %v5899_v42 }
  0xf6   :  { %1622 = vmatpush.msra.mxu0 %v4686_v31  ;;  %1773 = vmatpush.msra.mxu2 %v4682_v2  ;;  %v4769_v49 = vand.u32 4294901760, %v175_v9  ;;  %v1979_v19 = vand.u32 4294901760, %v1978_v28  ;;  %v5998_v28 = vand.u32 4294901760, %v4674_v37 }
  0xf7   :  { %1699 = vmatpush.msra.mxu1 %v1698_v6  ;;  %1812 = vmatpush.msra.mxu3 %v4639_v20  ;;  %v174_v6 = vld [vmem:[#allocation7 + $0x2c8] sm:$0xff]  ;;  %v5900_v13 = vand.u32 4294901760, %v4765_v44 }
  0xf8   :  { %1624 = vmatpush.msra.mxu0 %v4705_v59  ;;  %1776 = vmatpush.msra.mxu2 %v4694_v40  ;;  %v4784_v32 = vand.u32 4294901760, %v174_v6 }
  0xf9   :  { %1705 = vmatpush.msra.mxu1 %v1704_v35  ;;  %1814 = vmatpush.msra.mxu3 %v4653_v4  ;;  %v1727_v35 = vsub.f32 %v4733_v22, %v5896_v61  ;;  %v5901_v61 = vand.u32 4294901760, %v4776_v57  ;;  %v1996_v23 = vsub.f32 %v4765_v44, %v5900_v13 }
  0xfa   :  { %1630 = vmatmul.f32.vlgmr.msra.gmra.mxu0 %v1629_v52  ;;  %1779 = vmatpush.msra.mxu2 %v4711_v16  ;;  %v5898_v52 = vand.u32 4294901760, %v4757_v55 }
  0xfb   :  { %1831 = vmatpush.msrb.mxu0 %v1636_v50  ;;  %1711 = vmatpush.msra.mxu1 %v1710_v10  ;;  %v4795_v50 = vsub.f32 %v175_v9, %v4769_v49  ;;  %v4797_v10 = vand.u32 4294901760, %v173_v46  ;;  %v1728_v33 = vand.u32 4294901760, %v1727_v35  ;;  %v4809_v9 = vsub.f32 %v174_v6, %v4784_v32  ;;  %v168_v6 = vld [vmem:[#allocation7 + $0x298] sm:$0xff] }
  0xfc   :  { %1816 = vmatpush.msra.mxu3 %v4665_v29  ;;  %1782 = vmatpush.msra.mxu2 %v4733_v22  ;;  %v5999_v35 = vand.u32 4294901760, %v4565_v15  ;;  %v2002_v13 = vsub.f32 %v4776_v57, %v5901_v61  ;;  %v6000_v15 = vand.u32 4294901760, %v4571_v30  ;;  %v63_v61 = vld [vmem:[#allocation2 + $0x28] sm:$0xff] }
  0xfd   :  { %1835 = vmatpush.msrb.mxu0 %v1642_v3  ;;  %1717 = vmatpush.msra.mxu1 %v1716_v38  ;;  %5997 = vst [vmem:[#allocation13_spill] sm:$0xff] %v4795_v50  ;;  %v1990_v3 = vsub.f32 %v4757_v55, %v5898_v52  ;;  %v4811_v38 = vand.u32 4294901760, %v172_v27  ;;  %v1985_v52 = vand.u32 4294901760, %v1984_v18  ;;  %v4823_v42 = vsub.f32 %v173_v46, %v4797_v10 }
  0xfe   :  { %1818 = vmatpush.msra.mxu3 %v4686_v31  ;;  %1785 = vmatmul.f32.vlgmr.msra.gmra.mxu2 %v4674_v37  ;;  %v169_v37 = vld [vmem:[#allocation7 + $0x2a0] sm:$0xff]  ;;  %v6001_v30 = vand.u32 4294901760, %v4795_v50 }
  0xff   :  { %1839 = vmatpush.msrb.mxu0 %v1648_v58  ;;  %1935 = vmatpush.msrb.mxu2 %v4699_v62  ;;  %v170_v58 = vld [vmem:[#allocation7 + $0x2a8] sm:$0xff]  ;;  %v1991_v18 = vand.u32 4294901760, %v1990_v3  ;;  %v4835_v46 = vsub.f32 %v172_v27, %v4811_v38  ;;  %v4862_v3 = vand.u32 4294901760, %v168_v6 }
 0x100   :  { %1723 = vmatpush.msra.mxu1 %v1722_v41  ;;  %1820 = vmatpush.msra.mxu3 %v4705_v59  ;;  %v4825_v41 = vand.u32 4294901760, %v171_v25 }
 0x101   :  { %1824 = vmatmul.f32.vlgmr.msra.gmra.mxu3 %v5998_v28  ;;  %1843 = vmatpush.msrb.mxu0 %v5999_v35  ;;  %v4837_v35 = vand.u32 4294901760, %v170_v58  ;;  %v72_v28 = vld [vmem:[#allocation5 + $0x28] sm:$0xff] }
 0x102   :  { %1937 = vmatpush.msrb.mxu2 %v4718_v47  ;;  %1980 = vmatpush.msrb.mxu3 %v1979_v19  ;;  %v1997_v19 = vand.u32 4294901760, %v1996_v23  ;;  %v4847_v27 = vsub.f32 %v171_v25, %v4825_v41  ;;  %v166_v25 = vld [vmem:[#allocation7 + $0x288] sm:$0xff] }
 0x103   :  { %1729 = vmatpush.msra.mxu1 %v1728_v33  ;;  %1847 = vmatpush.msrb.mxu0 %v6000_v15  ;;  %v2008_v33 = vsub.f32 %v4795_v50, %v6001_v30  ;;  %v4849_v15 = vand.u32 4294901760, %v169_v37  ;;  %v4860_v30 = vsub.f32 %v170_v58, %v4837_v35  ;;  %v167_v50 = vld [vmem:[#allocation7 + $0x290] sm:$0xff] }
 0x104   :  { %1731 = vmatmul.f32.vlgmr.msra.gmra.mxu1 %v4647_v34  ;;  %1939 = vmatpush.msrb.mxu2 %v4735_v53  ;;  %v6002_v53 = vand.u32 4294901760, %v4584_v8  ;;  %v6004_v8 = vand.u32 4294901760, %v4605_v14  ;;  %v2031_v58 = vand.u32 4294901760, %v4847_v27  ;;  %v6006_v14 = vand.u32 4294901760, %v4618_v1 }
 0x105   :  { %1898 = vmatpush.msrb.mxu1 %v4516_v11  ;;  %1986 = vmatpush.msrb.mxu3 %v1985_v52  ;;  %v2003_v11 = vand.u32 4294901760, %v2002_v13  ;;  %v6003_v52 = vand.u32 4294901760, %v4809_v9  ;;  %v6005_v13 = vand.u32 4294901760, %v4823_v42  ;;  %v6008_v1 = vand.u32 4294901760, %v4631_v51 }
 0x106   :  { %1851 = vmatpush.msrb.mxu0 %v6002_v53  ;;  %1941 = vmatpush.msrb.mxu2 %v4740_v26  ;;  %v81_v53 = vmul.f32 %v72_v28, %v63_v61  ;;  %v4878_v61 = vand.u32 4294901760, %v167_v50  ;;  %v6007_v28 = vand.u32 4294901760, %v4835_v46 }
 0x107   :  { %1900 = vmatpush.msrb.mxu1 %v4523_v60  ;;  %1992 = vmatpush.msrb.mxu3 %v1991_v18  ;;  %v2014_v23 = vsub.f32 %v4809_v9, %v6003_v52  ;;  %v2009_v60 = vand.u32 4294901760, %v2008_v33  ;;  %v2020_v18 = vsub.f32 %v4823_v42, %v6005_v13  ;;  %v4873_v52 = vsub.f32 %v169_v37, %v4849_v15 }
 0x108   :  { %1855 = vmatpush.msrb.mxu0 %v6004_v8  ;;  %1943 = vmatpush.msrb.mxu2 %v4752_v0  ;;  %v2037_v33 = vand.u32 4294901760, %v4860_v30  ;;  %v4886_v37 = vsub.f32 %v168_v6, %v4862_v3  ;;  %v165_v8 = vld [vmem:[#allocation7 + $0x280] sm:$0xff]  ;;  %v4891_v13 = vand.u32 4294901760, %v166_v25  ;;  %v4904_v51 = vsub.f32 %v167_v50, %v4878_v61 }
 0x109   :  { %1902 = vmatpush.msrb.mxu1 %v4530_v43  ;;  %1998 = vmatpush.msrb.mxu3 %v1997_v19  ;;  %v2015_v43 = vand.u32 4294901760, %v2014_v23  ;;  %v2026_v19 = vsub.f32 %v4835_v46, %v6007_v28  ;;  %v2032_v23 = vsub.f32 %v4847_v27, %v2031_v58  ;;  %v2043_v6 = vand.u32 4294901760, %v4873_v52 }
 0x10a   :  { %1859 = vmatpush.msrb.mxu0 %v6006_v14  ;;  %1945 = vmatpush.msrb.mxu2 %v4769_v49  ;;  %v6009_v14 = vand.u32 4294901760, %v4643_v45  ;;  %v4906_v28 = vand.u32 4294901760, %v165_v8  ;;  %v6010_v45 = vand.u32 4294901760, %v4657_v7  ;;  %v4917_v50 = vsub.f32 %v166_v25, %v4891_v13 }
 0x10b   :  { %1904 = vmatpush.msrb.mxu1 %v4540_v21  ;;  %2004 = vmatpush.msrb.mxu3 %v2003_v11  ;;  %v4893_v21 = vand.u32 4294901760, %v81_v53  ;;  %v2021_v11 = vand.u32 4294901760, %v2020_v18  ;;  %v2049_v18 = vand.u32 4294901760, %v4886_v37  ;;  %v2055_v7 = vand.u32 4294901760, %v4904_v51 }
 0x10c   :  { %1863 = vmatpush.msrb.mxu0 %v6008_v1  ;;  %1947 = vmatpush.msrb.mxu2 %v4784_v32  ;;  %v4931_v25 = vsub.f32 %v165_v8, %v4906_v28 }
 0x10d   :  { %1906 = vmatpush.msrb.mxu1 %v4548_v17  ;;  %2010 = vmatpush.msrb.mxu3 %v2009_v60  ;;  %v2027_v17 = vand.u32 4294901760, %v2026_v19  ;;  %v2038_v60 = vsub.f32 %v4860_v30, %v2037_v33  ;;  %v4920_v1 = vsub.f32 %v81_v53, %v4893_v21  ;;  %v6011_v19 = vand.u32 4294901760, %v4669_v12 }
 0x10e   :  { %1867 = vmatpush.msrb.mxu0 %v6009_v14  ;;  %1949 = vmatpush.msrb.mxu2 %v4797_v10  ;;  %v2050_v53 = vsub.f32 %v4886_v37, %v2049_v18  ;;  %v2061_v12 = vand.u32 4294901760, %v4917_v50  ;;  %v2067_v14 = vand.u32 4294901760, %v4931_v25 }
 0x10f   :  { %1908 = vmatpush.msrb.mxu1 %v4559_v48  ;;  %2016 = vmatpush.msrb.mxu3 %v2015_v43  ;;  %v2033_v48 = vand.u32 4294901760, %v2032_v23  ;;  %v2044_v43 = vsub.f32 %v4873_v52, %v2043_v6  ;;  %v1968_v23 = vand.u32 4294901760, %v4920_v1 }
 0x110   :  { %1871 = vmatpush.msrb.mxu0 %v6010_v45  ;;  %1951 = vmatpush.msrb.mxu2 %v4811_v38  ;;  %v2068_v45 = vsub.f32 %v4931_v25, %v2067_v14 }
 0x111   :  { %1910 = vmatpush.msrb.mxu1 %v4578_v63  ;;  %2022 = vmatpush.msrb.mxu3 %v2021_v11  ;;  %v2039_v63 = vand.u32 4294901760, %v2038_v60  ;;  %v6012_v11 = vand.u32 4294901760, %v4682_v2  ;;  %v2045_v8 = vand.u32 4294901760, %v2044_v43  ;;  %v2056_v2 = vsub.f32 %v4904_v51, %v2055_v7  ;;  %v188_v43 = vld [vmem:[#allocation7 + $0x338] sm:$0xff] }
 0x112   :  { %1875 = vmatpush.msrb.mxu0 %v6011_v19  ;;  %1953 = vmatpush.msrb.mxu2 %v4825_v41  ;;  %v6014_v60 = vand.u32 4294901760, %v4711_v16 }
 0x113   :  { %1912 = vmatpush.msrb.mxu1 %v4591_v36  ;;  %2028 = vmatpush.msrb.mxu3 %v2027_v17  ;;  %v6013_v36 = vand.u32 4294901760, %v4694_v40  ;;  %v2051_v17 = vand.u32 4294901760, %v2050_v53  ;;  %v1969_v40 = vsub.f32 %v4920_v1, %v1968_v23  ;;  %v2057_v16 = vand.u32 4294901760, %v2056_v2  ;;  %v186_v2 = vld [vmem:[#allocation7 + $0x328] sm:$0xff] }
 0x114   :  { %1879 = vmatpush.msrb.mxu0 %v6012_v11  ;;  %1955 = vmatpush.msrb.mxu2 %v4837_v35 }
 0x115   :  { %1914 = vmatpush.msrb.mxu1 %v4602_v24  ;;  %2034 = vmatpush.msrb.mxu3 %v2033_v48  ;;  %v2062_v24 = vsub.f32 %v4917_v50, %v2061_v12 }
 0x116   :  { %1883 = vmatpush.msrb.mxu0 %v6013_v36  ;;  %1957 = vmatpush.msrb.mxu2 %v4849_v15  ;;  %v73_v36 = vld [vmem:[#allocation5 + $0x30] sm:$0xff] }
 0x117   :  { %1916 = vmatpush.msrb.mxu1 %v4615_v56  ;;  %2040 = vmatpush.msrb.mxu3 %v2039_v63  ;;  %v6015_v56 = vand.u32 4294901760, %v4733_v22  ;;  %v2063_v48 = vand.u32 4294901760, %v2062_v24  ;;  %v2069_v22 = vand.u32 4294901760, %v2068_v45  ;;  %v187_v63 = vld [vmem:[#allocation7 + $0x330] sm:$0xff]  ;;  %v5137_v45 = vand.u32 4294901760, %v186_v2 }
 0x118   :  { %1887 = vmatpush.msrb.mxu0 %v6014_v60  ;;  %1959 = vmatpush.msrb.mxu2 %v4862_v3  ;;  %v5125_v60 = vand.u32 4294901760, %v187_v63 }
 0x119   :  { %1918 = vmatpush.msrb.mxu1 %v4627_v5  ;;  %2046 = vmatpush.msrb.mxu3 %v2045_v8  ;;  %v1970_v5 = vand.u32 4294901760, %v1969_v40  ;;  %v185_v40 = vld [vmem:[#allocation7 + $0x320] sm:$0xff] }
 0x11a   :  { %1891 = vmatpush.msrb.mxu0 %v6015_v56  ;;  %1961 = vmatpush.msrb.mxu2 %v4878_v61 }
 0x11b   :  { %1920 = vmatpush.msrb.mxu1 %v4639_v20  ;;  %2052 = vmatpush.msrb.mxu3 %v2051_v17  ;;  %v6016_v20 = vand.u32 4294901760, %v4726_v54 }
 0x11c   :  { %1893 = vmatmul.f32.vlgmr.msrb.gmra.mxu0 %v4647_v34  ;;  %1963 = vmatpush.msrb.mxu2 %v4891_v13 }
 0x11d   :  { %2078 = vmatpush.msra.mxu0 %v4726_v54  ;;  %1922 = vmatpush.msrb.mxu1 %v4653_v4  ;;  %v6017_v4 = vand.u32 4294901760, %v4747_v39  ;;  %v6021_v54 = vld [vmem:[#allocation14_spill] sm:$0xff] }
 0x11e   :  { %2058 = vmatpush.msrb.mxu3 %v2057_v16  ;;  %1965 = vmatpush.msrb.mxu2 %v4906_v28 }
 0x11f   :  { %2081 = vmatpush.msra.mxu0 %v4747_v39  ;;  %1924 = vmatpush.msrb.mxu1 %v4665_v29  ;;  %v6018_v29 = vand.u32 4294901760, %v4757_v55  ;;  %v6020_v39 = vand.u32 4294901760, %v4765_v44 }
 0x120   :  { %2064 = vmatpush.msrb.mxu3 %v2063_v48  ;;  %1971 = vmatmul.f32.vlgmr.msrb.gmra.mxu2 %v1970_v5 }
 0x121   :  { %2084 = vmatpush.msra.mxu0 %v4757_v55  ;;  %2172 = vmatpush.msra.mxu2 %v6016_v20  ;;  %v6025_v55 = vand.u32 4294901760, %v4823_v42  ;;  %v5149_v20 = vand.u32 4294901760, %v185_v40 }
 0x122   :  { %1926 = vmatpush.msrb.mxu1 %v4686_v31  ;;  %2070 = vmatpush.msrb.mxu3 %v2069_v22  ;;  %v6019_v31 = vld [vmem:[#allocation13_spill] sm:$0xff] }
 0x123   :  { %2072 = vmatmul.f32.vlgmr.msrb.gmra.mxu3 %v4893_v21  ;;  %2087 = vmatpush.msra.mxu0 %v4765_v44 }
 0x124   :  { %2176 = vmatpush.msra.mxu2 %v6017_v4  ;;  %2239 = vmatpush.msra.mxu3 %v4699_v62 }
 0x125   :  { %1928 = vmatpush.msrb.mxu1 %v4705_v59  ;;  %2090 = vmatpush.msra.mxu0 %v4776_v57  ;;  %v6024_v59 = vand.u32 4294901760, %v4809_v9 }
 0x126   :  { %1930 = vmatmul.f32.vlgmr.msrb.gmra.mxu1 %v4647_v34  ;;  %2180 = vmatpush.msra.mxu2 %v6018_v29  ;;  %v6022_v34 = vand.u32 4294901760, %v4776_v57  ;;  %v196_v57 = vld [vmem:[#allocation7 + $0x378] sm:$0xff]  ;;  %v5153_v29 = vsub.f32 %v187_v63, %v5125_v60 }
 0x127   :  { %2131 = vmatpush.msra.mxu1 %v4699_v62  ;;  %2241 = vmatpush.msra.mxu3 %v4718_v47  ;;  %v6023_v62 = vand.u32 4294901760, %v6019_v31 }
 0x128   :  { %2093 = vmatpush.msra.mxu0 %v6019_v31  ;;  %2184 = vmatpush.msra.mxu2 %v6020_v39  ;;  %v183_v39 = vld [vmem:[#allocation7 + $0x310] sm:$0xff] }
 0x129   :  { %2133 = vmatpush.msra.mxu1 %v4718_v47  ;;  %2243 = vmatpush.msra.mxu3 %v6021_v54  ;;  %v6026_v47 = vand.u32 4294901760, %v4835_v46 }
 0x12a   :  { %2096 = vmatpush.msra.mxu0 %v4809_v9  ;;  %2188 = vmatpush.msra.mxu2 %v6022_v34  ;;  %v192_v9 = vld [vmem:[#allocation7 + $0x358] sm:$0xff] }
 0x12b   :  { %2135 = vmatpush.msra.mxu1 %v6021_v54  ;;  %2245 = vmatpush.msra.mxu3 %v4740_v26 }
 0x12c   :  { %2099 = vmatpush.msra.mxu0 %v4823_v42  ;;  %2192 = vmatpush.msra.mxu2 %v6023_v62  ;;  %v195_v42 = vld [vmem:[#allocation7 + $0x370] sm:$0xff] }
 0x12d   :  { %2137 = vmatpush.msra.mxu1 %v4740_v26  ;;  %2247 = vmatpush.msra.mxu3 %v4752_v0  ;;  %v194_v26 = vld [vmem:[#allocation7 + $0x368] sm:$0xff]  ;;  %v5033_v44 = vand.u32 4294901760, %v195_v42 }
 0x12e   :  { %2102 = vmatpush.msra.mxu0 %v4835_v46  ;;  %2196 = vmatpush.msra.mxu2 %v6024_v59  ;;  %v191_v46 = vld [vmem:[#allocation7 + $0x350] sm:$0xff] }
 0x12f   :  { %2139 = vmatpush.msra.mxu1 %v4752_v0  ;;  %2249 = vmatpush.msra.mxu3 %v4769_v49  ;;  %v5026_v0 = vand.u32 4294901760, %v196_v57 }
 0x130   :  { %2105 = vmatpush.msra.mxu0 %v4847_v27  ;;  %2200 = vmatpush.msra.mxu2 %v6025_v55  ;;  %v5058_v27 = vand.u32 4294901760, %v192_v9  ;;  %v5167_v55 = vsub.f32 %v186_v2, %v5137_v45 }
 0x131   :  { %2141 = vmatpush.msra.mxu1 %v4769_v49  ;;  %2251 = vmatpush.msra.mxu3 %v4784_v32  ;;  %v193_v49 = vld [vmem:[#allocation7 + $0x360] sm:$0xff] }
 0x132   :  { %2108 = vmatpush.msra.mxu0 %v4860_v30  ;;  %2204 = vmatpush.msra.mxu2 %v6026_v47 }
 0x133   :  { %2143 = vmatpush.msra.mxu1 %v4784_v32  ;;  %2253 = vmatpush.msra.mxu3 %v4797_v10  ;;  %v5040_v32 = vand.u32 4294901760, %v194_v26 }
 0x134   :  { %2111 = vmatpush.msra.mxu0 %v4873_v52  ;;  %2208 = vmatpush.msra.mxu2 %v2031_v58  ;;  %v5069_v58 = vand.u32 4294901760, %v191_v46  ;;  %v190_v52 = vld [vmem:[#allocation7 + $0x348] sm:$0xff] }
 0x135   :  { %2145 = vmatpush.msra.mxu1 %v4797_v10  ;;  %2255 = vmatpush.msra.mxu3 %v4811_v38  ;;  %v5043_v10 = vsub.f32 %v196_v57, %v5026_v0  ;;  %v5064_v30 = vsub.f32 %v194_v26, %v5040_v32  ;;  %v5909_v26 = vand.u32 4294901760, %v5153_v29 }
 0x136   :  { %2114 = vmatpush.msra.mxu0 %v4886_v37  ;;  %2212 = vmatpush.msra.mxu2 %v2037_v33  ;;  %v5081_v37 = vsub.f32 %v192_v9, %v5058_v27  ;;  %v182_v9 = vld [vmem:[#allocation7 + $0x308] sm:$0xff] }
 0x137   :  { %2147 = vmatpush.msra.mxu1 %v4811_v38  ;;  %2257 = vmatpush.msra.mxu3 %v4825_v41  ;;  %v5050_v38 = vand.u32 4294901760, %v193_v49  ;;  %v5196_v63 = vand.u32 4294901760, %v182_v9 }
 0x138   :  { %2117 = vmatpush.msra.mxu0 %v4904_v51  ;;  %2216 = vmatpush.msra.mxu2 %v2043_v6  ;;  %v189_v6 = vld [vmem:[#allocation7 + $0x340] sm:$0xff]  ;;  %v5088_v51 = vand.u32 4294901760, %v190_v52 }
 0x139   :  { %2149 = vmatpush.msra.mxu1 %v4825_v41  ;;  %2259 = vmatpush.msra.mxu3 %v4837_v35  ;;  %v5053_v41 = vsub.f32 %v195_v42, %v5033_v44  ;;  %v5075_v33 = vsub.f32 %v193_v49, %v5050_v38  ;;  %v5101_v19 = vand.u32 4294901760, %v189_v6  ;;  %v5175_v42 = vand.u32 4294901760, %v183_v39 }
 0x13a   :  { %2120 = vmatpush.msra.mxu0 %v4917_v50  ;;  %2220 = vmatpush.msra.mxu2 %v2049_v18  ;;  %v2330_v18 = vand.u32 4294901760, %v5064_v30  ;;  %v5094_v50 = vsub.f32 %v191_v46, %v5069_v58  ;;  %v5115_v8 = vsub.f32 %v190_v52, %v5088_v51  ;;  %v5179_v49 = vsub.f32 %v185_v40, %v5149_v20 }
 0x13b   :  { %2151 = vmatpush.msra.mxu1 %v4837_v35  ;;  %2261 = vmatpush.msra.mxu3 %v4849_v15  ;;  %v2318_v35 = vand.u32 4294901760, %v5043_v10  ;;  %v5128_v24 = vsub.f32 %v189_v6, %v5101_v19  ;;  %v5204_v2 = vsub.f32 %v183_v39, %v5175_v42 }
 0x13c   :  { %2123 = vmatpush.msra.mxu0 %v4931_v25  ;;  %2224 = vmatpush.msra.mxu2 %v2055_v7  ;;  %v5918_v7 = vand.u32 4294901760, %v5075_v33  ;;  %v5915_v25 = vand.u32 4294901760, %v5081_v37  ;;  %v2331_v11 = vsub.f32 %v5064_v30, %v2330_v18  ;;  %v5912_v48 = vand.u32 4294901760, %v5115_v8 }
 0x13d   :  { %2153 = vmatpush.msra.mxu1 %v4849_v15  ;;  %2263 = vmatpush.msra.mxu3 %v4862_v3  ;;  %v2324_v15 = vand.u32 4294901760, %v5053_v41  ;;  %v5911_v4 = vand.u32 4294901760, %v5128_v24 }
 0x13e   :  { %2126 = vmatmul.f32.vlgmr.msra.gmra.mxu0 %v4920_v1  ;;  %2228 = vmatpush.msra.mxu2 %v2061_v12  ;;  %v5112_v12 = vand.u32 4294901760, %v188_v43  ;;  %v2337_v17 = vsub.f32 %v5075_v33, %v5918_v7  ;;  %v2332_v16 = vand.u32 4294901760, %v2331_v11  ;;  %v2355_v34 = vsub.f32 %v5115_v8, %v5912_v48  ;;  %v204_v7 = vld [vmem:[#allocation7 + $0x3b8] sm:$0xff] }
 0x13f   :  { %2276 = vmatpush.msrb.mxu0 %v5026_v0  ;;  %2155 = vmatpush.msra.mxu1 %v4862_v3  ;;  %v2319_v3 = vsub.f32 %v5043_v10, %v2318_v35  ;;  %v2361_v57 = vsub.f32 %v5128_v24, %v5911_v4 }
 0x140   :  { %2265 = vmatpush.msra.mxu3 %v4878_v61  ;;  %2232 = vmatpush.msra.mxu2 %v2067_v14  ;;  %v5141_v5 = vsub.f32 %v188_v43, %v5112_v12  ;;  %v2338_v22 = vand.u32 4294901760, %v2337_v17  ;;  %v2356_v52 = vand.u32 4294901760, %v2355_v34  ;;  %v5913_v34 = vand.u32 4294901760, %v5204_v2 }
 0x141   :  { %2278 = vmatpush.msrb.mxu0 %v5033_v44  ;;  %2157 = vmatpush.msra.mxu1 %v4878_v61  ;;  %v2325_v61 = vsub.f32 %v5053_v41, %v2324_v15  ;;  %v2320_v53 = vand.u32 4294901760, %v2319_v3  ;;  %v5907_v3 = vand.u32 4294901760, %v5167_v55  ;;  %v2362_v11 = vand.u32 4294901760, %v2361_v57  ;;  %v209_v57 = vld [vmem:[#allocation7 + $0x3e0] sm:$0xff] }
 0x142   :  { %2267 = vmatpush.msra.mxu3 %v4891_v13  ;;  %2234 = vmatmul.f32.vlgmr.msra.gmra.mxu2 %v4893_v21  ;;  %v5910_v59 = vand.u32 4294901760, %v5141_v5 }
 0x143   :  { %2280 = vmatpush.msrb.mxu0 %v5040_v32  ;;  %2419 = vmatpush.msrb.mxu2 %v5043_v10  ;;  %v2326_v14 = vand.u32 4294901760, %v2325_v61  ;;  %v212_v61 = vld [vmem:[#allocation7 + $0x3f8] sm:$0xff] }
 0x144   :  { %2159 = vmatpush.msra.mxu1 %v4891_v13  ;;  %2269 = vmatpush.msra.mxu3 %v4906_v28  ;;  %v64_v13 = vld [vmem:[#allocation2 + $0x30] sm:$0xff]  ;;  %v2367_v6 = vsub.f32 %v5141_v5, %v5910_v59  ;;  %v5209_v17 = vand.u32 4294901760, %v212_v61 }
 0x145   :  { %2271 = vmatmul.f32.vlgmr.msra.gmra.mxu3 %v4893_v21  ;;  %2282 = vmatpush.msrb.mxu0 %v5050_v38  ;;  %v5914_v21 = vand.u32 4294901760, %v5094_v50  ;;  %v82_v56 = vmul.f32 %v73_v36, %v64_v13  ;;  %v2373_v13 = vsub.f32 %v5153_v29, %v5909_v26  ;;  %v5906_v36 = vand.u32 4294901760, %v5179_v49 }
 0x146   :  { %2422 = vmatpush.msrb.mxu2 %v5053_v41  ;;  %2472 = vmatpush.msrb.mxu3 %v5026_v0  ;;  %v2368_v40 = vand.u32 4294901760, %v2367_v6 }
 0x147   :  { %2161 = vmatpush.msra.mxu1 %v4906_v28  ;;  %2284 = vmatpush.msrb.mxu0 %v5058_v27  ;;  %v2343_v28 = vsub.f32 %v5081_v37, %v5915_v25  ;;  %v2349_v1 = vsub.f32 %v5094_v50, %v5914_v21  ;;  %v5157_v54 = vand.u32 4294901760, %v82_v56  ;;  %v2385_v39 = vsub.f32 %v5179_v49, %v5906_v36 }
 0x148   :  { %2165 = vmatmul.f32.vlgmr.msra.gmra.mxu1 %v1968_v23  ;;  %2425 = vmatpush.msrb.mxu2 %v5064_v30  ;;  %v184_v23 = vld [vmem:[#allocation7 + $0x318] sm:$0xff] }
 0x149   :  { %2321 = vmatpush.msrb.mxu1 %v2320_v53  ;;  %2474 = vmatpush.msrb.mxu3 %v5033_v44  ;;  %v2344_v31 = vand.u32 4294901760, %v2343_v28  ;;  %v5163_v62 = vand.u32 4294901760, %v184_v23  ;;  %v2350_v47 = vand.u32 4294901760, %v2349_v1  ;;  %v5184_v46 = vsub.f32 %v82_v56, %v5157_v54  ;;  %v181_v53 = vld [vmem:[#allocation7 + $0x300] sm:$0xff]  ;;  %v211_v28 = vld [vmem:[#allocation7 + $0x3f0] sm:$0xff] }
 0x14a   :  { %2286 = vmatpush.msrb.mxu0 %v5069_v58  ;;  %2428 = vmatpush.msrb.mxu2 %v5075_v33  ;;  %v2379_v56 = vsub.f32 %v5167_v55, %v5907_v3  ;;  %v208_v3 = vld [vmem:[#allocation7 + $0x3d8] sm:$0xff] }
 0x14b   :  { %2327 = vmatpush.msrb.mxu1 %v2326_v14  ;;  %2476 = vmatpush.msrb.mxu3 %v5040_v32  ;;  %v5192_v43 = vsub.f32 %v184_v23, %v5163_v62  ;;  %v5920_v14 = vand.u32 4294901760, %v5184_v46  ;;  %v5221_v23 = vsub.f32 %v182_v9, %v5196_v63  ;;  %v5262_v4 = vand.u32 4294901760, %v208_v3 }
 0x14c   :  { %2288 = vmatpush.msrb.mxu0 %v5088_v51  ;;  %2431 = vmatpush.msrb.mxu2 %v5081_v37  ;;  %v2380_v6 = vand.u32 4294901760, %v2379_v56  ;;  %v2386_v56 = vand.u32 4294901760, %v2385_v39 }
 0x14d   :  { %2333 = vmatpush.msrb.mxu1 %v2332_v16  ;;  %2478 = vmatpush.msrb.mxu3 %v5050_v38  ;;  %v5215_v16 = vand.u32 4294901760, %v181_v53  ;;  %v5908_v1 = vand.u32 4294901760, %v5192_v43  ;;  %v2310_v9 = vsub.f32 %v5184_v46, %v5920_v14  ;;  %v203_v14 = vld [vmem:[#allocation7 + $0x3b0] sm:$0xff] }
 0x14e   :  { %2290 = vmatpush.msrb.mxu0 %v5101_v19  ;;  %2434 = vmatpush.msrb.mxu2 %v5094_v50 }
 0x14f   :  { %2339 = vmatpush.msrb.mxu1 %v2338_v22  ;;  %2480 = vmatpush.msrb.mxu3 %v5058_v27  ;;  %v210_v22 = vld [vmem:[#allocation7 + $0x3e8] sm:$0xff]  ;;  %v2311_v26 = vand.u32 4294901760, %v2310_v9 }
 0x150   :  { %2292 = vmatpush.msrb.mxu0 %v5112_v12  ;;  %2437 = vmatpush.msrb.mxu2 %v5115_v8  ;;  %v5245_v36 = vand.u32 4294901760, %v210_v22 }
 0x151   :  { %2345 = vmatpush.msrb.mxu1 %v2344_v31  ;;  %2482 = vmatpush.msrb.mxu3 %v5069_v58  ;;  %v2374_v31 = vand.u32 4294901760, %v2373_v13  ;;  %v5243_v13 = vsub.f32 %v181_v53, %v5215_v16  ;;  %v2397_v53 = vsub.f32 %v5204_v2, %v5913_v34 }
 0x152   :  { %2294 = vmatpush.msrb.mxu0 %v5125_v60  ;;  %2440 = vmatpush.msrb.mxu2 %v5128_v24  ;;  %6027 = vst [vmem:[#allocation12_spill] sm:$0xff] %v5245_v36  ;;  %v5267_v34 = vsub.f32 %v210_v22, %v5245_v36 }
 0x153   :  { %2351 = vmatpush.msrb.mxu1 %v2350_v47  ;;  %2484 = vmatpush.msrb.mxu3 %v5088_v51  ;;  %v5228_v47 = vand.u32 4294901760, %v211_v28  ;;  %v5919_v48 = vand.u32 4294901760, %v5243_v13 }
 0x154   :  { %2296 = vmatpush.msrb.mxu0 %v5137_v45  ;;  %2443 = vmatpush.msrb.mxu2 %v5141_v5 }
 0x155   :  { %2357 = vmatpush.msrb.mxu1 %v2356_v52  ;;  %2486 = vmatpush.msrb.mxu3 %v5101_v19  ;;  %v5236_v52 = vsub.f32 %v212_v61, %v5209_v17  ;;  %v5916_v61 = vand.u32 4294901760, %v5221_v23 }
 0x156   :  { %2298 = vmatpush.msrb.mxu0 %v5149_v20  ;;  %2446 = vmatpush.msrb.mxu2 %v5153_v29 }
 0x157   :  { %2363 = vmatpush.msrb.mxu1 %v2362_v11  ;;  %2488 = vmatpush.msrb.mxu3 %v5112_v12  ;;  %v2391_v11 = vsub.f32 %v5192_v43, %v5908_v1  ;;  %v5257_v1 = vsub.f32 %v211_v28, %v5228_v47  ;;  %v5917_v59 = vand.u32 4294901760, %v5236_v52  ;;  %v2403_v28 = vsub.f32 %v5221_v23, %v5916_v61 }
 0x158   :  { %2300 = vmatpush.msrb.mxu0 %v5163_v62  ;;  %2449 = vmatpush.msrb.mxu2 %v5167_v55  ;;  %v5286_v61 = vsub.f32 %v208_v3, %v5262_v4 }
 0x159   :  { %2369 = vmatpush.msrb.mxu1 %v2368_v40  ;;  %2490 = vmatpush.msrb.mxu3 %v5125_v60  ;;  %v5250_v40 = vand.u32 4294901760, %v209_v57  ;;  %v2392_v39 = vand.u32 4294901760, %v2391_v11  ;;  %v2398_v11 = vand.u32 4294901760, %v2397_v53  ;;  %v5922_v21 = vand.u32 4294901760, %v5257_v1 }
 0x15a   :  { %2302 = vmatpush.msrb.mxu0 %v5175_v42  ;;  %2452 = vmatpush.msrb.mxu2 %v5179_v49  ;;  %v2660_v25 = vsub.f32 %v5236_v52, %v5917_v59  ;;  %v2404_v59 = vand.u32 4294901760, %v2403_v28 }
 0x15b   :  { %2375 = vmatpush.msrb.mxu1 %v2374_v31  ;;  %2492 = vmatpush.msrb.mxu3 %v5137_v45  ;;  %v207_v31 = vld [vmem:[#allocation7 + $0x3d0] sm:$0xff]  ;;  %v5275_v9 = vsub.f32 %v209_v57, %v5250_v40  ;;  %v205_v57 = vld [vmem:[#allocation7 + $0x3c0] sm:$0xff]  ;;  %v2666_v10 = vsub.f32 %v5257_v1, %v5922_v21 }
 0x15c   :  { %2304 = vmatpush.msrb.mxu0 %v5196_v63  ;;  %2455 = vmatpush.msrb.mxu2 %v5192_v43  ;;  %v5279_v22 = vand.u32 4294901760, %v207_v31  ;;  %v2661_v28 = vand.u32 4294901760, %v2660_v25  ;;  %v6029_v25 = vand.u32 4294901760, %v5184_v46 }
 0x15d   :  { %2381 = vmatpush.msrb.mxu1 %v2380_v6  ;;  %2494 = vmatpush.msrb.mxu3 %v5149_v20  ;;  %v206_v6 = vld [vmem:[#allocation7 + $0x3c8] sm:$0xff]  ;;  %v5923_v3 = vand.u32 4294901760, %v5275_v9 }
 0x15e   :  { %2306 = vmatpush.msrb.mxu0 %v5215_v16  ;;  %2458 = vmatpush.msrb.mxu2 %v5204_v2  ;;  %v5294_v53 = vand.u32 4294901760, %v206_v6 }
 0x15f   :  { %2387 = vmatpush.msrb.mxu1 %v2386_v56  ;;  %2496 = vmatpush.msrb.mxu3 %v5163_v62  ;;  %v2409_v56 = vsub.f32 %v5243_v13, %v5919_v48  ;;  %v5924_v48 = vand.u32 4294901760, %v5286_v61  ;;  %v2678_v30 = vsub.f32 %v5275_v9, %v5923_v3 }
 0x160   :  { %2312 = vmatmul.f32.vlgmr.msrb.gmra.mxu0 %v2311_v26  ;;  %2461 = vmatpush.msrb.mxu2 %v5221_v23  ;;  %v5921_v26 = vand.u32 4294901760, %v5267_v34 }
 0x161   :  { %2513 = vmatpush.msra.mxu0 %v2318_v35  ;;  %2393 = vmatpush.msrb.mxu1 %v2392_v39  ;;  %v5305_v35 = vsub.f32 %v207_v31, %v5279_v22  ;;  %v5307_v39 = vand.u32 4294901760, %v205_v57  ;;  %v2410_v41 = vand.u32 4294901760, %v2409_v56  ;;  %v5319_v31 = vsub.f32 %v206_v6, %v5294_v53  ;;  %v200_v6 = vld [vmem:[#allocation7 + $0x398] sm:$0xff] }
 0x162   :  { %2498 = vmatpush.msrb.mxu3 %v5175_v42  ;;  %2464 = vmatpush.msrb.mxu2 %v5243_v13  ;;  %v6030_v56 = vand.u32 4294901760, %v5075_v33  ;;  %v2684_v3 = vsub.f32 %v5286_v61, %v5924_v48  ;;  %v6031_v33 = vand.u32 4294901760, %v5081_v37  ;;  %v65_v48 = vld [vmem:[#allocation2 + $0x38] sm:$0xff] }
 0x163   :  { %2517 = vmatpush.msra.mxu0 %v2324_v15  ;;  %2399 = vmatpush.msrb.mxu1 %v2398_v11  ;;  %6028 = vst [vmem:[#allocation15_spill] sm:$0xff] %v5305_v35  ;;  %v2672_v15 = vsub.f32 %v5267_v34, %v5921_v26  ;;  %v5321_v11 = vand.u32 4294901760, %v204_v7  ;;  %v2667_v26 = vand.u32 4294901760, %v2666_v10  ;;  %v5333_v21 = vsub.f32 %v205_v57, %v5307_v39 }
 0x164   :  { %2500 = vmatpush.msrb.mxu3 %v5196_v63  ;;  %2467 = vmatmul.f32.vlgmr.msrb.gmra.mxu2 %v5184_v46  ;;  %v201_v46 = vld [vmem:[#allocation7 + $0x3a0] sm:$0xff]  ;;  %v6032_v37 = vand.u32 4294901760, %v5305_v35 }
 0x165   :  { %2521 = vmatpush.msra.mxu0 %v2330_v18  ;;  %2617 = vmatpush.msra.mxu2 %v5209_v17  ;;  %v202_v18 = vld [vmem:[#allocation7 + $0x3a8] sm:$0xff]  ;;  %v2673_v10 = vand.u32 4294901760, %v2672_v15  ;;  %v5345_v57 = vsub.f32 %v204_v7, %v5321_v11  ;;  %v5372_v15 = vand.u32 4294901760, %v200_v6 }
 0x166   :  { %2405 = vmatpush.msrb.mxu1 %v2404_v59  ;;  %2502 = vmatpush.msrb.mxu3 %v5215_v16  ;;  %v5335_v59 = vand.u32 4294901760, %v203_v14 }
 0x167   :  { %2506 = vmatmul.f32.vlgmr.msrb.gmra.mxu3 %v6029_v25  ;;  %2525 = vmatpush.msra.mxu0 %v6030_v56  ;;  %v5347_v56 = vand.u32 4294901760, %v202_v18  ;;  %v74_v25 = vld [vmem:[#allocation5 + $0x38] sm:$0xff] }
 0x168   :  { %2619 = vmatpush.msra.mxu2 %v5228_v47  ;;  %2662 = vmatpush.msra.mxu3 %v2661_v28  ;;  %v2679_v28 = vand.u32 4294901760, %v2678_v30  ;;  %v5357_v7 = vsub.f32 %v203_v14, %v5335_v59  ;;  %v198_v14 = vld [vmem:[#allocation7 + $0x388] sm:$0xff] }
 0x169   :  { %2411 = vmatpush.msrb.mxu1 %v2410_v41  ;;  %2529 = vmatpush.msra.mxu0 %v6031_v33  ;;  %v2690_v41 = vsub.f32 %v5305_v35, %v6032_v37  ;;  %v5359_v33 = vand.u32 4294901760, %v201_v46  ;;  %v5370_v37 = vsub.f32 %v202_v18, %v5347_v56  ;;  %v199_v35 = vld [vmem:[#allocation7 + $0x390] sm:$0xff] }
 0x16a   :  { %2413 = vmatmul.f32.vlgmr.msrb.gmra.mxu1 %v5157_v54  ;;  %2621 = vmatpush.msra.mxu2 %v5245_v36  ;;  %v6033_v36 = vand.u32 4294901760, %v5094_v50  ;;  %v6035_v50 = vand.u32 4294901760, %v5115_v8  ;;  %v2713_v18 = vand.u32 4294901760, %v5357_v7  ;;  %v6037_v8 = vand.u32 4294901760, %v5128_v24 }
 0x16b   :  { %2580 = vmatpush.msra.mxu1 %v5026_v0  ;;  %2668 = vmatpush.msra.mxu3 %v2667_v26  ;;  %v2685_v0 = vand.u32 4294901760, %v2684_v3  ;;  %v6034_v26 = vand.u32 4294901760, %v5319_v31  ;;  %v6036_v3 = vand.u32 4294901760, %v5333_v21  ;;  %v6039_v24 = vand.u32 4294901760, %v5141_v5 }
 0x16c   :  { %2533 = vmatpush.msra.mxu0 %v6033_v36  ;;  %2623 = vmatpush.msra.mxu2 %v5250_v40  ;;  %v83_v36 = vmul.f32 %v74_v25, %v65_v48  ;;  %v5388_v48 = vand.u32 4294901760, %v199_v35  ;;  %v6038_v25 = vand.u32 4294901760, %v5345_v57 }
 0x16d   :  { %2582 = vmatpush.msra.mxu1 %v5033_v44  ;;  %2674 = vmatpush.msra.mxu3 %v2673_v10  ;;  %v2696_v30 = vsub.f32 %v5319_v31, %v6034_v26  ;;  %v2691_v44 = vand.u32 4294901760, %v2690_v41  ;;  %v2702_v10 = vsub.f32 %v5333_v21, %v6036_v3  ;;  %v5383_v26 = vsub.f32 %v201_v46, %v5359_v33 }
 0x16e   :  { %2537 = vmatpush.msra.mxu0 %v6035_v50  ;;  %2625 = vmatpush.msra.mxu2 %v5262_v4  ;;  %v2719_v41 = vand.u32 4294901760, %v5370_v37  ;;  %v5396_v46 = vsub.f32 %v200_v6, %v5372_v15  ;;  %v197_v50 = vld [vmem:[#allocation7 + $0x380] sm:$0xff]  ;;  %v5401_v3 = vand.u32 4294901760, %v198_v14  ;;  %v5414_v5 = vsub.f32 %v199_v35, %v5388_v48 }
 0x16f   :  { %2584 = vmatpush.msra.mxu1 %v5040_v32  ;;  %2680 = vmatpush.msra.mxu3 %v2679_v28  ;;  %v2697_v32 = vand.u32 4294901760, %v2696_v30  ;;  %v2708_v28 = vsub.f32 %v5345_v57, %v6038_v25  ;;  %v2714_v30 = vsub.f32 %v5357_v7, %v2713_v18  ;;  %v2725_v6 = vand.u32 4294901760, %v5383_v26 }
 0x170   :  { %2541 = vmatpush.msra.mxu0 %v6037_v8  ;;  %2627 = vmatpush.msra.mxu2 %v5279_v22  ;;  %v6040_v8 = vand.u32 4294901760, %v5153_v29  ;;  %v5416_v25 = vand.u32 4294901760, %v197_v50  ;;  %v6041_v29 = vand.u32 4294901760, %v5167_v55  ;;  %v5427_v35 = vsub.f32 %v198_v14, %v5401_v3 }
 0x171   :  { %2586 = vmatpush.msra.mxu1 %v5050_v38  ;;  %2686 = vmatpush.msra.mxu3 %v2685_v0  ;;  %v5403_v38 = vand.u32 4294901760, %v83_v36  ;;  %v2703_v0 = vand.u32 4294901760, %v2702_v10  ;;  %v2731_v10 = vand.u32 4294901760, %v5396_v46  ;;  %v2737_v55 = vand.u32 4294901760, %v5414_v5 }
 0x172   :  { %2545 = vmatpush.msra.mxu0 %v6039_v24  ;;  %2629 = vmatpush.msra.mxu2 %v5294_v53  ;;  %v5441_v14 = vsub.f32 %v197_v50, %v5416_v25 }
 0x173   :  { %2588 = vmatpush.msra.mxu1 %v5058_v27  ;;  %2692 = vmatpush.msra.mxu3 %v2691_v44  ;;  %v2709_v27 = vand.u32 4294901760, %v2708_v28  ;;  %v2720_v44 = vsub.f32 %v5370_v37, %v2719_v41  ;;  %v5430_v24 = vsub.f32 %v83_v36, %v5403_v38  ;;  %v6042_v28 = vand.u32 4294901760, %v5179_v49 }
 0x174   :  { %2549 = vmatpush.msra.mxu0 %v6040_v8  ;;  %2631 = vmatpush.msra.mxu2 %v5307_v39  ;;  %v2732_v36 = vsub.f32 %v5396_v46, %v2731_v10  ;;  %v2743_v49 = vand.u32 4294901760, %v5427_v35  ;;  %v2749_v8 = vand.u32 4294901760, %v5441_v14 }
 0x175   :  { %2590 = vmatpush.msra.mxu1 %v5069_v58  ;;  %2698 = vmatpush.msra.mxu3 %v2697_v32  ;;  %v2715_v58 = vand.u32 4294901760, %v2714_v30  ;;  %v2726_v32 = vsub.f32 %v5383_v26, %v2725_v6  ;;  %v2650_v30 = vand.u32 4294901760, %v5430_v24 }
 0x176   :  { %2553 = vmatpush.msra.mxu0 %v6041_v29  ;;  %2633 = vmatpush.msra.mxu2 %v5321_v11  ;;  %v2750_v29 = vsub.f32 %v5441_v14, %v2749_v8 }
 0x177   :  { %2592 = vmatpush.msra.mxu1 %v5088_v51  ;;  %2704 = vmatpush.msra.mxu3 %v2703_v0  ;;  %v2721_v51 = vand.u32 4294901760, %v2720_v44  ;;  %v6043_v0 = vand.u32 4294901760, %v5192_v43  ;;  %v2727_v50 = vand.u32 4294901760, %v2726_v32  ;;  %v2738_v43 = vsub.f32 %v5414_v5, %v2737_v55  ;;  %v220_v32 = vld [vmem:[#allocation7 + $0x438] sm:$0xff] }
 0x178   :  { %2557 = vmatpush.msra.mxu0 %v6042_v28  ;;  %2635 = vmatpush.msra.mxu2 %v5335_v59  ;;  %v6045_v44 = vand.u32 4294901760, %v5221_v23 }
 0x179   :  { %2594 = vmatpush.msra.mxu1 %v5101_v19  ;;  %2710 = vmatpush.msra.mxu3 %v2709_v27  ;;  %v6044_v19 = vand.u32 4294901760, %v5204_v2  ;;  %v2733_v27 = vand.u32 4294901760, %v2732_v36  ;;  %v2651_v2 = vsub.f32 %v5430_v24, %v2650_v30  ;;  %v2739_v23 = vand.u32 4294901760, %v2738_v43 }
 0x17a   :  { %2561 = vmatpush.msra.mxu0 %v6043_v0  ;;  %2637 = vmatpush.msra.mxu2 %v5347_v56 }
 0x17b   :  { %2596 = vmatpush.msra.mxu1 %v5112_v12  ;;  %2716 = vmatpush.msra.mxu3 %v2715_v58  ;;  %v2744_v12 = vsub.f32 %v5427_v35, %v2743_v49 }
 0x17c   :  { %2565 = vmatpush.msra.mxu0 %v6044_v19  ;;  %2639 = vmatpush.msra.mxu2 %v5359_v33  ;;  %v75_v19 = vld [vmem:[#allocation5 + $0x40] sm:$0xff] }
 0x17d   :  { %2598 = vmatpush.msra.mxu1 %v5125_v60  ;;  %2722 = vmatpush.msra.mxu3 %v2721_v51  ;;  %v6046_v60 = vand.u32 4294901760, %v5243_v13  ;;  %v2745_v58 = vand.u32 4294901760, %v2744_v12  ;;  %v2751_v13 = vand.u32 4294901760, %v2750_v29  ;;  %v219_v51 = vld [vmem:[#allocation7 + $0x430] sm:$0xff] }
 0x17e   :  { %2569 = vmatpush.msra.mxu0 %v6045_v44  ;;  %2641 = vmatpush.msra.mxu2 %v5372_v15  ;;  %v5635_v44 = vand.u32 4294901760, %v219_v51 }
 0x17f   :  { %2600 = vmatpush.msra.mxu1 %v5137_v45  ;;  %2728 = vmatpush.msra.mxu3 %v2727_v50  ;;  %v2652_v45 = vand.u32 4294901760, %v2651_v2 }
 0x180   :  { %2573 = vmatpush.msra.mxu0 %v6046_v60  ;;  %2643 = vmatpush.msra.mxu2 %v5388_v48 }
 0x181   :  { %2602 = vmatpush.msra.mxu1 %v5149_v20  ;;  %2734 = vmatpush.msra.mxu3 %v2733_v27  ;;  %v6047_v20 = vand.u32 4294901760, %v5236_v52 }
 0x182   :  { %2575 = vmatmul.f32.vlgmr.msra.gmra.mxu0 %v5157_v54  ;;  %2645 = vmatpush.msra.mxu2 %v5401_v3 }
 0x183   :  { %2760 = vmatpush.msrb.mxu0 %v5236_v52  ;;  %2604 = vmatpush.msra.mxu1 %v5163_v62  ;;  %v6048_v62 = vand.u32 4294901760, %v5257_v1  ;;  %v6052_v52 = vld [vmem:[#allocation12_spill] sm:$0xff] }
 0x184   :  { %2740 = vmatpush.msra.mxu3 %v2739_v23  ;;  %2647 = vmatpush.msra.mxu2 %v5416_v25 }
 0x185   :  { %2763 = vmatpush.msrb.mxu0 %v5257_v1  ;;  %2606 = vmatpush.msra.mxu1 %v5175_v42  ;;  %v6049_v42 = vand.u32 4294901760, %v5267_v34  ;;  %v6051_v1 = vand.u32 4294901760, %v5275_v9 }
 0x186   :  { %2746 = vmatpush.msra.mxu3 %v2745_v58  ;;  %2653 = vmatmul.f32.vlgmr.msra.gmra.mxu2 %v2652_v45 }
 0x187   :  { %2766 = vmatpush.msrb.mxu0 %v5267_v34  ;;  %2854 = vmatpush.msrb.mxu2 %v6047_v20  ;;  %v6056_v34 = vand.u32 4294901760, %v5333_v21 }
 0x188   :  { %2608 = vmatpush.msra.mxu1 %v5196_v63  ;;  %2752 = vmatpush.msra.mxu3 %v2751_v13  ;;  %v6050_v63 = vld [vmem:[#allocation15_spill] sm:$0xff] }
 0x189   :  { %2754 = vmatmul.f32.vlgmr.msra.gmra.mxu3 %v5403_v38  ;;  %2769 = vmatpush.msrb.mxu0 %v5275_v9 }
 0x18a   :  { %2858 = vmatpush.msrb.mxu2 %v6048_v62  ;;  %2921 = vmatpush.msrb.mxu3 %v5209_v17 }
 0x18b   :  { %2610 = vmatpush.msra.mxu1 %v5215_v16  ;;  %2772 = vmatpush.msrb.mxu0 %v5286_v61  ;;  %v6055_v16 = vand.u32 4294901760, %v5319_v31 }
 0x18c   :  { %2612 = vmatmul.f32.vlgmr.msra.gmra.mxu1 %v5157_v54  ;;  %2862 = vmatpush.msrb.mxu2 %v6049_v42  ;;  %v6053_v54 = vand.u32 4294901760, %v5286_v61  ;;  %v228_v61 = vld [vmem:[#allocation7 + $0x478] sm:$0xff]  ;;  %v5663_v42 = vsub.f32 %v219_v51, %v5635_v44  ;;  %v213_v51 = vld [vmem:[#allocation7 + $0x400] sm:$0xff] }
 0x18d   :  { %2813 = vmatpush.msrb.mxu1 %v5209_v17  ;;  %2923 = vmatpush.msrb.mxu3 %v5228_v47  ;;  %v6054_v17 = vand.u32 4294901760, %v6050_v63 }
 0x18e   :  { %2775 = vmatpush.msrb.mxu0 %v6050_v63  ;;  %2866 = vmatpush.msrb.mxu2 %v6051_v1  ;;  %v215_v1 = vld [vmem:[#allocation7 + $0x410] sm:$0xff] }
 0x18f   :  { %2815 = vmatpush.msrb.mxu1 %v5228_v47  ;;  %2925 = vmatpush.msrb.mxu3 %v6052_v52  ;;  %v6057_v47 = vand.u32 4294901760, %v5345_v57 }
 0x190   :  { %2778 = vmatpush.msrb.mxu0 %v5319_v31  ;;  %2870 = vmatpush.msrb.mxu2 %v6053_v54  ;;  %v224_v31 = vld [vmem:[#allocation7 + $0x458] sm:$0xff] }
 0x191   :  { %2817 = vmatpush.msrb.mxu1 %v6052_v52  ;;  %2927 = vmatpush.msrb.mxu3 %v5250_v40 }
 0x192   :  { %2781 = vmatpush.msrb.mxu0 %v5333_v21  ;;  %2874 = vmatpush.msrb.mxu2 %v6054_v17  ;;  %v227_v21 = vld [vmem:[#allocation7 + $0x470] sm:$0xff] }
 0x193   :  { %2819 = vmatpush.msrb.mxu1 %v5250_v40  ;;  %2929 = vmatpush.msrb.mxu3 %v5262_v4  ;;  %v226_v40 = vld [vmem:[#allocation7 + $0x468] sm:$0xff]  ;;  %v5543_v9 = vand.u32 4294901760, %v227_v21 }
 0x194   :  { %2784 = vmatpush.msrb.mxu0 %v5345_v57  ;;  %2878 = vmatpush.msrb.mxu2 %v6055_v16  ;;  %v223_v57 = vld [vmem:[#allocation7 + $0x450] sm:$0xff] }
 0x195   :  { %2821 = vmatpush.msrb.mxu1 %v5262_v4  ;;  %2931 = vmatpush.msrb.mxu3 %v5279_v22  ;;  %v5536_v4 = vand.u32 4294901760, %v228_v61 }
 0x196   :  { %2787 = vmatpush.msrb.mxu0 %v5357_v7  ;;  %2882 = vmatpush.msrb.mxu2 %v6056_v34  ;;  %v5570_v7 = vand.u32 4294901760, %v224_v31 }
 0x197   :  { %2823 = vmatpush.msrb.mxu1 %v5279_v22  ;;  %2933 = vmatpush.msrb.mxu3 %v5294_v53  ;;  %v225_v22 = vld [vmem:[#allocation7 + $0x460] sm:$0xff] }
 0x198   :  { %2790 = vmatpush.msrb.mxu0 %v5370_v37  ;;  %2886 = vmatpush.msrb.mxu2 %v6057_v47 }
 0x199   :  { %2825 = vmatpush.msrb.mxu1 %v5294_v53  ;;  %2935 = vmatpush.msrb.mxu3 %v5307_v39  ;;  %v5550_v53 = vand.u32 4294901760, %v226_v40 }
 0x19a   :  { %2793 = vmatpush.msrb.mxu0 %v5383_v26  ;;  %2890 = vmatpush.msrb.mxu2 %v2713_v18  ;;  %v222_v18 = vld [vmem:[#allocation7 + $0x448] sm:$0xff]  ;;  %v5579_v26 = vand.u32 4294901760, %v223_v57 }
 0x19b   :  { %2827 = vmatpush.msrb.mxu1 %v5307_v39  ;;  %2937 = vmatpush.msrb.mxu3 %v5321_v11  ;;  %v5553_v39 = vsub.f32 %v228_v61, %v5536_v4  ;;  %v5574_v37 = vsub.f32 %v226_v40, %v5550_v53  ;;  %v214_v61 = vld [vmem:[#allocation7 + $0x408] sm:$0xff]  ;;  %v5685_v40 = vand.u32 4294901760, %v215_v1 }
 0x19c   :  { %2796 = vmatpush.msrb.mxu0 %v5396_v46  ;;  %2894 = vmatpush.msrb.mxu2 %v2719_v41  ;;  %v5590_v46 = vand.u32 4294901760, %v222_v18 }
 0x19d   :  { %2829 = vmatpush.msrb.mxu1 %v5321_v11  ;;  %2939 = vmatpush.msrb.mxu3 %v5335_v59  ;;  %v5560_v11 = vand.u32 4294901760, %v225_v22 }
 0x19e   :  { %2799 = vmatpush.msrb.mxu0 %v5414_v5  ;;  %2898 = vmatpush.msrb.mxu2 %v2725_v6  ;;  %v221_v6 = vld [vmem:[#allocation7 + $0x440] sm:$0xff]  ;;  %v3012_v5 = vand.u32 4294901760, %v5574_v37 }
 0x19f   :  { %2831 = vmatpush.msrb.mxu1 %v5335_v59  ;;  %2941 = vmatpush.msrb.mxu3 %v5347_v56  ;;  %v5563_v59 = vsub.f32 %v227_v21, %v5543_v9  ;;  %v5585_v41 = vsub.f32 %v225_v22, %v5560_v11  ;;  %v5611_v28 = vand.u32 4294901760, %v221_v6  ;;  %v3054_v22 = vand.u32 4294901760, %v5663_v42 }
 0x1a0   :  { %2802 = vmatpush.msrb.mxu0 %v5427_v35  ;;  %2902 = vmatpush.msrb.mxu2 %v2731_v10  ;;  %v5599_v10 = vsub.f32 %v224_v31, %v5570_v7  ;;  %v5604_v35 = vsub.f32 %v223_v57, %v5579_v26  ;;  %v3013_v0 = vsub.f32 %v5574_v37, %v3012_v5 }
 0x1a1   :  { %2833 = vmatpush.msrb.mxu1 %v5347_v56  ;;  %2943 = vmatpush.msrb.mxu3 %v5359_v33  ;;  %v3000_v56 = vand.u32 4294901760, %v5553_v39  ;;  %v5638_v12 = vsub.f32 %v221_v6, %v5611_v28 }
 0x1a2   :  { %2805 = vmatpush.msrb.mxu0 %v5441_v14  ;;  %2906 = vmatpush.msrb.mxu2 %v2737_v55  ;;  %v3018_v55 = vand.u32 4294901760, %v5585_v41  ;;  %v5617_v14 = vsub.f32 %v222_v18, %v5590_v46  ;;  %v3024_v50 = vand.u32 4294901760, %v5599_v10  ;;  %v3030_v43 = vand.u32 4294901760, %v5604_v35 }
 0x1a3   :  { %2835 = vmatpush.msrb.mxu1 %v5359_v33  ;;  %2945 = vmatpush.msrb.mxu3 %v5372_v15  ;;  %v3006_v33 = vand.u32 4294901760, %v5563_v59  ;;  %v3014_v23 = vand.u32 4294901760, %v3013_v0  ;;  %v3042_v62 = vand.u32 4294901760, %v5638_v12  ;;  %v3055_v0 = vsub.f32 %v5663_v42, %v3054_v22 }
 0x1a4   :  { %2808 = vmatmul.f32.vlgmr.msrb.gmra.mxu0 %v5430_v24  ;;  %2910 = vmatpush.msrb.mxu2 %v2743_v49  ;;  %v5624_v49 = vand.u32 4294901760, %v220_v32  ;;  %v3019_v27 = vsub.f32 %v5585_v41, %v3018_v55  ;;  %v3036_v2 = vand.u32 4294901760, %v5617_v14  ;;  %v3025_v29 = vsub.f32 %v5599_v10, %v3024_v50 }
 0x1a5   :  { %2958 = vmatpush.msra.mxu0 %v5536_v4  ;;  %2837 = vmatpush.msrb.mxu1 %v5372_v15  ;;  %v3001_v15 = vsub.f32 %v5553_v39, %v3000_v56  ;;  %v3031_v24 = vsub.f32 %v5604_v35, %v3030_v43  ;;  %v3043_v21 = vsub.f32 %v5638_v12, %v3042_v62 }
 0x1a6   :  { %2947 = vmatpush.msrb.mxu3 %v5388_v48  ;;  %2914 = vmatpush.msrb.mxu2 %v2749_v8  ;;  %v5651_v45 = vsub.f32 %v220_v32, %v5624_v49  ;;  %v3020_v13 = vand.u32 4294901760, %v3019_v27  ;;  %v3037_v63 = vsub.f32 %v5617_v14, %v3036_v2  ;;  %v3026_v54 = vand.u32 4294901760, %v3025_v29 }
 0x1a7   :  { %2960 = vmatpush.msra.mxu0 %v5543_v9  ;;  %2839 = vmatpush.msrb.mxu1 %v5388_v48  ;;  %v3007_v48 = vsub.f32 %v5563_v59, %v3006_v33  ;;  %v3002_v36 = vand.u32 4294901760, %v3001_v15  ;;  %v3032_v47 = vand.u32 4294901760, %v3031_v24  ;;  %v5700_v15 = vand.u32 4294901760, %v214_v61 }
 0x1a8   :  { %2949 = vmatpush.msrb.mxu3 %v5401_v3  ;;  %2916 = vmatmul.f32.vlgmr.msrb.gmra.mxu2 %v5403_v38  ;;  %v3048_v16 = vand.u32 4294901760, %v5651_v45  ;;  %v3038_v57 = vand.u32 4294901760, %v3037_v63  ;;  %v3056_v29 = vand.u32 4294901760, %v3055_v0 }
 0x1a9   :  { %2962 = vmatpush.msra.mxu0 %v5550_v53  ;;  %3101 = vmatpush.msra.mxu2 %v5553_v39  ;;  %v3008_v8 = vand.u32 4294901760, %v3007_v48  ;;  %v267_v39 = vpop.f32.mrf.mxu0 }
 0x1aa   :  { %2841 = vmatpush.msrb.mxu1 %v5401_v3  ;;  %2951 = vmatpush.msrb.mxu3 %v5416_v25  ;;  %v66_v3 = vld [vmem:[#allocation2 + $0x40] sm:$0xff]  ;;  %v3049_v6 = vsub.f32 %v5651_v45, %v3048_v16 }
 0x1ab   :  { %2953 = vmatmul.f32.vlgmr.msrb.gmra.mxu3 %v5403_v38  ;;  %2964 = vmatpush.msra.mxu0 %v5560_v11  ;;  %v218_v38 = vld [vmem:[#allocation7 + $0x428] sm:$0xff]  ;;  %v84_v60 = vmul.f32 %v75_v19, %v66_v3  ;;  %v5714_v19 = vsub.f32 %v215_v1, %v5685_v40 }
 0x1ac   :  { %3104 = vmatpush.msra.mxu2 %v5563_v59  ;;  %3154 = vmatpush.msra.mxu3 %v5536_v4  ;;  %v5648_v58 = vand.u32 4294901760, %v218_v38  ;;  %v3050_v27 = vand.u32 4294901760, %v3049_v6  ;;  %v422_v59 = vpop.f32.mrf.mxu2 }
 0x1ad   :  { %2843 = vmatpush.msrb.mxu1 %v5416_v25  ;;  %2966 = vmatpush.msra.mxu0 %v5570_v7  ;;  %v217_v25 = vld [vmem:[#allocation7 + $0x420] sm:$0xff]  ;;  %v5670_v52 = vand.u32 4294901760, %v84_v60 }
 0x1ae   :  { %2847 = vmatmul.f32.vlgmr.msrb.gmra.mxu1 %v2650_v30  ;;  %3107 = vmatpush.msra.mxu2 %v5574_v37  ;;  %v216_v30 = vld [vmem:[#allocation7 + $0x418] sm:$0xff]  ;;  %v5659_v20 = vand.u32 4294901760, %v217_v25  ;;  %v5677_v34 = vsub.f32 %v218_v38, %v5648_v58  ;;  %v5718_v38 = vand.u32 4294901760, %v213_v51 }
 0x1af   :  { %3003 = vmatpush.msra.mxu1 %v3002_v36  ;;  %3156 = vmatpush.msra.mxu3 %v5543_v9  ;;  %v5673_v17 = vand.u32 4294901760, %v216_v30  ;;  %v5694_v18 = vsub.f32 %v84_v60, %v5670_v52  ;;  %v3044_v36 = vand.u32 4294901760, %v3043_v21 }
 0x1b0   :  { %2968 = vmatpush.msra.mxu0 %v5579_v26  ;;  %3110 = vmatpush.msra.mxu2 %v5585_v41  ;;  %v5689_v31 = vsub.f32 %v217_v25, %v5659_v20  ;;  %v3060_v32 = vand.u32 4294901760, %v5677_v34  ;;  %v5740_v63 = vsub.f32 %v213_v51, %v5718_v38 }
 0x1b1   :  { %3009 = vmatpush.msra.mxu1 %v3008_v8  ;;  %3158 = vmatpush.msra.mxu3 %v5550_v53  ;;  %v5704_v48 = vsub.f32 %v216_v30, %v5673_v17  ;;  %v2991_v8 = vand.u32 4294901760, %v5694_v18  ;;  %v3078_v30 = vand.u32 4294901760, %v5714_v19 }
 0x1b2   :  { %2970 = vmatpush.msra.mxu0 %v5590_v46  ;;  %3113 = vmatpush.msra.mxu2 %v5599_v10  ;;  %v3066_v3 = vand.u32 4294901760, %v5689_v31  ;;  %v3061_v25 = vsub.f32 %v5677_v34, %v3060_v32  ;;  %v3090_v6 = vand.u32 4294901760, %v5740_v63 }
 0x1b3   :  { %3015 = vmatpush.msra.mxu1 %v3014_v23  ;;  %3160 = vmatpush.msra.mxu3 %v5560_v11  ;;  %v3072_v60 = vand.u32 4294901760, %v5704_v48  ;;  %v5727_v23 = vsub.f32 %v214_v61, %v5700_v15  ;;  %v3079_v21 = vsub.f32 %v5714_v19, %v3078_v30 }
 0x1b4   :  { %2972 = vmatpush.msra.mxu0 %v5611_v28  ;;  %3116 = vmatpush.msra.mxu2 %v5604_v35  ;;  %v3067_v24 = vsub.f32 %v5689_v31, %v3066_v3  ;;  %v3062_v1 = vand.u32 4294901760, %v3061_v25 }
 0x1b5   :  { %3021 = vmatpush.msra.mxu1 %v3020_v13  ;;  %3162 = vmatpush.msra.mxu3 %v5570_v7  ;;  %v2992_v13 = vsub.f32 %v5694_v18, %v2991_v8  ;;  %v3080_v0 = vand.u32 4294901760, %v3079_v21 }
 0x1b6   :  { %2974 = vmatpush.msra.mxu0 %v5624_v49  ;;  %3119 = vmatpush.msra.mxu2 %v5617_v14  ;;  %v3068_v61 = vand.u32 4294901760, %v3067_v24 }
 0x1b7   :  { %3027 = vmatpush.msra.mxu1 %v3026_v54  ;;  %3164 = vmatpush.msra.mxu3 %v5579_v26  ;;  %v3073_v54 = vsub.f32 %v5704_v48, %v3072_v60 }
 0x1b8   :  { %2976 = vmatpush.msra.mxu0 %v5635_v44  ;;  %3122 = vmatpush.msra.mxu2 %v5638_v12 }
 0x1b9   :  { %3033 = vmatpush.msra.mxu1 %v3032_v47  ;;  %3166 = vmatpush.msra.mxu3 %v5590_v46  ;;  %v3084_v47 = vand.u32 4294901760, %v5727_v23  ;;  %v3074_v51 = vand.u32 4294901760, %v3073_v54 }
 0x1ba   :  { %2978 = vmatpush.msra.mxu0 %v5648_v58  ;;  %3125 = vmatpush.msra.mxu2 %v5651_v45 }
 0x1bb   :  { %3039 = vmatpush.msra.mxu1 %v3038_v57  ;;  %3168 = vmatpush.msra.mxu3 %v5611_v28  ;;  %v2993_v57 = vand.u32 4294901760, %v2992_v13 }
 0x1bc   :  { %2980 = vmatpush.msra.mxu0 %v5659_v20  ;;  %3128 = vmatpush.msra.mxu2 %v5663_v42 }
 0x1bd   :  { %3045 = vmatpush.msra.mxu1 %v3044_v36  ;;  %3170 = vmatpush.msra.mxu3 %v5624_v49  ;;  %v3085_v36 = vsub.f32 %v5727_v23, %v3084_v47 }
 0x1be   :  { %2982 = vmatpush.msra.mxu0 %v5673_v17  ;;  %3131 = vmatpush.msra.mxu2 %v5677_v34 }
 0x1bf   :  { %3051 = vmatpush.msra.mxu1 %v3050_v27  ;;  %3172 = vmatpush.msra.mxu3 %v5635_v44  ;;  %v3091_v27 = vsub.f32 %v5740_v63, %v3090_v6  ;;  %v3086_v25 = vand.u32 4294901760, %v3085_v36 }
 0x1c0   :  { %2984 = vmatpush.msra.mxu0 %v5685_v40  ;;  %3134 = vmatpush.msra.mxu2 %v5689_v31 }
 0x1c1   :  { %3057 = vmatpush.msra.mxu1 %v3056_v29  ;;  %3174 = vmatpush.msra.mxu3 %v5648_v58  ;;  %v368_v29 = vpop.f32.mrf.mxu1  ;;  %v3092_v24 = vand.u32 4294901760, %v3091_v27 }
 0x1c2   :  { %2986 = vmatpush.msra.mxu0 %v5700_v15  ;;  %3137 = vmatpush.msra.mxu2 %v5704_v48 }
 0x1c3   :  { %3063 = vmatpush.msra.mxu1 %v3062_v1  ;;  %3176 = vmatpush.msra.mxu3 %v5659_v20 }
 0x1c4   :  { %2988 = vmatpush.msra.mxu0 %v5718_v38  ;;  %3140 = vmatpush.msra.mxu2 %v5714_v19 }
 0x1c5   :  { %3069 = vmatpush.msra.mxu1 %v3068_v61  ;;  %3178 = vmatpush.msra.mxu3 %v5673_v17 }
 0x1c6   :  { %2994 = vmatmul.f32.vlgmr.msra.gmra.mxu0 %v2993_v57  ;;  %3143 = vmatpush.msra.mxu2 %v5727_v23 }
 0x1c7   :  { %3195 = vmatpush.msrb.mxu0 %v3000_v56  ;;  %3075 = vmatpush.msra.mxu1 %v3074_v51  ;;  %v369_v56 = vadd.f32 %v368_v29, %v267_v39 }
 0x1c8   :  { %3180 = vmatpush.msra.mxu3 %v5685_v40  ;;  %3146 = vmatpush.msra.mxu2 %v5740_v63 }
 0x1c9   :  { %3199 = vmatpush.msrb.mxu0 %v3006_v33  ;;  %3081 = vmatpush.msra.mxu1 %v3080_v0  ;;  %v423_v37 = vadd.f32 %v422_v59, %v369_v56  ;;  %v461_v33 = vpop.f32.mrf.mxu3 }
 0x1ca   :  { %3182 = vmatpush.msra.mxu3 %v5700_v15  ;;  %3149 = vmatmul.f32.vlgmr.msra.gmra.mxu2 %v5694_v18 }
 0x1cb   :  { %3203 = vmatpush.msrb.mxu0 %v3012_v5  ;;  %3087 = vmatpush.msra.mxu1 %v3086_v25  ;;  %v462_v41 = vadd.f32 %v461_v33, %v423_v37  ;;  %v530_v5 = vpop.f32.mrf.mxu0 }
 0x1cc   :  { %3184 = vmatpush.msra.mxu3 %v5718_v38 }
 0x1cd   :  { %3188 = vmatmul.f32.vlgmr.msra.gmra.mxu3 %v2991_v8  ;;  %3207 = vmatpush.msrb.mxu0 %v3018_v55 }
 0x1ce   :  { %3093 = vmatpush.msra.mxu1 %v3092_v24 }
 0x1cf   :  { %3095 = vmatmul.f32.vlgmr.msra.gmra.mxu1 %v5670_v52  ;;  %3211 = vmatpush.msrb.mxu0 %v3024_v50 }
 0x1d0   :  { %3262 = vmatpush.msrb.mxu1 %v5536_v4  ;;  %v531_v4 = vadd.f32 %v530_v5, %v462_v41 }
 0x1d1   :  { %3215 = vmatpush.msrb.mxu0 %v3030_v43 }
 0x1d2   :  { %3264 = vmatpush.msrb.mxu1 %v5543_v9  ;;  %v567_v9 = vpop.f32.mrf.mxu1 }
 0x1d3   :  { %3219 = vmatpush.msrb.mxu0 %v3036_v2 }
 0x1d4   :  { %3266 = vmatpush.msrb.mxu1 %v5550_v53  ;;  %v568_v53 = vadd.f32 %v567_v9, %v531_v4 }
 0x1d5   :  { %3223 = vmatpush.msrb.mxu0 %v3042_v62 }
 0x1d6   :  { %3268 = vmatpush.msrb.mxu1 %v5560_v11  ;;  %v608_v11 = vpop.f32.mrf.mxu2 }
 0x1d7   :  { %3227 = vmatpush.msrb.mxu0 %v3048_v16 }
 0x1d8   :  { %3270 = vmatpush.msrb.mxu1 %v5570_v7  ;;  %v609_v7 = vadd.f32 %v608_v11, %v568_v53 }
 0x1d9   :  { %3231 = vmatpush.msrb.mxu0 %v3054_v22 }
 0x1da   :  { %3272 = vmatpush.msrb.mxu1 %v5579_v26  ;;  %v709_v26 = vpop.f32.mrf.mxu3  ;;  %v802_v35 = vpop.f32.mrf.mxu1 }
 0x1db   :  { %3235 = vmatpush.msrb.mxu0 %v3060_v32  ;;  %v710_v10 = vadd.f32 %v709_v26, %v609_v7 }
 0x1dc   :  { %3274 = vmatpush.msrb.mxu1 %v5590_v46  ;;  %v763_v46 = vpop.f32.mrf.mxu0 }
 0x1dd   :  { %3239 = vmatpush.msrb.mxu0 %v3066_v3 }
 0x1de   :  { %3276 = vmatpush.msrb.mxu1 %v5611_v28  ;;  %v764_v28 = vadd.f32 %v763_v46, %v710_v10  ;;  %v871_v14 = vpop.f32.mrf.mxu2 }
 0x1df   :  { %3243 = vmatpush.msrb.mxu0 %v3072_v60 }
 0x1e0   :  { %3278 = vmatpush.msrb.mxu1 %v5624_v49  ;;  %v803_v55 = vadd.f32 %v802_v35, %v764_v28 }
 0x1e1   :  { %3247 = vmatpush.msrb.mxu0 %v3078_v30 }
 0x1e2   :  { %3280 = vmatpush.msrb.mxu1 %v5635_v44  ;;  %v872_v49 = vadd.f32 %v871_v14, %v803_v55  ;;  %v908_v50 = vpop.f32.mrf.mxu3  ;;  %v1050_v12 = vpop.f32.mrf.mxu1 }
 0x1e3   :  { %3251 = vmatpush.msrb.mxu0 %v3084_v47 }
 0x1e4   :  { %3282 = vmatpush.msrb.mxu1 %v5648_v58  ;;  %v949_v43 = vpop.f32.mrf.mxu0  ;;  %v909_v44 = vadd.f32 %v908_v50, %v872_v49 }
 0x1e5   :  { %3255 = vmatpush.msrb.mxu0 %v3090_v6 }
 0x1e6   :  { %3284 = vmatpush.msrb.mxu1 %v5659_v20  ;;  %3257 = vmatmul.f32.vlgmr.msrb.gmra.mxu0 %v5670_v52  ;;  %v950_v2 = vadd.f32 %v949_v43, %v909_v44  ;;  %v1104_v45 = vpop.f32.mrf.mxu2 }
 0x1e8   :  { %3286 = vmatpush.msrb.mxu1 %v5673_v17  ;;  %v1051_v58 = vadd.f32 %v1050_v12, %v950_v2 }
 0x1ea   :  { %3288 = vmatpush.msrb.mxu1 %v5685_v40  ;;  %v1105_v20 = vadd.f32 %v1104_v45, %v1051_v58  ;;  %v1143_v62 = vpop.f32.mrf.mxu3  ;;  %v1249_v16 = vpop.f32.mrf.mxu1 }
 0x1ec   :  { %3290 = vmatpush.msrb.mxu1 %v5700_v15  ;;  %v1212_v42 = vpop.f32.mrf.mxu0  ;;  %v1144_v17 = vadd.f32 %v1143_v62, %v1105_v20 }
 0x1ee   :  { %3292 = vmatpush.msrb.mxu1 %v5718_v38  ;;  %v1213_v34 = vadd.f32 %v1212_v42, %v1144_v17  ;;  %v1290_v22 = vpop.f32.mrf.mxu2 }
 0x1ef   :  { %3294 = vmatmul.f32.vlgmr.msrb.gmra.mxu1 %v5670_v52 }
 0x1f0   :  { %v1250_v40 = vadd.f32 %v1249_v16, %v1213_v34 }
 0x1f2   :  { %v1291_v31 = vadd.f32 %v1290_v22, %v1250_v40  ;;  %v1391_v18 = vpop.f32.mrf.mxu3  ;;  %v1484_v48 = vpop.f32.mrf.mxu1 }
 0x1f4   :  { %v1445_v15 = vpop.f32.mrf.mxu0  ;;  %v1392_v32 = vadd.f32 %v1391_v18, %v1291_v31 }
 0x1f6   :  { %v1446_v52 = vadd.f32 %v1445_v15, %v1392_v32  ;;  %v1553_v19 = vpop.f32.mrf.mxu2 }
 0x1f8   :  { %v1485_v3 = vadd.f32 %v1484_v48, %v1446_v52 }
 0x1fa   :  { %v1554_v38 = vadd.f32 %v1553_v19, %v1485_v3  ;;  %v1590_v8 = vpop.f32.mrf.mxu3  ;;  %v1732_v30 = vpop.f32.mrf.mxu1 }
 0x1fc   :  { %v1631_v60 = vpop.f32.mrf.mxu0  ;;  %v1591_v23 = vadd.f32 %v1590_v8, %v1554_v38 }
 0x1fe   :  { %v1632_v13 = vadd.f32 %v1631_v60, %v1591_v23  ;;  %v1786_v1 = vpop.f32.mrf.mxu2 }
 0x200   :  { %v1733_v63 = vadd.f32 %v1732_v30, %v1632_v13 }
 0x202   :  { %v1787_v54 = vadd.f32 %v1786_v1, %v1733_v63  ;;  %v1825_v47 = vpop.f32.mrf.mxu3  ;;  %v1931_v57 = vpop.f32.mrf.mxu1 }
 0x204   :  { %v1894_v61 = vpop.f32.mrf.mxu0  ;;  %v1826_v21 = vadd.f32 %v1825_v47, %v1787_v54 }
 0x206   :  { %v1895_v6 = vadd.f32 %v1894_v61, %v1826_v21  ;;  %v1972_v36 = vpop.f32.mrf.mxu2 }
 0x208   :  { %v1932_v51 = vadd.f32 %v1931_v57, %v1895_v6 }
 0x20a   :  { %v1973_v0 = vadd.f32 %v1972_v36, %v1932_v51  ;;  %v2073_v27 = vpop.f32.mrf.mxu3  ;;  %v2166_v24 = vpop.f32.mrf.mxu1 }
 0x20c   :  { %v2127_v25 = vpop.f32.mrf.mxu0  ;;  %v2074_v29 = vadd.f32 %v2073_v27, %v1973_v0 }
 0x20e   :  { %v2128_v39 = vadd.f32 %v2127_v25, %v2074_v29  ;;  %v2235_v59 = vpop.f32.mrf.mxu2  ;;  %v3353_v29 = vlaneseq }
 0x210   :  { %v2167_v56 = vadd.f32 %v2166_v24, %v2128_v39 }
 0x212   :  { %v2236_v37 = vadd.f32 %v2235_v59, %v2167_v56  ;;  %v2272_v33 = vpop.f32.mrf.mxu3  ;;  %v2414_v4 = vpop.f32.mrf.mxu1 }
 0x214   :  { %v2313_v41 = vpop.f32.mrf.mxu0  ;;  %v2273_v5 = vadd.f32 %v2272_v33, %v2236_v37  ;;  %v3354_v37 = vshrl.u32 %v3353_v29, 7 }
 0x216   :  { %v2314_v9 = vadd.f32 %v2313_v41, %v2273_v5  ;;  %v2468_v11 = vpop.f32.mrf.mxu2 }
 0x218   :  { %v2415_v53 = vadd.f32 %v2414_v4, %v2314_v9  ;;  %v3356_v9 = vand.u32 127, %v3353_v29 }
 0x21a   :  { %v2469_v7 = vadd.f32 %v2468_v11, %v2415_v53  ;;  %v2507_v26 = vpop.f32.mrf.mxu3  ;;  %v2613_v35 = vpop.f32.mrf.mxu1  ;;  %v3360_v53 = vmul.u32 128, %v3354_v37 }
 0x21c   :  { %v2576_v46 = vpop.f32.mrf.mxu0  ;;  %v2508_v10 = vadd.f32 %v2507_v26, %v2469_v7  ;;  %v3361_v26 = vadd.s32 %v3360_v53, %v3356_v9 }
 0x21e   :  { %v2577_v28 = vadd.f32 %v2576_v46, %v2508_v10  ;;  %v2654_v14 = vpop.f32.mrf.mxu2  ;;  %vm3362_vm3 = vcmp.lt.s32.totalorder %v3361_v26, 8 }
 0x220   :  { %v2614_v55 = vadd.f32 %v2613_v35, %v2577_v28 }
 0x222   :  { %v2655_v49 = vadd.f32 %v2654_v14, %v2614_v55  ;;  %v2755_v50 = vpop.f32.mrf.mxu3 }
 0x224   :  { %v2809_v43 = vpop.f32.mrf.mxu0  ;;  %v2756_v44 = vadd.f32 %v2755_v50, %v2655_v49 }
 0x226   :  { %v2810_v2 = vadd.f32 %v2809_v43, %v2756_v44 }
 0x22b   :  { %v2848_v12 = vpop.f32.mrf.mxu1  ;;  %v2917_v45 = vpop.f32.mrf.mxu2 }
 0x22c   :  { %v2849_v58 = vadd.f32 %v2848_v12, %v2810_v2 }
 0x22e   :  { %v2918_v20 = vadd.f32 %v2917_v45, %v2849_v58  ;;  %v2954_v62 = vpop.f32.mrf.mxu3 }
 0x230   :  { %v2955_v17 = vadd.f32 %v2954_v62, %v2918_v20 }
 0x243   :  { %v2995_v42 = vpop.f32.mrf.mxu0 }
 0x244   :  { %v2996_v34 = vadd.f32 %v2995_v42, %v2955_v17 }
 0x24c   :  { %v3096_v16 = vpop.f32.mrf.mxu1 }
 0x24d   :  { %v3097_v40 = vadd.f32 %v3096_v16, %v2996_v34  ;;  %v3150_v22 = vpop.f32.mrf.mxu2 }
 0x24f   :  { %v3151_v31 = vadd.f32 %v3150_v22, %v3097_v40 }
 0x250   :  { %v3189_v18 = vpop.f32.mrf.mxu3 }
 0x251   :  { %v3190_v32 = vadd.f32 %v3189_v18, %v3151_v31 }
 0x263   :  { %v3258_v15 = vpop.f32.mrf.mxu0 }
 0x264   :  { %v3259_v48 = vadd.f32 %v3258_v15, %v3190_v32 }
 0x26c   :  { %v3295_v52 = vpop.f32.mrf.mxu1 }
 0x26d   :  { %v3296_v3 = vadd.f32 %v3295_v52, %v3259_v48 }
 0x26f   :  { %v3389_v19 = vadd.f32 -1.0, %v3296_v3 }
 0x271   :  { %v3299_v38 = vmul.f32 0.5, %v3389_v19 }
 0x273   :  { %v3390_v8 = vclamps-f32 %v3299_v38, 1.0 }
 0x275   :  { %v3302_v60 = vand.u32 2147483647, %v3390_v8  ;;  %vm3335_vm4 = vcmp.lt.f32.partialorder %v3390_v8, 0.0 }
 0x277   :  { %v3304_v23 = vsub.f32 1.0, %v3302_v60  ;;  %v3319_v13 = vmul.f32 %v3302_v60, %v3302_v60  ;;  %vm3303_vm0 = vcmp.le.f32.partialorder %v3302_v60, 0.5 }
 0x279   :  { %v3305_v30 = vmul.f32 0.5, %v3304_v23 }
 0x27b   :  { %3397 = vrsqrt.f32 %v3305_v30  ;;  %v3320_v63 = vsel %vm3303_vm0, %v3319_v13, %v3305_v30  ;;  %vm3313_vm1 = vcmp.eq.f32.partialorder %v3305_v30, inf  ;;  %v3316_v39 = vand.u32 2147483648, %v3305_v30 }
 0x27c   :  { %v3321_v1 = vmul.f32 0.0421632, %v3320_v63  ;;  %vm3315_vm2 = vcmp.eq.f32.partialorder %v3305_v30, 0.0 }
 0x27e   :  { %v3322_v54 = vadd.f32 0.024181312, %v3321_v1 }
 0x280   :  { %v3323_v61 = vmul.f32 %v3322_v54, %v3320_v63 }
 0x281   :  { %v3398_v47 = vpop.eup %3397 }
 0x282   :  { %v3307_v21 = vmul.f32 %v3398_v47, %v3305_v30  ;;  %v3324_v57 = vadd.f32 0.045470025, %v3323_v61 }
 0x284   :  { %v3308_v6 = vmul.f32 %v3398_v47, %v3307_v21  ;;  %v3325_v51 = vmul.f32 %v3324_v57, %v3320_v63 }
 0x286   :  { %v3309_v36 = vmul.f32 0.5, %v3308_v6  ;;  %v3326_v27 = vadd.f32 0.074953005, %v3325_v51 }
 0x288   :  { %v3310_v0 = vsub.f32 1.5, %v3309_v36  ;;  %v3327_v56 = vmul.f32 %v3326_v27, %v3320_v63 }
 0x28a   :  { %v3311_v25 = vmul.f32 %v3398_v47, %v3310_v0  ;;  %v3328_v5 = vadd.f32 0.16666752, %v3327_v56 }
 0x28c   :  { %v3312_v24 = vmul.f32 %v3311_v25, %v3305_v30 }
 0x28e   :  { %v3314_v59 = vsel %vm3313_vm1, %v3305_v30, %v3312_v24 }
 0x28f   :  { %v3317_v33 = vsel %vm3315_vm2, %v3316_v39, %v3314_v59 }
 0x290   :  { %v3318_v41 = vsel %vm3303_vm0, %v3302_v60, %v3317_v33 }
 0x291   :  { %v3329_v4 = vmul.f32 %v3320_v63, %v3318_v41 }
 0x293   :  { %v3330_v11 = vmul.f32 %v3329_v4, %v3328_v5 }
 0x295   :  { %v3331_v7 = vadd.f32 %v3330_v11, %v3318_v41 }
 0x297   :  { %v3332_v46 = vsub.f32 1.5707964, %v3331_v7  ;;  %v3333_v10 = vmul.f32 2.0, %v3331_v7 }
 0x299   :  { %v3334_v35 = vsel %vm3303_vm0, %v3332_v46, %v3333_v10 }
 0x29a   :  { %v3336_v28 = vsub.f32 3.1415927, %v3334_v35 }
 0x29c   :  { %v3337_v55 = vsel %vm3335_vm4, %v3336_v28, %v3334_v35 }
 0x29d   :  { %v3363_v14 = vsel %vm3362_vm3, %v3337_v55, 0.0 }
 0x29e   :  { %v3364_v49 = vrot.slane %v3363_v14, 4 }
 0x2a0   :  { %v3365_v50 = vadd.f32 %v3364_v49, %v3363_v14 }
 0x2a2   :  { %v3366_v43 = vrot.slane %v3365_v50, 2 }
 0x2a4   :  { %v3367_v44 = vadd.f32 %v3366_v43, %v3365_v50 }
 0x2a6   :  { %v3368_v12 = vrot.slane %v3367_v44, 1 }
 0x2a8   :  { %v3369_v2 = vadd.f32 %v3368_v12, %v3367_v44 }
 0x2aa   :  { %3370 = vst [vmem:[#allocation8] sm:$0x1] %v3369_v2 }
 0x2ab   :  { %3381 = dma.vmem_to_hbm [thread:$0]  %s3377_s2, 16, %s3379_s30, [#allocation4]  }
 0x2ac   :  { %3499 = dma.done.wait [#allocation4], 16  }
 0x2ad   :  { %3500 = vsyncadd [#allocation4], 4294967280 }
 0x2ae   :  { %3386 = vsyncpa [#allocation3], 1 }
 0x2af   :  { %3387 = vsyncpa [#allocation6], 1 }
 0x2b0   :  { %3388 = vsyncpa [#allocation4], 1 }

</bundles_post_ra>
